<compile_context>
chip_gen: v7x
topology: tpu7x:2x2x1
jax: 0.10.0
libtpu: 0.0.40
codegen_flags: <defaults>
</compile_context>

<pallas_src>
import functools

import jax
import jax.numpy as jnp
import numpy as np
from jax.experimental import pallas as pl
from jax.experimental.pallas import tpu as pltpu


def _round_up(x, m):
    return (x + m - 1) // m * m


def _pick_tt(T, target=16):
    """Timesteps per grid step.  Must divide T and be a multiple of 8 (or == T)
    because TT is the second-minor dim of the batch-major h_top output block."""
    for tt in range(min(target, T), 0, -1):
        if T % tt == 0 and (tt % 8 == 0 or tt == T):
            return tt
    return T


def _pick_bb(Bp, num_blocks_target=1):
    """Batch rows per grid block: a multiple of 8 that divides Bp (padded batch)."""
    want = max(8, (Bp // max(num_blocks_target, 1)) // 8 * 8)
    bb = 8
    for cand in range(8, Bp + 1, 8):
        if Bp % cand == 0 and cand <= want:
            bb = cand
    return bb


def _pick_tm(rows, target):
    """Largest multiple of 8 that divides `rows` and is <= target."""
    tm = 8
    for cand in range(8, min(rows, target) + 1, 8):
        if rows % cand == 0:
            tm = cand
    return tm


def _tpu_tuning():
    """Chip-dependent knobs: phase-2 row tile, vmem limit, bf16-exp, #tensorcores."""
    kind = ""
    try:
        kind = jax.devices()[0].device_kind.lower()
    except Exception:
        pass
    vmem_bytes = 64 * 1024 * 1024  # conservative default (v7x per-core VMEM)
    try:
        vmem_bytes = int(pltpu.get_tpu_info().vmem_capacity_bytes)
    except Exception:
        pass
    is_v5e = ("v5 lite" in kind) or ("v5e" in kind) or ("v5litepod" in kind)
    two_tc = any(t in kind for t in ("v7", "7x", "v5p", "v4"))
    big_vmem = vmem_bytes >= 100 * 1024 * 1024
    fc_row_tile = 256 if big_vmem else 128          # smaller phase-2 row tile on v7x
    vmem_limit = max(32 * 1024 * 1024,
                     min(vmem_bytes * 3 // 4, 96 * 1024 * 1024))
    exp_bf16 = not is_v5e                           # bf16 EUP only on v6e/v7x
    return fc_row_tile, int(vmem_limit), exp_bf16, two_tc


# ---------------------------------------------------------------------------
# Phase 1: sequential LSTM recurrence (layer-0/1 wavefront).
# ---------------------------------------------------------------------------
def _lstm_recurrence_kernel(gin0_ref, hwhh0_init_ref, whh0_ref, wblk_ref, wcat_ref,
                            b_ref, h0_ref, c0_ref,
                            htop_ref, hn_ref, cn_ref,
                            h_sc, c_sc, hwhh0_sc, lhs_sc,
                            *, num_layers, hidden, tt_block):
    H = hidden
    L = num_layers
    f32, bf16 = jnp.float32, jnp.bfloat16
    t_idx = pl.program_id(1)

    # (Re)initialize the per-batch-block recurrent state at the first time block.
    @pl.when(t_idx == 0)
    def _():
        h_sc[...] = h0_ref[...]
        c_sc[...] = c0_ref[...]
        hwhh0_sc[...] = hwhh0_init_ref[...]

    def cell(gates, c_prev):
        # PyTorch gate order: i, f, g, o.
        i_g = jax.nn.sigmoid(gates[:, 0 * H:1 * H])
        f_g = jax.nn.sigmoid(gates[:, 1 * H:2 * H])
        g_g = jnp.tanh(gates[:, 2 * H:3 * H])
        o_g = jax.nn.sigmoid(gates[:, 3 * H:4 * H])
        c_new = f_g * c_prev + i_g * g_g
        h_new = o_g * jnp.tanh(c_new)
        return h_new, c_new

    # Grid-invariant weight / bias loads hoisted out of the timestep loop.
    b0 = b_ref[0]
    if L >= 2:
        wblk = wblk_ref[...]                                # (3H, 8H) bf16 blockdiag
        b1 = b_ref[1]
        wcats = [wcat_ref[l] for l in range(L - 2)]          # layers 2.. fused weights
        brest = [b_ref[l] for l in range(2, L)]
    else:
        whh0 = whh0_ref[...]

    for tt in range(tt_block):                                # static unroll
        # ---- layer 0: uses the carried h0(t-1) @ W_hh0 product ----
        gates0 = gin0_ref[tt].astype(f32) + hwhh0_sc[...] + b0
        x, c_new = cell(gates0, c_sc[0])
        h_sc[0] = x
        c_sc[0] = c_new

        if L >= 2:
            # ---- wavefront: layer-1 gates at t AND h0(t)@Whh0 (for t+1) from
            #      one block-diagonal matmul; LHS staged in persistent VMEM ----
            x_bf = x.astype(bf16)
            lhs_sc[:, 0 * H:1 * H] = x_bf
            lhs_sc[:, 1 * H:2 * H] = h_sc[1].astype(bf16)
            lhs_sc[:, 2 * H:3 * H] = x_bf
            fused = jnp.dot(lhs_sc[...], wblk,
                            preferred_element_type=f32)       # (BB, 8H)
            hwhh0_sc[...] = fused[:, 4 * H:8 * H]
            x, c_new = cell(fused[:, 0:4 * H] + b1, c_sc[1])
            h_sc[1] = x
            c_sc[1] = c_new

            # ---- layers 2..L-1 (generic sequential path) ----
            for l in range(2, L):
                lhs_sc[:, 0 * H:1 * H] = x.astype(bf16)
                lhs_sc[:, 1 * H:2 * H] = h_sc[l].astype(bf16)
                gates = jnp.dot(lhs_sc[:, 0:2 * H], wcats[l - 2],
                                preferred_element_type=f32) + brest[l - 2]
                x, c_new = cell(gates, c_sc[l])
                h_sc[l] = x
                c_sc[l] = c_new
        else:
            # L == 1: compute the carried product for the next timestep.
            hwhh0_sc[...] = jnp.dot(x.astype(bf16), whh0,
                                    preferred_element_type=f32)

        htop_ref[:, tt, :] = x.astype(htop_ref.dtype)          # batch-major store

    # Write final hidden / cell state once, at the last time block.
    @pl.when(t_idx == pl.num_programs(1) - 1)
    def _():
        hn_ref[...] = h_sc[...]
        cn_ref[...] = c_sc[...]


# ---------------------------------------------------------------------------
# Phase 2: batched Linear + softmax over all (Bp*T) rows, row-tiled & parallel.
# ---------------------------------------------------------------------------
def _fc_softmax_kernel(x_ref, wfc_ref, bfc_ref, probs_ref, *, exp_bf16):
    logits = jnp.dot(x_ref[...], wfc_ref[...],
                     preferred_element_type=jnp.float32) + bfc_ref[...]
    m = jnp.max(logits, axis=-1, keepdims=True)
    z = logits - m
    if exp_bf16:
        e = jnp.exp(z.astype(jnp.bfloat16)).astype(jnp.float32)
    else:
        e = jnp.exp(z)
    denom = jnp.sum(e, axis=-1, keepdims=True)
    probs_ref[...] = (e * pl.reciprocal(denom, approx=True)).astype(probs_ref.dtype)


def decoder_forward(tokens, h0, c0, params, *, tt_target=16, fc_row_tile=None):
    """tokens: (B, T) int32; h0, c0: (L, B, H) f32.
    Returns (probs (B, T, V) bf16, hn (L, B, H) f32, cn (L, B, H) f32)."""
    emb_table, wih, whh, b, wfc, bfc = params
    B, T = tokens.shape
    L, _, H = h0.shape
    V = wfc.shape[1]
    f32, bf16 = jnp.float32, jnp.bfloat16

    tile_cfg, vmem_limit, exp_bf16, two_tc = _tpu_tuning()
    if fc_row_tile is None:
        fc_row_tile = tile_cfg

    Bp = _round_up(max(B, 1), 8)      # pad batch to f32 sublane granularity
    Vp = _round_up(V, 128)            # pad vocab to lane granularity
    TT = _pick_tt(T, tt_target)       # timesteps per grid step
    BB = _pick_bb(Bp, 2 if two_tc else 1)   # batch rows per grid block

    # ---- XLA glue: embedding gather, batch-padded, time-major for the proj ----
    emb = jnp.take(emb_table, tokens, axis=0)                          # (B, T, H)
    emb_tm = jnp.transpose(emb, (1, 0, 2))                             # (T, B, H)
    emb_tm = jnp.pad(emb_tm, ((0, 0), (0, Bp - B), (0, 0))).astype(bf16)

    # layer-0 input projection hoisted out of the recurrence (bias added in-kernel
    # in f32); bf16 storage halves the only per-step phase-1 input DMA.
    gin0 = jnp.einsum("tbh,hg->tbg", emb_tm, wih[0].astype(bf16),
                      preferred_element_type=f32).astype(bf16)         # (T, Bp, 4H)

    h0p = jnp.pad(h0.astype(f32), ((0, 0), (0, Bp - B), (0, 0)))
    c0p = jnp.pad(c0.astype(f32), ((0, 0), (0, Bp - B), (0, 0)))

    whh0 = whh[0].astype(bf16)
    # initial h0 @ W_hh0, hoisted out of the serial recurrence
    hwhh0_init = jnp.dot(h0p[0].astype(bf16), whh0,
                         preferred_element_type=f32)                   # (Bp, 4H)

    # block-diagonal fused weight for the layer-0/1 wavefront:
    #   [x(t), h1(t-1), x(t)] @ [[Wih1, 0], [Whh1, 0], [0, Whh0]] -> [gates1 | x(t)@Whh0]
    if L >= 2:
        zH = jnp.zeros((H, 4 * H), f32)
        wblk = jnp.concatenate([
            jnp.concatenate([wih[1], zH], axis=1),
            jnp.concatenate([whh[1], zH], axis=1),
            jnp.concatenate([zH, whh[0]], axis=1),
        ], axis=0).astype(bf16)                                        # (3H, 8H)
    else:
        wblk = jnp.zeros((3 * H, 8 * H), bf16)                         # unused dummy
    Lr = max(L - 2, 1)
    if L > 2:
        wcat_rest = jnp.concatenate([wih[2:], whh[2:]], axis=1).astype(bf16)
    else:
        wcat_rest = jnp.zeros((1, 2 * H, 4 * H), bf16)                 # unused dummy
    b_all = b.astype(f32)                                              # (L, 1, 4H)

    rec_kernel = functools.partial(_lstm_recurrence_kernel,
                                   num_layers=L, hidden=H, tt_block=TT)
    rec_cost = pl.CostEstimate(
        flops=int(2 * T * Bp * (3 * H) * (8 * H)
                  + 2 * T * Bp * max(L - 2, 0) * (2 * H) * (4 * H)),
        transcendentals=int(5 * T * Bp * L * H),
        bytes_accessed=int(gin0.size * 2 + Bp * T * H * 2 + Bp * 4 * H * 4
                           + (3 * H * 8 * H + H * 4 * H + Lr * 2 * H * 4 * H) * 2
                           + 4 * L * Bp * H * 4 + L * 4 * H * 4))

    # TODO(synk): single-buffer the grid-invariant weight operands via
    # pipeline_mode=pl.Buffered(1) once confirmed on the deployed jax build.
    h_top, hn, cn = pl.pallas_call(
        rec_kernel,
        out_shape=(
            jax.ShapeDtypeStruct((Bp, T, H), bf16),   # batch-major top-layer h
            jax.ShapeDtypeStruct((L, Bp, H), f32),    # hn
            jax.ShapeDtypeStruct((L, Bp, H), f32),    # cn
        ),
        grid_spec=pltpu.PrefetchScalarGridSpec(
            num_scalar_prefetch=0,
            grid=(Bp // BB, T // TT),
            in_specs=[
                pl.BlockSpec((TT, BB, 4 * H), lambda bb, s: (s, bb, 0)),     # gin0
                pl.BlockSpec((BB, 4 * H), lambda bb, s: (bb, 0)),            # h0 @ Whh0
                pl.BlockSpec((H, 4 * H), lambda bb, s: (0, 0)),              # Whh0 (L==1)
                pl.BlockSpec((3 * H, 8 * H), lambda bb, s: (0, 0)),          # blockdiag W
                pl.BlockSpec((Lr, 2 * H, 4 * H), lambda bb, s: (0, 0, 0)),   # layers 2.. W
                pl.BlockSpec((L, 1, 4 * H), lambda bb, s: (0, 0, 0)),        # biases
                pl.BlockSpec((L, BB, H), lambda bb, s: (0, bb, 0)),          # h0
                pl.BlockSpec((L, BB, H), lambda bb, s: (0, bb, 0)),          # c0
            ],
            out_specs=[
                pl.BlockSpec((BB, TT, H), lambda bb, s: (bb, s, 0)),
                pl.BlockSpec((L, BB, H), lambda bb, s: (0, bb, 0)),
                pl.BlockSpec((L, BB, H), lambda bb, s: (0, bb, 0)),
            ],
            scratch_shapes=[
                pltpu.VMEM((L, BB, H), f32),       # h state
                pltpu.VMEM((L, BB, H), f32),       # c state
                pltpu.VMEM((BB, 4 * H), f32),      # carried h0 @ Whh0
                pltpu.VMEM((BB, 3 * H), bf16),     # fused-matmul LHS staging
            ],
        ),
        compiler_params=pltpu.CompilerParams(
            dimension_semantics=("parallel", "arbitrary"),
            vmem_limit_bytes=vmem_limit),
        cost_estimate=rec_cost,
    )(gin0, hwhh0_init, whh0, wblk, wcat_rest, b_all, h0p, c0p)

    # ---- phase 2: Linear + softmax over all (Bp*T) rows, batch-major ----
    rows = Bp * T
    TM = _pick_tm(rows, fc_row_tile)
    if TM < min(64, rows):            # awkward row count: pad rather than tiny tiles
        TM = min(fc_row_tile, _round_up(rows, 8))
    Mp = _round_up(rows, TM)

    x_flat = h_top.reshape(rows, H)                                    # no transpose
    if Mp > rows:
        x_flat = jnp.pad(x_flat, ((0, Mp - rows), (0, 0)))
    wfc_p = jnp.pad(wfc, ((0, 0), (0, Vp - V))).astype(bf16)           # (H, Vp)
    # Padded vocab columns get a hugely negative bias -> exact 0 probability.
    bfc_p = jnp.pad(bfc.astype(f32), ((0, 0), (0, Vp - V)),
                    constant_values=-1e30)                             # (1, Vp)

    fc_kernel = functools.partial(_fc_softmax_kernel, exp_bf16=exp_bf16)
    fc_cost = pl.CostEstimate(
        flops=int(2 * Mp * H * Vp),
        transcendentals=int(Mp * Vp),
        bytes_accessed=int(Mp * H * 2 + H * Vp * 2 + Vp * 4 + Mp * Vp * 2))

    probs_p = pl.pallas_call(
        fc_kernel,
        out_shape=jax.ShapeDtypeStruct((Mp, Vp), bf16),  # bf16 store halves HBM writes
        grid_spec=pltpu.PrefetchScalarGridSpec(
            num_scalar_prefetch=0,
            grid=(Mp // TM,),
            in_specs=[
                pl.BlockSpec((TM, H), lambda i: (i, 0)),
                pl.BlockSpec((H, Vp), lambda i: (0, 0)),
                pl.BlockSpec((1, Vp), lambda i: (0, 0)),
            ],
            out_specs=pl.BlockSpec((TM, Vp), lambda i: (i, 0)),
        ),
        compiler_params=pltpu.CompilerParams(
            dimension_semantics=("parallel",),
            vmem_limit_bytes=vmem_limit),
        cost_estimate=fc_cost,
    )(x_flat, wfc_p, bfc_p)

    probs_flat = probs_p if Mp == rows else probs_p[:rows]
    # Already batch-first: one fused batch/vocab slice, no transpose.
    probs = probs_flat.reshape(Bp, T, Vp)[:B, :, :V]
    return probs, hn[:, :B, :], cn[:, :B, :]


def decoder_reference(tokens, h0, c0, params):
    """Plain-JAX f32 reference matching nn.Embedding + nn.LSTM + nn.Linear + Softmax."""
    emb_table, wih, whh, b, wfc, bfc = params
    B, T = tokens.shape
    L, _, H = h0.shape
    emb = jnp.take(emb_table, tokens, axis=0)  # (B, T, H)
    h = [h0[l] for l in range(L)]
    c = [c0[l] for l in range(L)]
    outs = []
    for t in range(T):
        x = emb[:, t, :]
        for l in range(L):
            gates = x @ wih[l] + h[l] @ whh[l] + b[l]
            i_g = jax.nn.sigmoid(gates[:, 0 * H:1 * H])
            f_g = jax.nn.sigmoid(gates[:, 1 * H:2 * H])
            g_g = jnp.tanh(gates[:, 2 * H:3 * H])
            o_g = jax.nn.sigmoid(gates[:, 3 * H:4 * H])
            c[l] = f_g * c[l] + i_g * g_g
            h[l] = o_g * jnp.tanh(c[l])
            x = h[l]
        logits = x @ wfc + bfc
        outs.append(jax.nn.softmax(logits, axis=-1))
    out = jnp.stack(outs, axis=1)  # (B, T, V)
    return out, jnp.stack(h, axis=0), jnp.stack(c, axis=0)


if __name__ == "__main__":
    # Small, module-consistent shapes (module defaults are hidden=256, layers=2,
    # output_size=10005; scaled down here).
    B, T, H, L, V = 2, 8, 32, 2, 128

    key = jax.random.PRNGKey(0)
    ks = jax.random.split(key, 10)
    scale = 1.0 / float(np.sqrt(H))

    emb_table = jax.random.normal(ks[0], (V, H), jnp.float32)
    wih = jax.random.uniform(ks[1], (L, H, 4 * H), jnp.float32, -scale, scale)
    whh = jax.random.uniform(ks[2], (L, H, 4 * H), jnp.float32, -scale, scale)
    b_ih = jax.random.uniform(ks[3], (L, 1, 4 * H), jnp.float32, -scale, scale)
    b_hh = jax.random.uniform(ks[4], (L, 1, 4 * H), jnp.float32, -scale, scale)
    b = b_ih + b_hh
    wfc = jax.random.uniform(ks[5], (H, V), jnp.float32, -scale, scale)
    bfc = jax.random.uniform(ks[6], (1, V), jnp.float32, -scale, scale)
    params = (emb_table, wih, whh, b, wfc, bfc)

    tokens = jax.random.randint(ks[7], (B, T), 0, V, dtype=jnp.int32)
    h0 = jax.random.normal(ks[8], (L, B, H), jnp.float32)
    c0 = jax.random.normal(ks[9], (L, B, H), jnp.float32)

    out, hn, cn = jax.block_until_ready(decoder_forward(tokens, h0, c0, params))

    # Correctness check against the pure-JAX f32 reference (tolerance loosened
    # because the kernel uses bf16 matmul operands / stores with f32 accumulation).
    out_ref, hn_ref, cn_ref = decoder_reference(tokens, h0, c0, params)
    out_f32 = np.asarray(out.astype(jnp.float32))
    np.testing.assert_allclose(out_f32, np.asarray(out_ref), atol=5e-2, rtol=5e-2)
    np.testing.assert_allclose(np.asarray(hn), np.asarray(hn_ref), atol=5e-2, rtol=5e-2)
    np.testing.assert_allclose(np.asarray(cn), np.asarray(cn_ref), atol=5e-2, rtol=5e-2)
    np.testing.assert_allclose(out_f32.sum(-1), 1.0, atol=1e-2)

    print("KERNEL_OK")
</pallas_src>

<mosaic_0001>
module attributes {stable_mosaic.version = 11 : i64} {
  func.func @_lstm_recurrence_kernel(%arg0: i32, %arg1: i32, %arg2: memref<8x8x128xbf16, #tpu.memory_space<vmem>>, %arg3: memref<8x128xf32, #tpu.memory_space<vmem>>, %arg4: memref<32x128xbf16, #tpu.memory_space<vmem>>, %arg5: memref<96x256xbf16, #tpu.memory_space<vmem>>, %arg6: memref<1x64x128xbf16, #tpu.memory_space<vmem>>, %arg7: memref<2x1x128xf32, #tpu.memory_space<vmem>>, %arg8: memref<2x8x32xf32, #tpu.memory_space<vmem>>, %arg9: memref<2x8x32xf32, #tpu.memory_space<vmem>>, %arg10: memref<8x8x32xbf16, #tpu.memory_space<vmem>>, %arg11: memref<2x8x32xf32, #tpu.memory_space<vmem>>, %arg12: memref<2x8x32xf32, #tpu.memory_space<vmem>>, %arg13: memref<2x8x32xf32, #tpu.memory_space<vmem>>, %arg14: memref<2x8x32xf32, #tpu.memory_space<vmem>>, %arg15: memref<8x128xf32, #tpu.memory_space<vmem>>, %arg16: memref<8x96xbf16, #tpu.memory_space<vmem>>) attributes {dimension_semantics = [#tpu.dimension_semantics<parallel>, #tpu.dimension_semantics<arbitrary>], iteration_bounds = array<i64: 1, 1>, scalar_prefetch = 0 : i64, scratch_operands = 4 : i64, tpu.core_type = #tpu.core_type<tc>, window_params = [{transform_indices = @transform_0, window_bounds = array<i64: 8, 8, 128>}, {transform_indices = @transform_1, window_bounds = array<i64: 8, 128>}, {pipeline_mode = #tpu.pipeline_mode<synchronous>, transform_indices = @transform_2, window_bounds = array<i64: 32, 128>}, {pipeline_mode = #tpu.pipeline_mode<synchronous>, transform_indices = @transform_3, window_bounds = array<i64: 96, 256>}, {pipeline_mode = #tpu.pipeline_mode<synchronous>, transform_indices = @transform_4, window_bounds = array<i64: 1, 64, 128>}, {pipeline_mode = #tpu.pipeline_mode<synchronous>, transform_indices = @transform_5, window_bounds = array<i64: 2, 1, 128>}, {transform_indices = @transform_6, window_bounds = array<i64: 2, 8, 32>}, {transform_indices = @transform_7, window_bounds = array<i64: 2, 8, 32>}, {transform_indices = @transform_8, window_bounds = array<i64: 8, 8, 32>}, {transform_indices = @transform_9, window_bounds = array<i64: 2, 8, 32>}, {transform_indices = @transform_10, window_bounds = array<i64: 2, 8, 32>}]} {
    %c0_i32 = arith.constant 0 : i32
    %0 = arith.cmpi eq, %arg1, %c0_i32 : i32
    %1 = arith.extui %0 : i1 to i32
    %c0_i32_0 = arith.constant 0 : i32
    %2 = arith.cmpi ne, %1, %c0_i32_0 : i32
    scf.if %2 {
      %c0_368 = arith.constant 0 : index
      %c0_369 = arith.constant 0 : index
      %c0_370 = arith.constant 0 : index
      %739 = vector.load %arg8[%c0_368, %c0_369, %c0_370] : memref<2x8x32xf32, #tpu.memory_space<vmem>>, vector<2x8x32xf32>
      %c0_371 = arith.constant 0 : index
      %c0_372 = arith.constant 0 : index
      %c0_373 = arith.constant 0 : index
      %740 = vector.load %arg13[%c0_371, %c0_372, %c0_373] : memref<2x8x32xf32, #tpu.memory_space<vmem>>, vector<2x8x32xf32>
      tpu.vector_store %arg13[%c0_371, %c0_372, %c0_373], %739 {strides = array<i32>} : memref<2x8x32xf32, #tpu.memory_space<vmem>>, vector<2x8x32xf32>,
      %c0_374 = arith.constant 0 : index
      %c0_375 = arith.constant 0 : index
      %c0_376 = arith.constant 0 : index
      %741 = vector.load %arg9[%c0_374, %c0_375, %c0_376] : memref<2x8x32xf32, #tpu.memory_space<vmem>>, vector<2x8x32xf32>
      %c0_377 = arith.constant 0 : index
      %c0_378 = arith.constant 0 : index
      %c0_379 = arith.constant 0 : index
      %742 = vector.load %arg14[%c0_377, %c0_378, %c0_379] : memref<2x8x32xf32, #tpu.memory_space<vmem>>, vector<2x8x32xf32>
      tpu.vector_store %arg14[%c0_377, %c0_378, %c0_379], %741 {strides = array<i32>} : memref<2x8x32xf32, #tpu.memory_space<vmem>>, vector<2x8x32xf32>,
      %c0_380 = arith.constant 0 : index
      %c0_381 = arith.constant 0 : index
      %743 = vector.load %arg3[%c0_380, %c0_381] : memref<8x128xf32, #tpu.memory_space<vmem>>, vector<8x128xf32>
      %c0_382 = arith.constant 0 : index
      %c0_383 = arith.constant 0 : index
      %744 = vector.load %arg15[%c0_382, %c0_383] : memref<8x128xf32, #tpu.memory_space<vmem>>, vector<8x128xf32>
      tpu.vector_store %arg15[%c0_382, %c0_383], %743 {strides = array<i32>} : memref<8x128xf32, #tpu.memory_space<vmem>>, vector<8x128xf32>,
    } else {
    }
    %c0 = arith.constant 0 : index
    %c0_1 = arith.constant 0 : index
    %c0_2 = arith.constant 0 : index
    %3 = vector.load %arg7[%c0, %c0_1, %c0_2] : memref<2x1x128xf32, #tpu.memory_space<vmem>>, vector<1x1x128xf32>
    %4 = vector.shape_cast %3 : vector<1x1x128xf32> to vector<1x128xf32>
    %c0_3 = arith.constant 0 : index
    %c0_4 = arith.constant 0 : index
    %5 = vector.load %arg5[%c0_3, %c0_4] : memref<96x256xbf16, #tpu.memory_space<vmem>>, vector<96x256xbf16>
    %c1 = arith.constant 1 : index
    %c0_5 = arith.constant 0 : index
    %c0_6 = arith.constant 0 : index
    %6 = vector.load %arg7[%c1, %c0_5, %c0_6] : memref<2x1x128xf32, #tpu.memory_space<vmem>>, vector<1x1x128xf32>
    %7 = vector.shape_cast %6 : vector<1x1x128xf32> to vector<1x128xf32>
    %c0_7 = arith.constant 0 : index
    %c0_8 = arith.constant 0 : index
    %c0_9 = arith.constant 0 : index
    %8 = vector.load %arg2[%c0_7, %c0_8, %c0_9] : memref<8x8x128xbf16, #tpu.memory_space<vmem>>, vector<1x8x128xbf16>
    %9 = vector.shape_cast %8 : vector<1x8x128xbf16> to vector<8x128xbf16>
    %10 = arith.extf %9 : vector<8x128xbf16> to vector<8x128xf32>
    %c0_10 = arith.constant 0 : index
    %c0_11 = arith.constant 0 : index
    %11 = vector.load %arg15[%c0_10, %c0_11] : memref<8x128xf32, #tpu.memory_space<vmem>>, vector<8x128xf32>
    %12 = arith.addf %10, %11 : vector<8x128xf32>
    %13 = vector.broadcast %4 : vector<1x128xf32> to vector<8x128xf32>
    %14 = arith.addf %12, %13 : vector<8x128xf32>
    %c0_12 = arith.constant 0 : index
    %c0_13 = arith.constant 0 : index
    %c0_14 = arith.constant 0 : index
    %15 = vector.load %arg14[%c0_12, %c0_13, %c0_14] : memref<2x8x32xf32, #tpu.memory_space<vmem>>, vector<1x8x32xf32>
    %16 = vector.shape_cast %15 : vector<1x8x32xf32> to vector<8x32xf32>
    %17 = vector.extract_strided_slice %14 {offsets = [0, 0], sizes = [8, 32], strides = [1, 1]} : vector<8x128xf32> to vector<8x32xf32>
    %18 = arith.negf %17 : vector<8x32xf32>
    %19 = math.exp %18 : vector<8x32xf32>
    %cst = arith.constant 1.000000e+00 : f32
    %20 = vector.broadcast %cst : f32 to vector<8x32xf32>
    %21 = arith.addf %20, %19 : vector<8x32xf32>
    %22 = arith.divf %20, %21 : vector<8x32xf32>
    %23 = vector.extract_strided_slice %14 {offsets = [0, 32], sizes = [8, 32], strides = [1, 1]} : vector<8x128xf32> to vector<8x32xf32>
    %24 = arith.negf %23 : vector<8x32xf32>
    %25 = math.exp %24 : vector<8x32xf32>
    %cst_15 = arith.constant 1.000000e+00 : f32
    %26 = vector.broadcast %cst_15 : f32 to vector<8x32xf32>
    %27 = arith.addf %26, %25 : vector<8x32xf32>
    %28 = arith.divf %26, %27 : vector<8x32xf32>
    %29 = vector.extract_strided_slice %14 {offsets = [0, 64], sizes = [8, 32], strides = [1, 1]} : vector<8x128xf32> to vector<8x32xf32>
    %30 = math.tanh %29 : vector<8x32xf32>
    %31 = vector.extract_strided_slice %14 {offsets = [0, 96], sizes = [8, 32], strides = [1, 1]} : vector<8x128xf32> to vector<8x32xf32>
    %32 = arith.negf %31 : vector<8x32xf32>
    %33 = math.exp %32 : vector<8x32xf32>
    %cst_16 = arith.constant 1.000000e+00 : f32
    %34 = vector.broadcast %cst_16 : f32 to vector<8x32xf32>
    %35 = arith.addf %34, %33 : vector<8x32xf32>
    %36 = arith.divf %34, %35 : vector<8x32xf32>
    %37 = arith.mulf %28, %16 : vector<8x32xf32>
    %38 = arith.mulf %22, %30 : vector<8x32xf32>
    %39 = arith.addf %37, %38 : vector<8x32xf32>
    %40 = math.tanh %39 : vector<8x32xf32>
    %41 = arith.mulf %36, %40 : vector<8x32xf32>
    %c0_17 = arith.constant 0 : index
    %c0_18 = arith.constant 0 : index
    %c0_19 = arith.constant 0 : index
    %42 = vector.load %arg13[%c0_17, %c0_18, %c0_19] : memref<2x8x32xf32, #tpu.memory_space<vmem>>, vector<1x8x32xf32>
    %43 = vector.shape_cast %42 : vector<1x8x32xf32> to vector<8x32xf32>
    %44 = vector.shape_cast %41 : vector<8x32xf32> to vector<1x8x32xf32>
    tpu.vector_store %arg13[%c0_17, %c0_18, %c0_19], %44 {strides = array<i32>} : memref<2x8x32xf32, #tpu.memory_space<vmem>>, vector<1x8x32xf32>,
    %c0_20 = arith.constant 0 : index
    %c0_21 = arith.constant 0 : index
    %c0_22 = arith.constant 0 : index
    %45 = vector.load %arg14[%c0_20, %c0_21, %c0_22] : memref<2x8x32xf32, #tpu.memory_space<vmem>>, vector<1x8x32xf32>
    %46 = vector.shape_cast %45 : vector<1x8x32xf32> to vector<8x32xf32>
    %47 = vector.shape_cast %39 : vector<8x32xf32> to vector<1x8x32xf32>
    tpu.vector_store %arg14[%c0_20, %c0_21, %c0_22], %47 {strides = array<i32>} : memref<2x8x32xf32, #tpu.memory_space<vmem>>, vector<1x8x32xf32>,
    %48 = arith.truncf %41 : vector<8x32xf32> to vector<8x32xbf16>
    %c0_23 = arith.constant 0 : index
    %c0_24 = arith.constant 0 : index
    %49 = vector.load %arg16[%c0_23, %c0_24] : memref<8x96xbf16, #tpu.memory_space<vmem>>, vector<8x32xbf16>
    tpu.vector_store %arg16[%c0_23, %c0_24], %48 {strides = array<i32>} : memref<8x96xbf16, #tpu.memory_space<vmem>>, vector<8x32xbf16>,
    %c1_25 = arith.constant 1 : index
    %c0_26 = arith.constant 0 : index
    %c0_27 = arith.constant 0 : index
    %50 = vector.load %arg13[%c1_25, %c0_26, %c0_27] : memref<2x8x32xf32, #tpu.memory_space<vmem>>, vector<1x8x32xf32>
    %51 = vector.shape_cast %50 : vector<1x8x32xf32> to vector<8x32xf32>
    %52 = arith.truncf %51 : vector<8x32xf32> to vector<8x32xbf16>
    %c0_28 = arith.constant 0 : index
    %c32 = arith.constant 32 : index
    %53 = vector.load %arg16[%c0_28, %c32] : memref<8x96xbf16, #tpu.memory_space<vmem>>, vector<8x32xbf16>
    tpu.vector_store %arg16[%c0_28, %c32], %52 {strides = array<i32>} : memref<8x96xbf16, #tpu.memory_space<vmem>>, vector<8x32xbf16>,
    %c0_29 = arith.constant 0 : index
    %c64 = arith.constant 64 : index
    %54 = vector.load %arg16[%c0_29, %c64] : memref<8x96xbf16, #tpu.memory_space<vmem>>, vector<8x32xbf16>
    tpu.vector_store %arg16[%c0_29, %c64], %48 {strides = array<i32>} : memref<8x96xbf16, #tpu.memory_space<vmem>>, vector<8x32xbf16>,
    %c0_30 = arith.constant 0 : index
    %c0_31 = arith.constant 0 : index
    %55 = vector.load %arg16[%c0_30, %c0_31] : memref<8x96xbf16, #tpu.memory_space<vmem>>, vector<8x96xbf16>
    %cst_32 = arith.constant dense<0.000000e+00> : vector<8x256xf32>
    %56 = tpu.matmul %55, %5, %cst_32 {dimension_numbers = #tpu.dot_dimension_numbers<[1], [0], [0], [1], [0, 0, 1, 1], [], []>} : vector<8x96xbf16>, vector<96x256xbf16>, vector<8x256xf32> -> vector<8x256xf32>
    %57 = vector.extract_strided_slice %56 {offsets = [0, 128], sizes = [8, 128], strides = [1, 1]} : vector<8x256xf32> to vector<8x128xf32>
    %c0_33 = arith.constant 0 : index
    %c0_34 = arith.constant 0 : index
    %58 = vector.load %arg15[%c0_33, %c0_34] : memref<8x128xf32, #tpu.memory_space<vmem>>, vector<8x128xf32>
    tpu.vector_store %arg15[%c0_33, %c0_34], %57 {strides = array<i32>} : memref<8x128xf32, #tpu.memory_space<vmem>>, vector<8x128xf32>,
    %59 = vector.extract_strided_slice %56 {offsets = [0, 0], sizes = [8, 128], strides = [1, 1]} : vector<8x256xf32> to vector<8x128xf32>
    %60 = vector.broadcast %7 : vector<1x128xf32> to vector<8x128xf32>
    %61 = arith.addf %59, %60 : vector<8x128xf32>
    %c1_35 = arith.constant 1 : index
    %c0_36 = arith.constant 0 : index
    %c0_37 = arith.constant 0 : index
    %62 = vector.load %arg14[%c1_35, %c0_36, %c0_37] : memref<2x8x32xf32, #tpu.memory_space<vmem>>, vector<1x8x32xf32>
    %63 = vector.shape_cast %62 : vector<1x8x32xf32> to vector<8x32xf32>
    %64 = vector.extract_strided_slice %61 {offsets = [0, 0], sizes = [8, 32], strides = [1, 1]} : vector<8x128xf32> to vector<8x32xf32>
    %65 = arith.negf %64 : vector<8x32xf32>
    %66 = math.exp %65 : vector<8x32xf32>
    %cst_38 = arith.constant 1.000000e+00 : f32
    %67 = vector.broadcast %cst_38 : f32 to vector<8x32xf32>
    %68 = arith.addf %67, %66 : vector<8x32xf32>
    %69 = arith.divf %67, %68 : vector<8x32xf32>
    %70 = vector.extract_strided_slice %61 {offsets = [0, 32], sizes = [8, 32], strides = [1, 1]} : vector<8x128xf32> to vector<8x32xf32>
    %71 = arith.negf %70 : vector<8x32xf32>
    %72 = math.exp %71 : vector<8x32xf32>
    %cst_39 = arith.constant 1.000000e+00 : f32
    %73 = vector.broadcast %cst_39 : f32 to vector<8x32xf32>
    %74 = arith.addf %73, %72 : vector<8x32xf32>
    %75 = arith.divf %73, %74 : vector<8x32xf32>
    %76 = vector.extract_strided_slice %61 {offsets = [0, 64], sizes = [8, 32], strides = [1, 1]} : vector<8x128xf32> to vector<8x32xf32>
    %77 = math.tanh %76 : vector<8x32xf32>
    %78 = vector.extract_strided_slice %61 {offsets = [0, 96], sizes = [8, 32], strides = [1, 1]} : vector<8x128xf32> to vector<8x32xf32>
    %79 = arith.negf %78 : vector<8x32xf32>
    %80 = math.exp %79 : vector<8x32xf32>
    %cst_40 = arith.constant 1.000000e+00 : f32
    %81 = vector.broadcast %cst_40 : f32 to vector<8x32xf32>
    %82 = arith.addf %81, %80 : vector<8x32xf32>
    %83 = arith.divf %81, %82 : vector<8x32xf32>
    %84 = arith.mulf %75, %63 : vector<8x32xf32>
    %85 = arith.mulf %69, %77 : vector<8x32xf32>
    %86 = arith.addf %84, %85 : vector<8x32xf32>
    %87 = math.tanh %86 : vector<8x32xf32>
    %88 = arith.mulf %83, %87 : vector<8x32xf32>
    %c1_41 = arith.constant 1 : index
    %c0_42 = arith.constant 0 : index
    %c0_43 = arith.constant 0 : index
    %89 = vector.load %arg13[%c1_41, %c0_42, %c0_43] : memref<2x8x32xf32, #tpu.memory_space<vmem>>, vector<1x8x32xf32>
    %90 = vector.shape_cast %89 : vector<1x8x32xf32> to vector<8x32xf32>
    %91 = vector.shape_cast %88 : vector<8x32xf32> to vector<1x8x32xf32>
    tpu.vector_store %arg13[%c1_41, %c0_42, %c0_43], %91 {strides = array<i32>} : memref<2x8x32xf32, #tpu.memory_space<vmem>>, vector<1x8x32xf32>,
    %c1_44 = arith.constant 1 : index
    %c0_45 = arith.constant 0 : index
    %c0_46 = arith.constant 0 : index
    %92 = vector.load %arg14[%c1_44, %c0_45, %c0_46] : memref<2x8x32xf32, #tpu.memory_space<vmem>>, vector<1x8x32xf32>
    %93 = vector.shape_cast %92 : vector<1x8x32xf32> to vector<8x32xf32>
    %94 = vector.shape_cast %86 : vector<8x32xf32> to vector<1x8x32xf32>
    tpu.vector_store %arg14[%c1_44, %c0_45, %c0_46], %94 {strides = array<i32>} : memref<2x8x32xf32, #tpu.memory_space<vmem>>, vector<1x8x32xf32>,
    %95 = arith.truncf %88 : vector<8x32xf32> to vector<8x32xbf16>
    %c0_47 = arith.constant 0 : index
    %c0_48 = arith.constant 0 : index
    %c0_49 = arith.constant 0 : index
    %96 = vector.load %arg10[%c0_47, %c0_48, %c0_49] : memref<8x8x32xbf16, #tpu.memory_space<vmem>>, vector<8x1x32xbf16>
    %97 = vector.shape_cast %96 : vector<8x1x32xbf16> to vector<8x32xbf16>
    %98 = vector.shape_cast %95 : vector<8x32xbf16> to vector<8x1x32xbf16>
    tpu.vector_store %arg10[%c0_47, %c0_48, %c0_49], %98 {strides = array<i32>} : memref<8x8x32xbf16, #tpu.memory_space<vmem>>, vector<8x1x32xbf16>,
    %c1_50 = arith.constant 1 : index
    %c0_51 = arith.constant 0 : index
    %c0_52 = arith.constant 0 : index
    %99 = vector.load %arg2[%c1_50, %c0_51, %c0_52] : memref<8x8x128xbf16, #tpu.memory_space<vmem>>, vector<1x8x128xbf16>
    %100 = vector.shape_cast %99 : vector<1x8x128xbf16> to vector<8x128xbf16>
    %101 = arith.extf %100 : vector<8x128xbf16> to vector<8x128xf32>
    %c0_53 = arith.constant 0 : index
    %c0_54 = arith.constant 0 : index
    %102 = vector.load %arg15[%c0_53, %c0_54] : memref<8x128xf32, #tpu.memory_space<vmem>>, vector<8x128xf32>
    %103 = arith.addf %101, %102 : vector<8x128xf32>
    %104 = vector.broadcast %4 : vector<1x128xf32> to vector<8x128xf32>
    %105 = arith.addf %103, %104 : vector<8x128xf32>
    %c0_55 = arith.constant 0 : index
    %c0_56 = arith.constant 0 : index
    %c0_57 = arith.constant 0 : index
    %106 = vector.load %arg14[%c0_55, %c0_56, %c0_57] : memref<2x8x32xf32, #tpu.memory_space<vmem>>, vector<1x8x32xf32>
    %107 = vector.shape_cast %106 : vector<1x8x32xf32> to vector<8x32xf32>
    %108 = vector.extract_strided_slice %105 {offsets = [0, 0], sizes = [8, 32], strides = [1, 1]} : vector<8x128xf32> to vector<8x32xf32>
    %109 = arith.negf %108 : vector<8x32xf32>
    %110 = math.exp %109 : vector<8x32xf32>
    %cst_58 = arith.constant 1.000000e+00 : f32
    %111 = vector.broadcast %cst_58 : f32 to vector<8x32xf32>
    %112 = arith.addf %111, %110 : vector<8x32xf32>
    %113 = arith.divf %111, %112 : vector<8x32xf32>
    %114 = vector.extract_strided_slice %105 {offsets = [0, 32], sizes = [8, 32], strides = [1, 1]} : vector<8x128xf32> to vector<8x32xf32>
    %115 = arith.negf %114 : vector<8x32xf32>
    %116 = math.exp %115 : vector<8x32xf32>
    %cst_59 = arith.constant 1.000000e+00 : f32
    %117 = vector.broadcast %cst_59 : f32 to vector<8x32xf32>
    %118 = arith.addf %117, %116 : vector<8x32xf32>
    %119 = arith.divf %117, %118 : vector<8x32xf32>
    %120 = vector.extract_strided_slice %105 {offsets = [0, 64], sizes = [8, 32], strides = [1, 1]} : vector<8x128xf32> to vector<8x32xf32>
    %121 = math.tanh %120 : vector<8x32xf32>
    %122 = vector.extract_strided_slice %105 {offsets = [0, 96], sizes = [8, 32], strides = [1, 1]} : vector<8x128xf32> to vector<8x32xf32>
    %123 = arith.negf %122 : vector<8x32xf32>
    %124 = math.exp %123 : vector<8x32xf32>
    %cst_60 = arith.constant 1.000000e+00 : f32
    %125 = vector.broadcast %cst_60 : f32 to vector<8x32xf32>
    %126 = arith.addf %125, %124 : vector<8x32xf32>
    %127 = arith.divf %125, %126 : vector<8x32xf32>
    %128 = arith.mulf %119, %107 : vector<8x32xf32>
    %129 = arith.mulf %113, %121 : vector<8x32xf32>
    %130 = arith.addf %128, %129 : vector<8x32xf32>
    %131 = math.tanh %130 : vector<8x32xf32>
    %132 = arith.mulf %127, %131 : vector<8x32xf32>
    %c0_61 = arith.constant 0 : index
    %c0_62 = arith.constant 0 : index
    %c0_63 = arith.constant 0 : index
    %133 = vector.load %arg13[%c0_61, %c0_62, %c0_63] : memref<2x8x32xf32, #tpu.memory_space<vmem>>, vector<1x8x32xf32>
    %134 = vector.shape_cast %133 : vector<1x8x32xf32> to vector<8x32xf32>
    %135 = vector.shape_cast %132 : vector<8x32xf32> to vector<1x8x32xf32>
    tpu.vector_store %arg13[%c0_61, %c0_62, %c0_63], %135 {strides = array<i32>} : memref<2x8x32xf32, #tpu.memory_space<vmem>>, vector<1x8x32xf32>,
    %c0_64 = arith.constant 0 : index
    %c0_65 = arith.constant 0 : index
    %c0_66 = arith.constant 0 : index
    %136 = vector.load %arg14[%c0_64, %c0_65, %c0_66] : memref<2x8x32xf32, #tpu.memory_space<vmem>>, vector<1x8x32xf32>
    %137 = vector.shape_cast %136 : vector<1x8x32xf32> to vector<8x32xf32>
    %138 = vector.shape_cast %130 : vector<8x32xf32> to vector<1x8x32xf32>
    tpu.vector_store %arg14[%c0_64, %c0_65, %c0_66], %138 {strides = array<i32>} : memref<2x8x32xf32, #tpu.memory_space<vmem>>, vector<1x8x32xf32>,
    %139 = arith.truncf %132 : vector<8x32xf32> to vector<8x32xbf16>
    %c0_67 = arith.constant 0 : index
    %c0_68 = arith.constant 0 : index
    %140 = vector.load %arg16[%c0_67, %c0_68] : memref<8x96xbf16, #tpu.memory_space<vmem>>, vector<8x32xbf16>
    tpu.vector_store %arg16[%c0_67, %c0_68], %139 {strides = array<i32>} : memref<8x96xbf16, #tpu.memory_space<vmem>>, vector<8x32xbf16>,
    %c1_69 = arith.constant 1 : index
    %c0_70 = arith.constant 0 : index
    %c0_71 = arith.constant 0 : index
    %141 = vector.load %arg13[%c1_69, %c0_70, %c0_71] : memref<2x8x32xf32, #tpu.memory_space<vmem>>, vector<1x8x32xf32>
    %142 = vector.shape_cast %141 : vector<1x8x32xf32> to vector<8x32xf32>
    %143 = arith.truncf %142 : vector<8x32xf32> to vector<8x32xbf16>
    %c0_72 = arith.constant 0 : index
    %c32_73 = arith.constant 32 : index
    %144 = vector.load %arg16[%c0_72, %c32_73] : memref<8x96xbf16, #tpu.memory_space<vmem>>, vector<8x32xbf16>
    tpu.vector_store %arg16[%c0_72, %c32_73], %143 {strides = array<i32>} : memref<8x96xbf16, #tpu.memory_space<vmem>>, vector<8x32xbf16>,
    %c0_74 = arith.constant 0 : index
    %c64_75 = arith.constant 64 : index
    %145 = vector.load %arg16[%c0_74, %c64_75] : memref<8x96xbf16, #tpu.memory_space<vmem>>, vector<8x32xbf16>
    tpu.vector_store %arg16[%c0_74, %c64_75], %139 {strides = array<i32>} : memref<8x96xbf16, #tpu.memory_space<vmem>>, vector<8x32xbf16>,
    %c0_76 = arith.constant 0 : index
    %c0_77 = arith.constant 0 : index
    %146 = vector.load %arg16[%c0_76, %c0_77] : memref<8x96xbf16, #tpu.memory_space<vmem>>, vector<8x96xbf16>
    %cst_78 = arith.constant dense<0.000000e+00> : vector<8x256xf32>
    %147 = tpu.matmul %146, %5, %cst_78 {dimension_numbers = #tpu.dot_dimension_numbers<[1], [0], [0], [1], [0, 0, 1, 1], [], []>} : vector<8x96xbf16>, vector<96x256xbf16>, vector<8x256xf32> -> vector<8x256xf32>
    %148 = vector.extract_strided_slice %147 {offsets = [0, 128], sizes = [8, 128], strides = [1, 1]} : vector<8x256xf32> to vector<8x128xf32>
    %c0_79 = arith.constant 0 : index
    %c0_80 = arith.constant 0 : index
    %149 = vector.load %arg15[%c0_79, %c0_80] : memref<8x128xf32, #tpu.memory_space<vmem>>, vector<8x128xf32>
    tpu.vector_store %arg15[%c0_79, %c0_80], %148 {strides = array<i32>} : memref<8x128xf32, #tpu.memory_space<vmem>>, vector<8x128xf32>,
    %150 = vector.extract_strided_slice %147 {offsets = [0, 0], sizes = [8, 128], strides = [1, 1]} : vector<8x256xf32> to vector<8x128xf32>
    %151 = vector.broadcast %7 : vector<1x128xf32> to vector<8x128xf32>
    %152 = arith.addf %150, %151 : vector<8x128xf32>
    %c1_81 = arith.constant 1 : index
    %c0_82 = arith.constant 0 : index
    %c0_83 = arith.constant 0 : index
    %153 = vector.load %arg14[%c1_81, %c0_82, %c0_83] : memref<2x8x32xf32, #tpu.memory_space<vmem>>, vector<1x8x32xf32>
    %154 = vector.shape_cast %153 : vector<1x8x32xf32> to vector<8x32xf32>
    %155 = vector.extract_strided_slice %152 {offsets = [0, 0], sizes = [8, 32], strides = [1, 1]} : vector<8x128xf32> to vector<8x32xf32>
    %156 = arith.negf %155 : vector<8x32xf32>
    %157 = math.exp %156 : vector<8x32xf32>
    %cst_84 = arith.constant 1.000000e+00 : f32
    %158 = vector.broadcast %cst_84 : f32 to vector<8x32xf32>
    %159 = arith.addf %158, %157 : vector<8x32xf32>
    %160 = arith.divf %158, %159 : vector<8x32xf32>
    %161 = vector.extract_strided_slice %152 {offsets = [0, 32], sizes = [8, 32], strides = [1, 1]} : vector<8x128xf32> to vector<8x32xf32>
    %162 = arith.negf %161 : vector<8x32xf32>
    %163 = math.exp %162 : vector<8x32xf32>
    %cst_85 = arith.constant 1.000000e+00 : f32
    %164 = vector.broadcast %cst_85 : f32 to vector<8x32xf32>
    %165 = arith.addf %164, %163 : vector<8x32xf32>
    %166 = arith.divf %164, %165 : vector<8x32xf32>
    %167 = vector.extract_strided_slice %152 {offsets = [0, 64], sizes = [8, 32], strides = [1, 1]} : vector<8x128xf32> to vector<8x32xf32>
    %168 = math.tanh %167 : vector<8x32xf32>
    %169 = vector.extract_strided_slice %152 {offsets = [0, 96], sizes = [8, 32], strides = [1, 1]} : vector<8x128xf32> to vector<8x32xf32>
    %170 = arith.negf %169 : vector<8x32xf32>
    %171 = math.exp %170 : vector<8x32xf32>
    %cst_86 = arith.constant 1.000000e+00 : f32
    %172 = vector.broadcast %cst_86 : f32 to vector<8x32xf32>
    %173 = arith.addf %172, %171 : vector<8x32xf32>
    %174 = arith.divf %172, %173 : vector<8x32xf32>
    %175 = arith.mulf %166, %154 : vector<8x32xf32>
    %176 = arith.mulf %160, %168 : vector<8x32xf32>
    %177 = arith.addf %175, %176 : vector<8x32xf32>
    %178 = math.tanh %177 : vector<8x32xf32>
    %179 = arith.mulf %174, %178 : vector<8x32xf32>
    %c1_87 = arith.constant 1 : index
    %c0_88 = arith.constant 0 : index
    %c0_89 = arith.constant 0 : index
    %180 = vector.load %arg13[%c1_87, %c0_88, %c0_89] : memref<2x8x32xf32, #tpu.memory_space<vmem>>, vector<1x8x32xf32>
    %181 = vector.shape_cast %180 : vector<1x8x32xf32> to vector<8x32xf32>
    %182 = vector.shape_cast %179 : vector<8x32xf32> to vector<1x8x32xf32>
    tpu.vector_store %arg13[%c1_87, %c0_88, %c0_89], %182 {strides = array<i32>} : memref<2x8x32xf32, #tpu.memory_space<vmem>>, vector<1x8x32xf32>,
    %c1_90 = arith.constant 1 : index
    %c0_91 = arith.constant 0 : index
    %c0_92 = arith.constant 0 : index
    %183 = vector.load %arg14[%c1_90, %c0_91, %c0_92] : memref<2x8x32xf32, #tpu.memory_space<vmem>>, vector<1x8x32xf32>
    %184 = vector.shape_cast %183 : vector<1x8x32xf32> to vector<8x32xf32>
    %185 = vector.shape_cast %177 : vector<8x32xf32> to vector<1x8x32xf32>
    tpu.vector_store %arg14[%c1_90, %c0_91, %c0_92], %185 {strides = array<i32>} : memref<2x8x32xf32, #tpu.memory_space<vmem>>, vector<1x8x32xf32>,
    %186 = arith.truncf %179 : vector<8x32xf32> to vector<8x32xbf16>
    %c0_93 = arith.constant 0 : index
    %c1_94 = arith.constant 1 : index
    %c0_95 = arith.constant 0 : index
    %187 = vector.load %arg10[%c0_93, %c1_94, %c0_95] : memref<8x8x32xbf16, #tpu.memory_space<vmem>>, vector<8x1x32xbf16>
    %188 = vector.shape_cast %187 : vector<8x1x32xbf16> to vector<8x32xbf16>
    %189 = vector.shape_cast %186 : vector<8x32xbf16> to vector<8x1x32xbf16>
    tpu.vector_store %arg10[%c0_93, %c1_94, %c0_95], %189 {strides = array<i32>} : memref<8x8x32xbf16, #tpu.memory_space<vmem>>, vector<8x1x32xbf16>,
    %c2 = arith.constant 2 : index
    %c0_96 = arith.constant 0 : index
    %c0_97 = arith.constant 0 : index
    %190 = vector.load %arg2[%c2, %c0_96, %c0_97] : memref<8x8x128xbf16, #tpu.memory_space<vmem>>, vector<1x8x128xbf16>
    %191 = vector.shape_cast %190 : vector<1x8x128xbf16> to vector<8x128xbf16>
    %192 = arith.extf %191 : vector<8x128xbf16> to vector<8x128xf32>
    %c0_98 = arith.constant 0 : index
    %c0_99 = arith.constant 0 : index
    %193 = vector.load %arg15[%c0_98, %c0_99] : memref<8x128xf32, #tpu.memory_space<vmem>>, vector<8x128xf32>
    %194 = arith.addf %192, %193 : vector<8x128xf32>
    %195 = vector.broadcast %4 : vector<1x128xf32> to vector<8x128xf32>
    %196 = arith.addf %194, %195 : vector<8x128xf32>
    %c0_100 = arith.constant 0 : index
    %c0_101 = arith.constant 0 : index
    %c0_102 = arith.constant 0 : index
    %197 = vector.load %arg14[%c0_100, %c0_101, %c0_102] : memref<2x8x32xf32, #tpu.memory_space<vmem>>, vector<1x8x32xf32>
    %198 = vector.shape_cast %197 : vector<1x8x32xf32> to vector<8x32xf32>
    %199 = vector.extract_strided_slice %196 {offsets = [0, 0], sizes = [8, 32], strides = [1, 1]} : vector<8x128xf32> to vector<8x32xf32>
    %200 = arith.negf %199 : vector<8x32xf32>
    %201 = math.exp %200 : vector<8x32xf32>
    %cst_103 = arith.constant 1.000000e+00 : f32
    %202 = vector.broadcast %cst_103 : f32 to vector<8x32xf32>
    %203 = arith.addf %202, %201 : vector<8x32xf32>
    %204 = arith.divf %202, %203 : vector<8x32xf32>
    %205 = vector.extract_strided_slice %196 {offsets = [0, 32], sizes = [8, 32], strides = [1, 1]} : vector<8x128xf32> to vector<8x32xf32>
    %206 = arith.negf %205 : vector<8x32xf32>
    %207 = math.exp %206 : vector<8x32xf32>
    %cst_104 = arith.constant 1.000000e+00 : f32
    %208 = vector.broadcast %cst_104 : f32 to vector<8x32xf32>
    %209 = arith.addf %208, %207 : vector<8x32xf32>
    %210 = arith.divf %208, %209 : vector<8x32xf32>
    %211 = vector.extract_strided_slice %196 {offsets = [0, 64], sizes = [8, 32], strides = [1, 1]} : vector<8x128xf32> to vector<8x32xf32>
    %212 = math.tanh %211 : vector<8x32xf32>
    %213 = vector.extract_strided_slice %196 {offsets = [0, 96], sizes = [8, 32], strides = [1, 1]} : vector<8x128xf32> to vector<8x32xf32>
    %214 = arith.negf %213 : vector<8x32xf32>
    %215 = math.exp %214 : vector<8x32xf32>
    %cst_105 = arith.constant 1.000000e+00 : f32
    %216 = vector.broadcast %cst_105 : f32 to vector<8x32xf32>
    %217 = arith.addf %216, %215 : vector<8x32xf32>
    %218 = arith.divf %216, %217 : vector<8x32xf32>
    %219 = arith.mulf %210, %198 : vector<8x32xf32>
    %220 = arith.mulf %204, %212 : vector<8x32xf32>
    %221 = arith.addf %219, %220 : vector<8x32xf32>
    %222 = math.tanh %221 : vector<8x32xf32>
    %223 = arith.mulf %218, %222 : vector<8x32xf32>
    %c0_106 = arith.constant 0 : index
    %c0_107 = arith.constant 0 : index
    %c0_108 = arith.constant 0 : index
    %224 = vector.load %arg13[%c0_106, %c0_107, %c0_108] : memref<2x8x32xf32, #tpu.memory_space<vmem>>, vector<1x8x32xf32>
    %225 = vector.shape_cast %224 : vector<1x8x32xf32> to vector<8x32xf32>
    %226 = vector.shape_cast %223 : vector<8x32xf32> to vector<1x8x32xf32>
    tpu.vector_store %arg13[%c0_106, %c0_107, %c0_108], %226 {strides = array<i32>} : memref<2x8x32xf32, #tpu.memory_space<vmem>>, vector<1x8x32xf32>,
    %c0_109 = arith.constant 0 : index
    %c0_110 = arith.constant 0 : index
    %c0_111 = arith.constant 0 : index
    %227 = vector.load %arg14[%c0_109, %c0_110, %c0_111] : memref<2x8x32xf32, #tpu.memory_space<vmem>>, vector<1x8x32xf32>
    %228 = vector.shape_cast %227 : vector<1x8x32xf32> to vector<8x32xf32>
    %229 = vector.shape_cast %221 : vector<8x32xf32> to vector<1x8x32xf32>
    tpu.vector_store %arg14[%c0_109, %c0_110, %c0_111], %229 {strides = array<i32>} : memref<2x8x32xf32, #tpu.memory_space<vmem>>, vector<1x8x32xf32>,
    %230 = arith.truncf %223 : vector<8x32xf32> to vector<8x32xbf16>
    %c0_112 = arith.constant 0 : index
    %c0_113 = arith.constant 0 : index
    %231 = vector.load %arg16[%c0_112, %c0_113] : memref<8x96xbf16, #tpu.memory_space<vmem>>, vector<8x32xbf16>
    tpu.vector_store %arg16[%c0_112, %c0_113], %230 {strides = array<i32>} : memref<8x96xbf16, #tpu.memory_space<vmem>>, vector<8x32xbf16>,
    %c1_114 = arith.constant 1 : index
    %c0_115 = arith.constant 0 : index
    %c0_116 = arith.constant 0 : index
    %232 = vector.load %arg13[%c1_114, %c0_115, %c0_116] : memref<2x8x32xf32, #tpu.memory_space<vmem>>, vector<1x8x32xf32>
    %233 = vector.shape_cast %232 : vector<1x8x32xf32> to vector<8x32xf32>
    %234 = arith.truncf %233 : vector<8x32xf32> to vector<8x32xbf16>
    %c0_117 = arith.constant 0 : index
    %c32_118 = arith.constant 32 : index
    %235 = vector.load %arg16[%c0_117, %c32_118] : memref<8x96xbf16, #tpu.memory_space<vmem>>, vector<8x32xbf16>
    tpu.vector_store %arg16[%c0_117, %c32_118], %234 {strides = array<i32>} : memref<8x96xbf16, #tpu.memory_space<vmem>>, vector<8x32xbf16>,
    %c0_119 = arith.constant 0 : index
    %c64_120 = arith.constant 64 : index
    %236 = vector.load %arg16[%c0_119, %c64_120] : memref<8x96xbf16, #tpu.memory_space<vmem>>, vector<8x32xbf16>
    tpu.vector_store %arg16[%c0_119, %c64_120], %230 {strides = array<i32>} : memref<8x96xbf16, #tpu.memory_space<vmem>>, vector<8x32xbf16>,
    %c0_121 = arith.constant 0 : index
    %c0_122 = arith.constant 0 : index
    %237 = vector.load %arg16[%c0_121, %c0_122] : memref<8x96xbf16, #tpu.memory_space<vmem>>, vector<8x96xbf16>
    %cst_123 = arith.constant dense<0.000000e+00> : vector<8x256xf32>
    %238 = tpu.matmul %237, %5, %cst_123 {dimension_numbers = #tpu.dot_dimension_numbers<[1], [0], [0], [1], [0, 0, 1, 1], [], []>} : vector<8x96xbf16>, vector<96x256xbf16>, vector<8x256xf32> -> vector<8x256xf32>
    %239 = vector.extract_strided_slice %238 {offsets = [0, 128], sizes = [8, 128], strides = [1, 1]} : vector<8x256xf32> to vector<8x128xf32>
    %c0_124 = arith.constant 0 : index
    %c0_125 = arith.constant 0 : index
    %240 = vector.load %arg15[%c0_124, %c0_125] : memref<8x128xf32, #tpu.memory_space<vmem>>, vector<8x128xf32>
    tpu.vector_store %arg15[%c0_124, %c0_125], %239 {strides = array<i32>} : memref<8x128xf32, #tpu.memory_space<vmem>>, vector<8x128xf32>,
    %241 = vector.extract_strided_slice %238 {offsets = [0, 0], sizes = [8, 128], strides = [1, 1]} : vector<8x256xf32> to vector<8x128xf32>
    %242 = vector.broadcast %7 : vector<1x128xf32> to vector<8x128xf32>
    %243 = arith.addf %241, %242 : vector<8x128xf32>
    %c1_126 = arith.constant 1 : index
    %c0_127 = arith.constant 0 : index
    %c0_128 = arith.constant 0 : index
    %244 = vector.load %arg14[%c1_126, %c0_127, %c0_128] : memref<2x8x32xf32, #tpu.memory_space<vmem>>, vector<1x8x32xf32>
    %245 = vector.shape_cast %244 : vector<1x8x32xf32> to vector<8x32xf32>
    %246 = vector.extract_strided_slice %243 {offsets = [0, 0], sizes = [8, 32], strides = [1, 1]} : vector<8x128xf32> to vector<8x32xf32>
    %247 = arith.negf %246 : vector<8x32xf32>
    %248 = math.exp %247 : vector<8x32xf32>
    %cst_129 = arith.constant 1.000000e+00 : f32
    %249 = vector.broadcast %cst_129 : f32 to vector<8x32xf32>
    %250 = arith.addf %249, %248 : vector<8x32xf32>
    %251 = arith.divf %249, %250 : vector<8x32xf32>
    %252 = vector.extract_strided_slice %243 {offsets = [0, 32], sizes = [8, 32], strides = [1, 1]} : vector<8x128xf32> to vector<8x32xf32>
    %253 = arith.negf %252 : vector<8x32xf32>
    %254 = math.exp %253 : vector<8x32xf32>
    %cst_130 = arith.constant 1.000000e+00 : f32
    %255 = vector.broadcast %cst_130 : f32 to vector<8x32xf32>
    %256 = arith.addf %255, %254 : vector<8x32xf32>
    %257 = arith.divf %255, %256 : vector<8x32xf32>
    %258 = vector.extract_strided_slice %243 {offsets = [0, 64], sizes = [8, 32], strides = [1, 1]} : vector<8x128xf32> to vector<8x32xf32>
    %259 = math.tanh %258 : vector<8x32xf32>
    %260 = vector.extract_strided_slice %243 {offsets = [0, 96], sizes = [8, 32], strides = [1, 1]} : vector<8x128xf32> to vector<8x32xf32>
    %261 = arith.negf %260 : vector<8x32xf32>
    %262 = math.exp %261 : vector<8x32xf32>
    %cst_131 = arith.constant 1.000000e+00 : f32
    %263 = vector.broadcast %cst_131 : f32 to vector<8x32xf32>
    %264 = arith.addf %263, %262 : vector<8x32xf32>
    %265 = arith.divf %263, %264 : vector<8x32xf32>
    %266 = arith.mulf %257, %245 : vector<8x32xf32>
    %267 = arith.mulf %251, %259 : vector<8x32xf32>
    %268 = arith.addf %266, %267 : vector<8x32xf32>
    %269 = math.tanh %268 : vector<8x32xf32>
    %270 = arith.mulf %265, %269 : vector<8x32xf32>
    %c1_132 = arith.constant 1 : index
    %c0_133 = arith.constant 0 : index
    %c0_134 = arith.constant 0 : index
    %271 = vector.load %arg13[%c1_132, %c0_133, %c0_134] : memref<2x8x32xf32, #tpu.memory_space<vmem>>, vector<1x8x32xf32>
    %272 = vector.shape_cast %271 : vector<1x8x32xf32> to vector<8x32xf32>
    %273 = vector.shape_cast %270 : vector<8x32xf32> to vector<1x8x32xf32>
    tpu.vector_store %arg13[%c1_132, %c0_133, %c0_134], %273 {strides = array<i32>} : memref<2x8x32xf32, #tpu.memory_space<vmem>>, vector<1x8x32xf32>,
    %c1_135 = arith.constant 1 : index
    %c0_136 = arith.constant 0 : index
    %c0_137 = arith.constant 0 : index
    %274 = vector.load %arg14[%c1_135, %c0_136, %c0_137] : memref<2x8x32xf32, #tpu.memory_space<vmem>>, vector<1x8x32xf32>
    %275 = vector.shape_cast %274 : vector<1x8x32xf32> to vector<8x32xf32>
    %276 = vector.shape_cast %268 : vector<8x32xf32> to vector<1x8x32xf32>
    tpu.vector_store %arg14[%c1_135, %c0_136, %c0_137], %276 {strides = array<i32>} : memref<2x8x32xf32, #tpu.memory_space<vmem>>, vector<1x8x32xf32>,
    %277 = arith.truncf %270 : vector<8x32xf32> to vector<8x32xbf16>
    %c0_138 = arith.constant 0 : index
    %c2_139 = arith.constant 2 : index
    %c0_140 = arith.constant 0 : index
    %278 = vector.load %arg10[%c0_138, %c2_139, %c0_140] : memref<8x8x32xbf16, #tpu.memory_space<vmem>>, vector<8x1x32xbf16>
    %279 = vector.shape_cast %278 : vector<8x1x32xbf16> to vector<8x32xbf16>
    %280 = vector.shape_cast %277 : vector<8x32xbf16> to vector<8x1x32xbf16>
    tpu.vector_store %arg10[%c0_138, %c2_139, %c0_140], %280 {strides = array<i32>} : memref<8x8x32xbf16, #tpu.memory_space<vmem>>, vector<8x1x32xbf16>,
    %c3 = arith.constant 3 : index
    %c0_141 = arith.constant 0 : index
    %c0_142 = arith.constant 0 : index
    %281 = vector.load %arg2[%c3, %c0_141, %c0_142] : memref<8x8x128xbf16, #tpu.memory_space<vmem>>, vector<1x8x128xbf16>
    %282 = vector.shape_cast %281 : vector<1x8x128xbf16> to vector<8x128xbf16>
    %283 = arith.extf %282 : vector<8x128xbf16> to vector<8x128xf32>
    %c0_143 = arith.constant 0 : index
    %c0_144 = arith.constant 0 : index
    %284 = vector.load %arg15[%c0_143, %c0_144] : memref<8x128xf32, #tpu.memory_space<vmem>>, vector<8x128xf32>
    %285 = arith.addf %283, %284 : vector<8x128xf32>
    %286 = vector.broadcast %4 : vector<1x128xf32> to vector<8x128xf32>
    %287 = arith.addf %285, %286 : vector<8x128xf32>
    %c0_145 = arith.constant 0 : index
    %c0_146 = arith.constant 0 : index
    %c0_147 = arith.constant 0 : index
    %288 = vector.load %arg14[%c0_145, %c0_146, %c0_147] : memref<2x8x32xf32, #tpu.memory_space<vmem>>, vector<1x8x32xf32>
    %289 = vector.shape_cast %288 : vector<1x8x32xf32> to vector<8x32xf32>
    %290 = vector.extract_strided_slice %287 {offsets = [0, 0], sizes = [8, 32], strides = [1, 1]} : vector<8x128xf32> to vector<8x32xf32>
    %291 = arith.negf %290 : vector<8x32xf32>
    %292 = math.exp %291 : vector<8x32xf32>
    %cst_148 = arith.constant 1.000000e+00 : f32
    %293 = vector.broadcast %cst_148 : f32 to vector<8x32xf32>
    %294 = arith.addf %293, %292 : vector<8x32xf32>
    %295 = arith.divf %293, %294 : vector<8x32xf32>
    %296 = vector.extract_strided_slice %287 {offsets = [0, 32], sizes = [8, 32], strides = [1, 1]} : vector<8x128xf32> to vector<8x32xf32>
    %297 = arith.negf %296 : vector<8x32xf32>
    %298 = math.exp %297 : vector<8x32xf32>
    %cst_149 = arith.constant 1.000000e+00 : f32
    %299 = vector.broadcast %cst_149 : f32 to vector<8x32xf32>
    %300 = arith.addf %299, %298 : vector<8x32xf32>
    %301 = arith.divf %299, %300 : vector<8x32xf32>
    %302 = vector.extract_strided_slice %287 {offsets = [0, 64], sizes = [8, 32], strides = [1, 1]} : vector<8x128xf32> to vector<8x32xf32>
    %303 = math.tanh %302 : vector<8x32xf32>
    %304 = vector.extract_strided_slice %287 {offsets = [0, 96], sizes = [8, 32], strides = [1, 1]} : vector<8x128xf32> to vector<8x32xf32>
    %305 = arith.negf %304 : vector<8x32xf32>
    %306 = math.exp %305 : vector<8x32xf32>
    %cst_150 = arith.constant 1.000000e+00 : f32
    %307 = vector.broadcast %cst_150 : f32 to vector<8x32xf32>
    %308 = arith.addf %307, %306 : vector<8x32xf32>
    %309 = arith.divf %307, %308 : vector<8x32xf32>
    %310 = arith.mulf %301, %289 : vector<8x32xf32>
    %311 = arith.mulf %295, %303 : vector<8x32xf32>
    %312 = arith.addf %310, %311 : vector<8x32xf32>
    %313 = math.tanh %312 : vector<8x32xf32>
    %314 = arith.mulf %309, %313 : vector<8x32xf32>
    %c0_151 = arith.constant 0 : index
    %c0_152 = arith.constant 0 : index
    %c0_153 = arith.constant 0 : index
    %315 = vector.load %arg13[%c0_151, %c0_152, %c0_153] : memref<2x8x32xf32, #tpu.memory_space<vmem>>, vector<1x8x32xf32>
    %316 = vector.shape_cast %315 : vector<1x8x32xf32> to vector<8x32xf32>
    %317 = vector.shape_cast %314 : vector<8x32xf32> to vector<1x8x32xf32>
    tpu.vector_store %arg13[%c0_151, %c0_152, %c0_153], %317 {strides = array<i32>} : memref<2x8x32xf32, #tpu.memory_space<vmem>>, vector<1x8x32xf32>,
    %c0_154 = arith.constant 0 : index
    %c0_155 = arith.constant 0 : index
    %c0_156 = arith.constant 0 : index
    %318 = vector.load %arg14[%c0_154, %c0_155, %c0_156] : memref<2x8x32xf32, #tpu.memory_space<vmem>>, vector<1x8x32xf32>
    %319 = vector.shape_cast %318 : vector<1x8x32xf32> to vector<8x32xf32>
    %320 = vector.shape_cast %312 : vector<8x32xf32> to vector<1x8x32xf32>
    tpu.vector_store %arg14[%c0_154, %c0_155, %c0_156], %320 {strides = array<i32>} : memref<2x8x32xf32, #tpu.memory_space<vmem>>, vector<1x8x32xf32>,
    %321 = arith.truncf %314 : vector<8x32xf32> to vector<8x32xbf16>
    %c0_157 = arith.constant 0 : index
    %c0_158 = arith.constant 0 : index
    %322 = vector.load %arg16[%c0_157, %c0_158] : memref<8x96xbf16, #tpu.memory_space<vmem>>, vector<8x32xbf16>
    tpu.vector_store %arg16[%c0_157, %c0_158], %321 {strides = array<i32>} : memref<8x96xbf16, #tpu.memory_space<vmem>>, vector<8x32xbf16>,
    %c1_159 = arith.constant 1 : index
    %c0_160 = arith.constant 0 : index
    %c0_161 = arith.constant 0 : index
    %323 = vector.load %arg13[%c1_159, %c0_160, %c0_161] : memref<2x8x32xf32, #tpu.memory_space<vmem>>, vector<1x8x32xf32>
    %324 = vector.shape_cast %323 : vector<1x8x32xf32> to vector<8x32xf32>
    %325 = arith.truncf %324 : vector<8x32xf32> to vector<8x32xbf16>
    %c0_162 = arith.constant 0 : index
    %c32_163 = arith.constant 32 : index
    %326 = vector.load %arg16[%c0_162, %c32_163] : memref<8x96xbf16, #tpu.memory_space<vmem>>, vector<8x32xbf16>
    tpu.vector_store %arg16[%c0_162, %c32_163], %325 {strides = array<i32>} : memref<8x96xbf16, #tpu.memory_space<vmem>>, vector<8x32xbf16>,
    %c0_164 = arith.constant 0 : index
    %c64_165 = arith.constant 64 : index
    %327 = vector.load %arg16[%c0_164, %c64_165] : memref<8x96xbf16, #tpu.memory_space<vmem>>, vector<8x32xbf16>
    tpu.vector_store %arg16[%c0_164, %c64_165], %321 {strides = array<i32>} : memref<8x96xbf16, #tpu.memory_space<vmem>>, vector<8x32xbf16>,
    %c0_166 = arith.constant 0 : index
    %c0_167 = arith.constant 0 : index
    %328 = vector.load %arg16[%c0_166, %c0_167] : memref<8x96xbf16, #tpu.memory_space<vmem>>, vector<8x96xbf16>
    %cst_168 = arith.constant dense<0.000000e+00> : vector<8x256xf32>
    %329 = tpu.matmul %328, %5, %cst_168 {dimension_numbers = #tpu.dot_dimension_numbers<[1], [0], [0], [1], [0, 0, 1, 1], [], []>} : vector<8x96xbf16>, vector<96x256xbf16>, vector<8x256xf32> -> vector<8x256xf32>
    %330 = vector.extract_strided_slice %329 {offsets = [0, 128], sizes = [8, 128], strides = [1, 1]} : vector<8x256xf32> to vector<8x128xf32>
    %c0_169 = arith.constant 0 : index
    %c0_170 = arith.constant 0 : index
    %331 = vector.load %arg15[%c0_169, %c0_170] : memref<8x128xf32, #tpu.memory_space<vmem>>, vector<8x128xf32>
    tpu.vector_store %arg15[%c0_169, %c0_170], %330 {strides = array<i32>} : memref<8x128xf32, #tpu.memory_space<vmem>>, vector<8x128xf32>,
    %332 = vector.extract_strided_slice %329 {offsets = [0, 0], sizes = [8, 128], strides = [1, 1]} : vector<8x256xf32> to vector<8x128xf32>
    %333 = vector.broadcast %7 : vector<1x128xf32> to vector<8x128xf32>
    %334 = arith.addf %332, %333 : vector<8x128xf32>
    %c1_171 = arith.constant 1 : index
    %c0_172 = arith.constant 0 : index
    %c0_173 = arith.constant 0 : index
    %335 = vector.load %arg14[%c1_171, %c0_172, %c0_173] : memref<2x8x32xf32, #tpu.memory_space<vmem>>, vector<1x8x32xf32>
    %336 = vector.shape_cast %335 : vector<1x8x32xf32> to vector<8x32xf32>
    %337 = vector.extract_strided_slice %334 {offsets = [0, 0], sizes = [8, 32], strides = [1, 1]} : vector<8x128xf32> to vector<8x32xf32>
    %338 = arith.negf %337 : vector<8x32xf32>
    %339 = math.exp %338 : vector<8x32xf32>
    %cst_174 = arith.constant 1.000000e+00 : f32
    %340 = vector.broadcast %cst_174 : f32 to vector<8x32xf32>
    %341 = arith.addf %340, %339 : vector<8x32xf32>
    %342 = arith.divf %340, %341 : vector<8x32xf32>
    %343 = vector.extract_strided_slice %334 {offsets = [0, 32], sizes = [8, 32], strides = [1, 1]} : vector<8x128xf32> to vector<8x32xf32>
    %344 = arith.negf %343 : vector<8x32xf32>
    %345 = math.exp %344 : vector<8x32xf32>
    %cst_175 = arith.constant 1.000000e+00 : f32
    %346 = vector.broadcast %cst_175 : f32 to vector<8x32xf32>
    %347 = arith.addf %346, %345 : vector<8x32xf32>
    %348 = arith.divf %346, %347 : vector<8x32xf32>
    %349 = vector.extract_strided_slice %334 {offsets = [0, 64], sizes = [8, 32], strides = [1, 1]} : vector<8x128xf32> to vector<8x32xf32>
    %350 = math.tanh %349 : vector<8x32xf32>
    %351 = vector.extract_strided_slice %334 {offsets = [0, 96], sizes = [8, 32], strides = [1, 1]} : vector<8x128xf32> to vector<8x32xf32>
    %352 = arith.negf %351 : vector<8x32xf32>
    %353 = math.exp %352 : vector<8x32xf32>
    %cst_176 = arith.constant 1.000000e+00 : f32
    %354 = vector.broadcast %cst_176 : f32 to vector<8x32xf32>
    %355 = arith.addf %354, %353 : vector<8x32xf32>
    %356 = arith.divf %354, %355 : vector<8x32xf32>
    %357 = arith.mulf %348, %336 : vector<8x32xf32>
    %358 = arith.mulf %342, %350 : vector<8x32xf32>
    %359 = arith.addf %357, %358 : vector<8x32xf32>
    %360 = math.tanh %359 : vector<8x32xf32>
    %361 = arith.mulf %356, %360 : vector<8x32xf32>
    %c1_177 = arith.constant 1 : index
    %c0_178 = arith.constant 0 : index
    %c0_179 = arith.constant 0 : index
    %362 = vector.load %arg13[%c1_177, %c0_178, %c0_179] : memref<2x8x32xf32, #tpu.memory_space<vmem>>, vector<1x8x32xf32>
    %363 = vector.shape_cast %362 : vector<1x8x32xf32> to vector<8x32xf32>
    %364 = vector.shape_cast %361 : vector<8x32xf32> to vector<1x8x32xf32>
    tpu.vector_store %arg13[%c1_177, %c0_178, %c0_179], %364 {strides = array<i32>} : memref<2x8x32xf32, #tpu.memory_space<vmem>>, vector<1x8x32xf32>,
    %c1_180 = arith.constant 1 : index
    %c0_181 = arith.constant 0 : index
    %c0_182 = arith.constant 0 : index
    %365 = vector.load %arg14[%c1_180, %c0_181, %c0_182] : memref<2x8x32xf32, #tpu.memory_space<vmem>>, vector<1x8x32xf32>
    %366 = vector.shape_cast %365 : vector<1x8x32xf32> to vector<8x32xf32>
    %367 = vector.shape_cast %359 : vector<8x32xf32> to vector<1x8x32xf32>
    tpu.vector_store %arg14[%c1_180, %c0_181, %c0_182], %367 {strides = array<i32>} : memref<2x8x32xf32, #tpu.memory_space<vmem>>, vector<1x8x32xf32>,
    %368 = arith.truncf %361 : vector<8x32xf32> to vector<8x32xbf16>
    %c0_183 = arith.constant 0 : index
    %c3_184 = arith.constant 3 : index
    %c0_185 = arith.constant 0 : index
    %369 = vector.load %arg10[%c0_183, %c3_184, %c0_185] : memref<8x8x32xbf16, #tpu.memory_space<vmem>>, vector<8x1x32xbf16>
    %370 = vector.shape_cast %369 : vector<8x1x32xbf16> to vector<8x32xbf16>
    %371 = vector.shape_cast %368 : vector<8x32xbf16> to vector<8x1x32xbf16>
    tpu.vector_store %arg10[%c0_183, %c3_184, %c0_185], %371 {strides = array<i32>} : memref<8x8x32xbf16, #tpu.memory_space<vmem>>, vector<8x1x32xbf16>,
    %c4 = arith.constant 4 : index
    %c0_186 = arith.constant 0 : index
    %c0_187 = arith.constant 0 : index
    %372 = vector.load %arg2[%c4, %c0_186, %c0_187] : memref<8x8x128xbf16, #tpu.memory_space<vmem>>, vector<1x8x128xbf16>
    %373 = vector.shape_cast %372 : vector<1x8x128xbf16> to vector<8x128xbf16>
    %374 = arith.extf %373 : vector<8x128xbf16> to vector<8x128xf32>
    %c0_188 = arith.constant 0 : index
    %c0_189 = arith.constant 0 : index
    %375 = vector.load %arg15[%c0_188, %c0_189] : memref<8x128xf32, #tpu.memory_space<vmem>>, vector<8x128xf32>
    %376 = arith.addf %374, %375 : vector<8x128xf32>
    %377 = vector.broadcast %4 : vector<1x128xf32> to vector<8x128xf32>
    %378 = arith.addf %376, %377 : vector<8x128xf32>
    %c0_190 = arith.constant 0 : index
    %c0_191 = arith.constant 0 : index
    %c0_192 = arith.constant 0 : index
    %379 = vector.load %arg14[%c0_190, %c0_191, %c0_192] : memref<2x8x32xf32, #tpu.memory_space<vmem>>, vector<1x8x32xf32>
    %380 = vector.shape_cast %379 : vector<1x8x32xf32> to vector<8x32xf32>
    %381 = vector.extract_strided_slice %378 {offsets = [0, 0], sizes = [8, 32], strides = [1, 1]} : vector<8x128xf32> to vector<8x32xf32>
    %382 = arith.negf %381 : vector<8x32xf32>
    %383 = math.exp %382 : vector<8x32xf32>
    %cst_193 = arith.constant 1.000000e+00 : f32
    %384 = vector.broadcast %cst_193 : f32 to vector<8x32xf32>
    %385 = arith.addf %384, %383 : vector<8x32xf32>
    %386 = arith.divf %384, %385 : vector<8x32xf32>
    %387 = vector.extract_strided_slice %378 {offsets = [0, 32], sizes = [8, 32], strides = [1, 1]} : vector<8x128xf32> to vector<8x32xf32>
    %388 = arith.negf %387 : vector<8x32xf32>
    %389 = math.exp %388 : vector<8x32xf32>
    %cst_194 = arith.constant 1.000000e+00 : f32
    %390 = vector.broadcast %cst_194 : f32 to vector<8x32xf32>
    %391 = arith.addf %390, %389 : vector<8x32xf32>
    %392 = arith.divf %390, %391 : vector<8x32xf32>
    %393 = vector.extract_strided_slice %378 {offsets = [0, 64], sizes = [8, 32], strides = [1, 1]} : vector<8x128xf32> to vector<8x32xf32>
    %394 = math.tanh %393 : vector<8x32xf32>
    %395 = vector.extract_strided_slice %378 {offsets = [0, 96], sizes = [8, 32], strides = [1, 1]} : vector<8x128xf32> to vector<8x32xf32>
    %396 = arith.negf %395 : vector<8x32xf32>
    %397 = math.exp %396 : vector<8x32xf32>
    %cst_195 = arith.constant 1.000000e+00 : f32
    %398 = vector.broadcast %cst_195 : f32 to vector<8x32xf32>
    %399 = arith.addf %398, %397 : vector<8x32xf32>
    %400 = arith.divf %398, %399 : vector<8x32xf32>
    %401 = arith.mulf %392, %380 : vector<8x32xf32>
    %402 = arith.mulf %386, %394 : vector<8x32xf32>
    %403 = arith.addf %401, %402 : vector<8x32xf32>
    %404 = math.tanh %403 : vector<8x32xf32>
    %405 = arith.mulf %400, %404 : vector<8x32xf32>
    %c0_196 = arith.constant 0 : index
    %c0_197 = arith.constant 0 : index
    %c0_198 = arith.constant 0 : index
    %406 = vector.load %arg13[%c0_196, %c0_197, %c0_198] : memref<2x8x32xf32, #tpu.memory_space<vmem>>, vector<1x8x32xf32>
    %407 = vector.shape_cast %406 : vector<1x8x32xf32> to vector<8x32xf32>
    %408 = vector.shape_cast %405 : vector<8x32xf32> to vector<1x8x32xf32>
    tpu.vector_store %arg13[%c0_196, %c0_197, %c0_198], %408 {strides = array<i32>} : memref<2x8x32xf32, #tpu.memory_space<vmem>>, vector<1x8x32xf32>,
    %c0_199 = arith.constant 0 : index
    %c0_200 = arith.constant 0 : index
    %c0_201 = arith.constant 0 : index
    %409 = vector.load %arg14[%c0_199, %c0_200, %c0_201] : memref<2x8x32xf32, #tpu.memory_space<vmem>>, vector<1x8x32xf32>
    %410 = vector.shape_cast %409 : vector<1x8x32xf32> to vector<8x32xf32>
    %411 = vector.shape_cast %403 : vector<8x32xf32> to vector<1x8x32xf32>
    tpu.vector_store %arg14[%c0_199, %c0_200, %c0_201], %411 {strides = array<i32>} : memref<2x8x32xf32, #tpu.memory_space<vmem>>, vector<1x8x32xf32>,
    %412 = arith.truncf %405 : vector<8x32xf32> to vector<8x32xbf16>
    %c0_202 = arith.constant 0 : index
    %c0_203 = arith.constant 0 : index
    %413 = vector.load %arg16[%c0_202, %c0_203] : memref<8x96xbf16, #tpu.memory_space<vmem>>, vector<8x32xbf16>
    tpu.vector_store %arg16[%c0_202, %c0_203], %412 {strides = array<i32>} : memref<8x96xbf16, #tpu.memory_space<vmem>>, vector<8x32xbf16>,
    %c1_204 = arith.constant 1 : index
    %c0_205 = arith.constant 0 : index
    %c0_206 = arith.constant 0 : index
    %414 = vector.load %arg13[%c1_204, %c0_205, %c0_206] : memref<2x8x32xf32, #tpu.memory_space<vmem>>, vector<1x8x32xf32>
    %415 = vector.shape_cast %414 : vector<1x8x32xf32> to vector<8x32xf32>
    %416 = arith.truncf %415 : vector<8x32xf32> to vector<8x32xbf16>
    %c0_207 = arith.constant 0 : index
    %c32_208 = arith.constant 32 : index
    %417 = vector.load %arg16[%c0_207, %c32_208] : memref<8x96xbf16, #tpu.memory_space<vmem>>, vector<8x32xbf16>
    tpu.vector_store %arg16[%c0_207, %c32_208], %416 {strides = array<i32>} : memref<8x96xbf16, #tpu.memory_space<vmem>>, vector<8x32xbf16>,
    %c0_209 = arith.constant 0 : index
    %c64_210 = arith.constant 64 : index
    %418 = vector.load %arg16[%c0_209, %c64_210] : memref<8x96xbf16, #tpu.memory_space<vmem>>, vector<8x32xbf16>
    tpu.vector_store %arg16[%c0_209, %c64_210], %412 {strides = array<i32>} : memref<8x96xbf16, #tpu.memory_space<vmem>>, vector<8x32xbf16>,
    %c0_211 = arith.constant 0 : index
    %c0_212 = arith.constant 0 : index
    %419 = vector.load %arg16[%c0_211, %c0_212] : memref<8x96xbf16, #tpu.memory_space<vmem>>, vector<8x96xbf16>
    %cst_213 = arith.constant dense<0.000000e+00> : vector<8x256xf32>
    %420 = tpu.matmul %419, %5, %cst_213 {dimension_numbers = #tpu.dot_dimension_numbers<[1], [0], [0], [1], [0, 0, 1, 1], [], []>} : vector<8x96xbf16>, vector<96x256xbf16>, vector<8x256xf32> -> vector<8x256xf32>
    %421 = vector.extract_strided_slice %420 {offsets = [0, 128], sizes = [8, 128], strides = [1, 1]} : vector<8x256xf32> to vector<8x128xf32>
    %c0_214 = arith.constant 0 : index
    %c0_215 = arith.constant 0 : index
    %422 = vector.load %arg15[%c0_214, %c0_215] : memref<8x128xf32, #tpu.memory_space<vmem>>, vector<8x128xf32>
    tpu.vector_store %arg15[%c0_214, %c0_215], %421 {strides = array<i32>} : memref<8x128xf32, #tpu.memory_space<vmem>>, vector<8x128xf32>,
    %423 = vector.extract_strided_slice %420 {offsets = [0, 0], sizes = [8, 128], strides = [1, 1]} : vector<8x256xf32> to vector<8x128xf32>
    %424 = vector.broadcast %7 : vector<1x128xf32> to vector<8x128xf32>
    %425 = arith.addf %423, %424 : vector<8x128xf32>
    %c1_216 = arith.constant 1 : index
    %c0_217 = arith.constant 0 : index
    %c0_218 = arith.constant 0 : index
    %426 = vector.load %arg14[%c1_216, %c0_217, %c0_218] : memref<2x8x32xf32, #tpu.memory_space<vmem>>, vector<1x8x32xf32>
    %427 = vector.shape_cast %426 : vector<1x8x32xf32> to vector<8x32xf32>
    %428 = vector.extract_strided_slice %425 {offsets = [0, 0], sizes = [8, 32], strides = [1, 1]} : vector<8x128xf32> to vector<8x32xf32>
    %429 = arith.negf %428 : vector<8x32xf32>
    %430 = math.exp %429 : vector<8x32xf32>
    %cst_219 = arith.constant 1.000000e+00 : f32
    %431 = vector.broadcast %cst_219 : f32 to vector<8x32xf32>
    %432 = arith.addf %431, %430 : vector<8x32xf32>
    %433 = arith.divf %431, %432 : vector<8x32xf32>
    %434 = vector.extract_strided_slice %425 {offsets = [0, 32], sizes = [8, 32], strides = [1, 1]} : vector<8x128xf32> to vector<8x32xf32>
    %435 = arith.negf %434 : vector<8x32xf32>
    %436 = math.exp %435 : vector<8x32xf32>
    %cst_220 = arith.constant 1.000000e+00 : f32
    %437 = vector.broadcast %cst_220 : f32 to vector<8x32xf32>
    %438 = arith.addf %437, %436 : vector<8x32xf32>
    %439 = arith.divf %437, %438 : vector<8x32xf32>
    %440 = vector.extract_strided_slice %425 {offsets = [0, 64], sizes = [8, 32], strides = [1, 1]} : vector<8x128xf32> to vector<8x32xf32>
    %441 = math.tanh %440 : vector<8x32xf32>
    %442 = vector.extract_strided_slice %425 {offsets = [0, 96], sizes = [8, 32], strides = [1, 1]} : vector<8x128xf32> to vector<8x32xf32>
    %443 = arith.negf %442 : vector<8x32xf32>
    %444 = math.exp %443 : vector<8x32xf32>
    %cst_221 = arith.constant 1.000000e+00 : f32
    %445 = vector.broadcast %cst_221 : f32 to vector<8x32xf32>
    %446 = arith.addf %445, %444 : vector<8x32xf32>
    %447 = arith.divf %445, %446 : vector<8x32xf32>
    %448 = arith.mulf %439, %427 : vector<8x32xf32>
    %449 = arith.mulf %433, %441 : vector<8x32xf32>
    %450 = arith.addf %448, %449 : vector<8x32xf32>
    %451 = math.tanh %450 : vector<8x32xf32>
    %452 = arith.mulf %447, %451 : vector<8x32xf32>
    %c1_222 = arith.constant 1 : index
    %c0_223 = arith.constant 0 : index
    %c0_224 = arith.constant 0 : index
    %453 = vector.load %arg13[%c1_222, %c0_223, %c0_224] : memref<2x8x32xf32, #tpu.memory_space<vmem>>, vector<1x8x32xf32>
    %454 = vector.shape_cast %453 : vector<1x8x32xf32> to vector<8x32xf32>
    %455 = vector.shape_cast %452 : vector<8x32xf32> to vector<1x8x32xf32>
    tpu.vector_store %arg13[%c1_222, %c0_223, %c0_224], %455 {strides = array<i32>} : memref<2x8x32xf32, #tpu.memory_space<vmem>>, vector<1x8x32xf32>,
    %c1_225 = arith.constant 1 : index
    %c0_226 = arith.constant 0 : index
    %c0_227 = arith.constant 0 : index
    %456 = vector.load %arg14[%c1_225, %c0_226, %c0_227] : memref<2x8x32xf32, #tpu.memory_space<vmem>>, vector<1x8x32xf32>
    %457 = vector.shape_cast %456 : vector<1x8x32xf32> to vector<8x32xf32>
    %458 = vector.shape_cast %450 : vector<8x32xf32> to vector<1x8x32xf32>
    tpu.vector_store %arg14[%c1_225, %c0_226, %c0_227], %458 {strides = array<i32>} : memref<2x8x32xf32, #tpu.memory_space<vmem>>, vector<1x8x32xf32>,
    %459 = arith.truncf %452 : vector<8x32xf32> to vector<8x32xbf16>
    %c0_228 = arith.constant 0 : index
    %c4_229 = arith.constant 4 : index
    %c0_230 = arith.constant 0 : index
    %460 = vector.load %arg10[%c0_228, %c4_229, %c0_230] : memref<8x8x32xbf16, #tpu.memory_space<vmem>>, vector<8x1x32xbf16>
    %461 = vector.shape_cast %460 : vector<8x1x32xbf16> to vector<8x32xbf16>
    %462 = vector.shape_cast %459 : vector<8x32xbf16> to vector<8x1x32xbf16>
    tpu.vector_store %arg10[%c0_228, %c4_229, %c0_230], %462 {strides = array<i32>} : memref<8x8x32xbf16, #tpu.memory_space<vmem>>, vector<8x1x32xbf16>,
    %c5 = arith.constant 5 : index
    %c0_231 = arith.constant 0 : index
    %c0_232 = arith.constant 0 : index
    %463 = vector.load %arg2[%c5, %c0_231, %c0_232] : memref<8x8x128xbf16, #tpu.memory_space<vmem>>, vector<1x8x128xbf16>
    %464 = vector.shape_cast %463 : vector<1x8x128xbf16> to vector<8x128xbf16>
    %465 = arith.extf %464 : vector<8x128xbf16> to vector<8x128xf32>
    %c0_233 = arith.constant 0 : index
    %c0_234 = arith.constant 0 : index
    %466 = vector.load %arg15[%c0_233, %c0_234] : memref<8x128xf32, #tpu.memory_space<vmem>>, vector<8x128xf32>
    %467 = arith.addf %465, %466 : vector<8x128xf32>
    %468 = vector.broadcast %4 : vector<1x128xf32> to vector<8x128xf32>
    %469 = arith.addf %467, %468 : vector<8x128xf32>
    %c0_235 = arith.constant 0 : index
    %c0_236 = arith.constant 0 : index
    %c0_237 = arith.constant 0 : index
    %470 = vector.load %arg14[%c0_235, %c0_236, %c0_237] : memref<2x8x32xf32, #tpu.memory_space<vmem>>, vector<1x8x32xf32>
    %471 = vector.shape_cast %470 : vector<1x8x32xf32> to vector<8x32xf32>
    %472 = vector.extract_strided_slice %469 {offsets = [0, 0], sizes = [8, 32], strides = [1, 1]} : vector<8x128xf32> to vector<8x32xf32>
    %473 = arith.negf %472 : vector<8x32xf32>
    %474 = math.exp %473 : vector<8x32xf32>
    %cst_238 = arith.constant 1.000000e+00 : f32
    %475 = vector.broadcast %cst_238 : f32 to vector<8x32xf32>
    %476 = arith.addf %475, %474 : vector<8x32xf32>
    %477 = arith.divf %475, %476 : vector<8x32xf32>
    %478 = vector.extract_strided_slice %469 {offsets = [0, 32], sizes = [8, 32], strides = [1, 1]} : vector<8x128xf32> to vector<8x32xf32>
    %479 = arith.negf %478 : vector<8x32xf32>
    %480 = math.exp %479 : vector<8x32xf32>
    %cst_239 = arith.constant 1.000000e+00 : f32
    %481 = vector.broadcast %cst_239 : f32 to vector<8x32xf32>
    %482 = arith.addf %481, %480 : vector<8x32xf32>
    %483 = arith.divf %481, %482 : vector<8x32xf32>
    %484 = vector.extract_strided_slice %469 {offsets = [0, 64], sizes = [8, 32], strides = [1, 1]} : vector<8x128xf32> to vector<8x32xf32>
    %485 = math.tanh %484 : vector<8x32xf32>
    %486 = vector.extract_strided_slice %469 {offsets = [0, 96], sizes = [8, 32], strides = [1, 1]} : vector<8x128xf32> to vector<8x32xf32>
    %487 = arith.negf %486 : vector<8x32xf32>
    %488 = math.exp %487 : vector<8x32xf32>
    %cst_240 = arith.constant 1.000000e+00 : f32
    %489 = vector.broadcast %cst_240 : f32 to vector<8x32xf32>
    %490 = arith.addf %489, %488 : vector<8x32xf32>
    %491 = arith.divf %489, %490 : vector<8x32xf32>
    %492 = arith.mulf %483, %471 : vector<8x32xf32>
    %493 = arith.mulf %477, %485 : vector<8x32xf32>
    %494 = arith.addf %492, %493 : vector<8x32xf32>
    %495 = math.tanh %494 : vector<8x32xf32>
    %496 = arith.mulf %491, %495 : vector<8x32xf32>
    %c0_241 = arith.constant 0 : index
    %c0_242 = arith.constant 0 : index
    %c0_243 = arith.constant 0 : index
    %497 = vector.load %arg13[%c0_241, %c0_242, %c0_243] : memref<2x8x32xf32, #tpu.memory_space<vmem>>, vector<1x8x32xf32>
    %498 = vector.shape_cast %497 : vector<1x8x32xf32> to vector<8x32xf32>
    %499 = vector.shape_cast %496 : vector<8x32xf32> to vector<1x8x32xf32>
    tpu.vector_store %arg13[%c0_241, %c0_242, %c0_243], %499 {strides = array<i32>} : memref<2x8x32xf32, #tpu.memory_space<vmem>>, vector<1x8x32xf32>,
    %c0_244 = arith.constant 0 : index
    %c0_245 = arith.constant 0 : index
    %c0_246 = arith.constant 0 : index
    %500 = vector.load %arg14[%c0_244, %c0_245, %c0_246] : memref<2x8x32xf32, #tpu.memory_space<vmem>>, vector<1x8x32xf32>
    %501 = vector.shape_cast %500 : vector<1x8x32xf32> to vector<8x32xf32>
    %502 = vector.shape_cast %494 : vector<8x32xf32> to vector<1x8x32xf32>
    tpu.vector_store %arg14[%c0_244, %c0_245, %c0_246], %502 {strides = array<i32>} : memref<2x8x32xf32, #tpu.memory_space<vmem>>, vector<1x8x32xf32>,
    %503 = arith.truncf %496 : vector<8x32xf32> to vector<8x32xbf16>
    %c0_247 = arith.constant 0 : index
    %c0_248 = arith.constant 0 : index
    %504 = vector.load %arg16[%c0_247, %c0_248] : memref<8x96xbf16, #tpu.memory_space<vmem>>, vector<8x32xbf16>
    tpu.vector_store %arg16[%c0_247, %c0_248], %503 {strides = array<i32>} : memref<8x96xbf16, #tpu.memory_space<vmem>>, vector<8x32xbf16>,
    %c1_249 = arith.constant 1 : index
    %c0_250 = arith.constant 0 : index
    %c0_251 = arith.constant 0 : index
    %505 = vector.load %arg13[%c1_249, %c0_250, %c0_251] : memref<2x8x32xf32, #tpu.memory_space<vmem>>, vector<1x8x32xf32>
    %506 = vector.shape_cast %505 : vector<1x8x32xf32> to vector<8x32xf32>
    %507 = arith.truncf %506 : vector<8x32xf32> to vector<8x32xbf16>
    %c0_252 = arith.constant 0 : index
    %c32_253 = arith.constant 32 : index
    %508 = vector.load %arg16[%c0_252, %c32_253] : memref<8x96xbf16, #tpu.memory_space<vmem>>, vector<8x32xbf16>
    tpu.vector_store %arg16[%c0_252, %c32_253], %507 {strides = array<i32>} : memref<8x96xbf16, #tpu.memory_space<vmem>>, vector<8x32xbf16>,
    %c0_254 = arith.constant 0 : index
    %c64_255 = arith.constant 64 : index
    %509 = vector.load %arg16[%c0_254, %c64_255] : memref<8x96xbf16, #tpu.memory_space<vmem>>, vector<8x32xbf16>
    tpu.vector_store %arg16[%c0_254, %c64_255], %503 {strides = array<i32>} : memref<8x96xbf16, #tpu.memory_space<vmem>>, vector<8x32xbf16>,
    %c0_256 = arith.constant 0 : index
    %c0_257 = arith.constant 0 : index
    %510 = vector.load %arg16[%c0_256, %c0_257] : memref<8x96xbf16, #tpu.memory_space<vmem>>, vector<8x96xbf16>
    %cst_258 = arith.constant dense<0.000000e+00> : vector<8x256xf32>
    %511 = tpu.matmul %510, %5, %cst_258 {dimension_numbers = #tpu.dot_dimension_numbers<[1], [0], [0], [1], [0, 0, 1, 1], [], []>} : vector<8x96xbf16>, vector<96x256xbf16>, vector<8x256xf32> -> vector<8x256xf32>
    %512 = vector.extract_strided_slice %511 {offsets = [0, 128], sizes = [8, 128], strides = [1, 1]} : vector<8x256xf32> to vector<8x128xf32>
    %c0_259 = arith.constant 0 : index
    %c0_260 = arith.constant 0 : index
    %513 = vector.load %arg15[%c0_259, %c0_260] : memref<8x128xf32, #tpu.memory_space<vmem>>, vector<8x128xf32>
    tpu.vector_store %arg15[%c0_259, %c0_260], %512 {strides = array<i32>} : memref<8x128xf32, #tpu.memory_space<vmem>>, vector<8x128xf32>,
    %514 = vector.extract_strided_slice %511 {offsets = [0, 0], sizes = [8, 128], strides = [1, 1]} : vector<8x256xf32> to vector<8x128xf32>
    %515 = vector.broadcast %7 : vector<1x128xf32> to vector<8x128xf32>
    %516 = arith.addf %514, %515 : vector<8x128xf32>
    %c1_261 = arith.constant 1 : index
    %c0_262 = arith.constant 0 : index
    %c0_263 = arith.constant 0 : index
    %517 = vector.load %arg14[%c1_261, %c0_262, %c0_263] : memref<2x8x32xf32, #tpu.memory_space<vmem>>, vector<1x8x32xf32>
    %518 = vector.shape_cast %517 : vector<1x8x32xf32> to vector<8x32xf32>
    %519 = vector.extract_strided_slice %516 {offsets = [0, 0], sizes = [8, 32], strides = [1, 1]} : vector<8x128xf32> to vector<8x32xf32>
    %520 = arith.negf %519 : vector<8x32xf32>
    %521 = math.exp %520 : vector<8x32xf32>
    %cst_264 = arith.constant 1.000000e+00 : f32
    %522 = vector.broadcast %cst_264 : f32 to vector<8x32xf32>
    %523 = arith.addf %522, %521 : vector<8x32xf32>
    %524 = arith.divf %522, %523 : vector<8x32xf32>
    %525 = vector.extract_strided_slice %516 {offsets = [0, 32], sizes = [8, 32], strides = [1, 1]} : vector<8x128xf32> to vector<8x32xf32>
    %526 = arith.negf %525 : vector<8x32xf32>
    %527 = math.exp %526 : vector<8x32xf32>
    %cst_265 = arith.constant 1.000000e+00 : f32
    %528 = vector.broadcast %cst_265 : f32 to vector<8x32xf32>
    %529 = arith.addf %528, %527 : vector<8x32xf32>
    %530 = arith.divf %528, %529 : vector<8x32xf32>
    %531 = vector.extract_strided_slice %516 {offsets = [0, 64], sizes = [8, 32], strides = [1, 1]} : vector<8x128xf32> to vector<8x32xf32>
    %532 = math.tanh %531 : vector<8x32xf32>
    %533 = vector.extract_strided_slice %516 {offsets = [0, 96], sizes = [8, 32], strides = [1, 1]} : vector<8x128xf32> to vector<8x32xf32>
    %534 = arith.negf %533 : vector<8x32xf32>
    %535 = math.exp %534 : vector<8x32xf32>
    %cst_266 = arith.constant 1.000000e+00 : f32
    %536 = vector.broadcast %cst_266 : f32 to vector<8x32xf32>
    %537 = arith.addf %536, %535 : vector<8x32xf32>
    %538 = arith.divf %536, %537 : vector<8x32xf32>
    %539 = arith.mulf %530, %518 : vector<8x32xf32>
    %540 = arith.mulf %524, %532 : vector<8x32xf32>
    %541 = arith.addf %539, %540 : vector<8x32xf32>
    %542 = math.tanh %541 : vector<8x32xf32>
    %543 = arith.mulf %538, %542 : vector<8x32xf32>
    %c1_267 = arith.constant 1 : index
    %c0_268 = arith.constant 0 : index
    %c0_269 = arith.constant 0 : index
    %544 = vector.load %arg13[%c1_267, %c0_268, %c0_269] : memref<2x8x32xf32, #tpu.memory_space<vmem>>, vector<1x8x32xf32>
    %545 = vector.shape_cast %544 : vector<1x8x32xf32> to vector<8x32xf32>
    %546 = vector.shape_cast %543 : vector<8x32xf32> to vector<1x8x32xf32>
    tpu.vector_store %arg13[%c1_267, %c0_268, %c0_269], %546 {strides = array<i32>} : memref<2x8x32xf32, #tpu.memory_space<vmem>>, vector<1x8x32xf32>,
    %c1_270 = arith.constant 1 : index
    %c0_271 = arith.constant 0 : index
    %c0_272 = arith.constant 0 : index
    %547 = vector.load %arg14[%c1_270, %c0_271, %c0_272] : memref<2x8x32xf32, #tpu.memory_space<vmem>>, vector<1x8x32xf32>
    %548 = vector.shape_cast %547 : vector<1x8x32xf32> to vector<8x32xf32>
    %549 = vector.shape_cast %541 : vector<8x32xf32> to vector<1x8x32xf32>
    tpu.vector_store %arg14[%c1_270, %c0_271, %c0_272], %549 {strides = array<i32>} : memref<2x8x32xf32, #tpu.memory_space<vmem>>, vector<1x8x32xf32>,
    %550 = arith.truncf %543 : vector<8x32xf32> to vector<8x32xbf16>
    %c0_273 = arith.constant 0 : index
    %c5_274 = arith.constant 5 : index
    %c0_275 = arith.constant 0 : index
    %551 = vector.load %arg10[%c0_273, %c5_274, %c0_275] : memref<8x8x32xbf16, #tpu.memory_space<vmem>>, vector<8x1x32xbf16>
    %552 = vector.shape_cast %551 : vector<8x1x32xbf16> to vector<8x32xbf16>
    %553 = vector.shape_cast %550 : vector<8x32xbf16> to vector<8x1x32xbf16>
    tpu.vector_store %arg10[%c0_273, %c5_274, %c0_275], %553 {strides = array<i32>} : memref<8x8x32xbf16, #tpu.memory_space<vmem>>, vector<8x1x32xbf16>,
    %c6 = arith.constant 6 : index
    %c0_276 = arith.constant 0 : index
    %c0_277 = arith.constant 0 : index
    %554 = vector.load %arg2[%c6, %c0_276, %c0_277] : memref<8x8x128xbf16, #tpu.memory_space<vmem>>, vector<1x8x128xbf16>
    %555 = vector.shape_cast %554 : vector<1x8x128xbf16> to vector<8x128xbf16>
    %556 = arith.extf %555 : vector<8x128xbf16> to vector<8x128xf32>
    %c0_278 = arith.constant 0 : index
    %c0_279 = arith.constant 0 : index
    %557 = vector.load %arg15[%c0_278, %c0_279] : memref<8x128xf32, #tpu.memory_space<vmem>>, vector<8x128xf32>
    %558 = arith.addf %556, %557 : vector<8x128xf32>
    %559 = vector.broadcast %4 : vector<1x128xf32> to vector<8x128xf32>
    %560 = arith.addf %558, %559 : vector<8x128xf32>
    %c0_280 = arith.constant 0 : index
    %c0_281 = arith.constant 0 : index
    %c0_282 = arith.constant 0 : index
    %561 = vector.load %arg14[%c0_280, %c0_281, %c0_282] : memref<2x8x32xf32, #tpu.memory_space<vmem>>, vector<1x8x32xf32>
    %562 = vector.shape_cast %561 : vector<1x8x32xf32> to vector<8x32xf32>
    %563 = vector.extract_strided_slice %560 {offsets = [0, 0], sizes = [8, 32], strides = [1, 1]} : vector<8x128xf32> to vector<8x32xf32>
    %564 = arith.negf %563 : vector<8x32xf32>
    %565 = math.exp %564 : vector<8x32xf32>
    %cst_283 = arith.constant 1.000000e+00 : f32
    %566 = vector.broadcast %cst_283 : f32 to vector<8x32xf32>
    %567 = arith.addf %566, %565 : vector<8x32xf32>
    %568 = arith.divf %566, %567 : vector<8x32xf32>
    %569 = vector.extract_strided_slice %560 {offsets = [0, 32], sizes = [8, 32], strides = [1, 1]} : vector<8x128xf32> to vector<8x32xf32>
    %570 = arith.negf %569 : vector<8x32xf32>
    %571 = math.exp %570 : vector<8x32xf32>
    %cst_284 = arith.constant 1.000000e+00 : f32
    %572 = vector.broadcast %cst_284 : f32 to vector<8x32xf32>
    %573 = arith.addf %572, %571 : vector<8x32xf32>
    %574 = arith.divf %572, %573 : vector<8x32xf32>
    %575 = vector.extract_strided_slice %560 {offsets = [0, 64], sizes = [8, 32], strides = [1, 1]} : vector<8x128xf32> to vector<8x32xf32>
    %576 = math.tanh %575 : vector<8x32xf32>
    %577 = vector.extract_strided_slice %560 {offsets = [0, 96], sizes = [8, 32], strides = [1, 1]} : vector<8x128xf32> to vector<8x32xf32>
    %578 = arith.negf %577 : vector<8x32xf32>
    %579 = math.exp %578 : vector<8x32xf32>
    %cst_285 = arith.constant 1.000000e+00 : f32
    %580 = vector.broadcast %cst_285 : f32 to vector<8x32xf32>
    %581 = arith.addf %580, %579 : vector<8x32xf32>
    %582 = arith.divf %580, %581 : vector<8x32xf32>
    %583 = arith.mulf %574, %562 : vector<8x32xf32>
    %584 = arith.mulf %568, %576 : vector<8x32xf32>
    %585 = arith.addf %583, %584 : vector<8x32xf32>
    %586 = math.tanh %585 : vector<8x32xf32>
    %587 = arith.mulf %582, %586 : vector<8x32xf32>
    %c0_286 = arith.constant 0 : index
    %c0_287 = arith.constant 0 : index
    %c0_288 = arith.constant 0 : index
    %588 = vector.load %arg13[%c0_286, %c0_287, %c0_288] : memref<2x8x32xf32, #tpu.memory_space<vmem>>, vector<1x8x32xf32>
    %589 = vector.shape_cast %588 : vector<1x8x32xf32> to vector<8x32xf32>
    %590 = vector.shape_cast %587 : vector<8x32xf32> to vector<1x8x32xf32>
    tpu.vector_store %arg13[%c0_286, %c0_287, %c0_288], %590 {strides = array<i32>} : memref<2x8x32xf32, #tpu.memory_space<vmem>>, vector<1x8x32xf32>,
    %c0_289 = arith.constant 0 : index
    %c0_290 = arith.constant 0 : index
    %c0_291 = arith.constant 0 : index
    %591 = vector.load %arg14[%c0_289, %c0_290, %c0_291] : memref<2x8x32xf32, #tpu.memory_space<vmem>>, vector<1x8x32xf32>
    %592 = vector.shape_cast %591 : vector<1x8x32xf32> to vector<8x32xf32>
    %593 = vector.shape_cast %585 : vector<8x32xf32> to vector<1x8x32xf32>
    tpu.vector_store %arg14[%c0_289, %c0_290, %c0_291], %593 {strides = array<i32>} : memref<2x8x32xf32, #tpu.memory_space<vmem>>, vector<1x8x32xf32>,
    %594 = arith.truncf %587 : vector<8x32xf32> to vector<8x32xbf16>
    %c0_292 = arith.constant 0 : index
    %c0_293 = arith.constant 0 : index
    %595 = vector.load %arg16[%c0_292, %c0_293] : memref<8x96xbf16, #tpu.memory_space<vmem>>, vector<8x32xbf16>
    tpu.vector_store %arg16[%c0_292, %c0_293], %594 {strides = array<i32>} : memref<8x96xbf16, #tpu.memory_space<vmem>>, vector<8x32xbf16>,
    %c1_294 = arith.constant 1 : index
    %c0_295 = arith.constant 0 : index
    %c0_296 = arith.constant 0 : index
    %596 = vector.load %arg13[%c1_294, %c0_295, %c0_296] : memref<2x8x32xf32, #tpu.memory_space<vmem>>, vector<1x8x32xf32>
    %597 = vector.shape_cast %596 : vector<1x8x32xf32> to vector<8x32xf32>
    %598 = arith.truncf %597 : vector<8x32xf32> to vector<8x32xbf16>
    %c0_297 = arith.constant 0 : index
    %c32_298 = arith.constant 32 : index
    %599 = vector.load %arg16[%c0_297, %c32_298] : memref<8x96xbf16, #tpu.memory_space<vmem>>, vector<8x32xbf16>
    tpu.vector_store %arg16[%c0_297, %c32_298], %598 {strides = array<i32>} : memref<8x96xbf16, #tpu.memory_space<vmem>>, vector<8x32xbf16>,
    %c0_299 = arith.constant 0 : index
    %c64_300 = arith.constant 64 : index
    %600 = vector.load %arg16[%c0_299, %c64_300] : memref<8x96xbf16, #tpu.memory_space<vmem>>, vector<8x32xbf16>
    tpu.vector_store %arg16[%c0_299, %c64_300], %594 {strides = array<i32>} : memref<8x96xbf16, #tpu.memory_space<vmem>>, vector<8x32xbf16>,
    %c0_301 = arith.constant 0 : index
    %c0_302 = arith.constant 0 : index
    %601 = vector.load %arg16[%c0_301, %c0_302] : memref<8x96xbf16, #tpu.memory_space<vmem>>, vector<8x96xbf16>
    %cst_303 = arith.constant dense<0.000000e+00> : vector<8x256xf32>
    %602 = tpu.matmul %601, %5, %cst_303 {dimension_numbers = #tpu.dot_dimension_numbers<[1], [0], [0], [1], [0, 0, 1, 1], [], []>} : vector<8x96xbf16>, vector<96x256xbf16>, vector<8x256xf32> -> vector<8x256xf32>
    %603 = vector.extract_strided_slice %602 {offsets = [0, 128], sizes = [8, 128], strides = [1, 1]} : vector<8x256xf32> to vector<8x128xf32>
    %c0_304 = arith.constant 0 : index
    %c0_305 = arith.constant 0 : index
    %604 = vector.load %arg15[%c0_304, %c0_305] : memref<8x128xf32, #tpu.memory_space<vmem>>, vector<8x128xf32>
    tpu.vector_store %arg15[%c0_304, %c0_305], %603 {strides = array<i32>} : memref<8x128xf32, #tpu.memory_space<vmem>>, vector<8x128xf32>,
    %605 = vector.extract_strided_slice %602 {offsets = [0, 0], sizes = [8, 128], strides = [1, 1]} : vector<8x256xf32> to vector<8x128xf32>
    %606 = vector.broadcast %7 : vector<1x128xf32> to vector<8x128xf32>
    %607 = arith.addf %605, %606 : vector<8x128xf32>
    %c1_306 = arith.constant 1 : index
    %c0_307 = arith.constant 0 : index
    %c0_308 = arith.constant 0 : index
    %608 = vector.load %arg14[%c1_306, %c0_307, %c0_308] : memref<2x8x32xf32, #tpu.memory_space<vmem>>, vector<1x8x32xf32>
    %609 = vector.shape_cast %608 : vector<1x8x32xf32> to vector<8x32xf32>
    %610 = vector.extract_strided_slice %607 {offsets = [0, 0], sizes = [8, 32], strides = [1, 1]} : vector<8x128xf32> to vector<8x32xf32>
    %611 = arith.negf %610 : vector<8x32xf32>
    %612 = math.exp %611 : vector<8x32xf32>
    %cst_309 = arith.constant 1.000000e+00 : f32
    %613 = vector.broadcast %cst_309 : f32 to vector<8x32xf32>
    %614 = arith.addf %613, %612 : vector<8x32xf32>
    %615 = arith.divf %613, %614 : vector<8x32xf32>
    %616 = vector.extract_strided_slice %607 {offsets = [0, 32], sizes = [8, 32], strides = [1, 1]} : vector<8x128xf32> to vector<8x32xf32>
    %617 = arith.negf %616 : vector<8x32xf32>
    %618 = math.exp %617 : vector<8x32xf32>
    %cst_310 = arith.constant 1.000000e+00 : f32
    %619 = vector.broadcast %cst_310 : f32 to vector<8x32xf32>
    %620 = arith.addf %619, %618 : vector<8x32xf32>
    %621 = arith.divf %619, %620 : vector<8x32xf32>
    %622 = vector.extract_strided_slice %607 {offsets = [0, 64], sizes = [8, 32], strides = [1, 1]} : vector<8x128xf32> to vector<8x32xf32>
    %623 = math.tanh %622 : vector<8x32xf32>
    %624 = vector.extract_strided_slice %607 {offsets = [0, 96], sizes = [8, 32], strides = [1, 1]} : vector<8x128xf32> to vector<8x32xf32>
    %625 = arith.negf %624 : vector<8x32xf32>
    %626 = math.exp %625 : vector<8x32xf32>
    %cst_311 = arith.constant 1.000000e+00 : f32
    %627 = vector.broadcast %cst_311 : f32 to vector<8x32xf32>
    %628 = arith.addf %627, %626 : vector<8x32xf32>
    %629 = arith.divf %627, %628 : vector<8x32xf32>
    %630 = arith.mulf %621, %609 : vector<8x32xf32>
    %631 = arith.mulf %615, %623 : vector<8x32xf32>
    %632 = arith.addf %630, %631 : vector<8x32xf32>
    %633 = math.tanh %632 : vector<8x32xf32>
    %634 = arith.mulf %629, %633 : vector<8x32xf32>
    %c1_312 = arith.constant 1 : index
    %c0_313 = arith.constant 0 : index
    %c0_314 = arith.constant 0 : index
    %635 = vector.load %arg13[%c1_312, %c0_313, %c0_314] : memref<2x8x32xf32, #tpu.memory_space<vmem>>, vector<1x8x32xf32>
    %636 = vector.shape_cast %635 : vector<1x8x32xf32> to vector<8x32xf32>
    %637 = vector.shape_cast %634 : vector<8x32xf32> to vector<1x8x32xf32>
    tpu.vector_store %arg13[%c1_312, %c0_313, %c0_314], %637 {strides = array<i32>} : memref<2x8x32xf32, #tpu.memory_space<vmem>>, vector<1x8x32xf32>,
    %c1_315 = arith.constant 1 : index
    %c0_316 = arith.constant 0 : index
    %c0_317 = arith.constant 0 : index
    %638 = vector.load %arg14[%c1_315, %c0_316, %c0_317] : memref<2x8x32xf32, #tpu.memory_space<vmem>>, vector<1x8x32xf32>
    %639 = vector.shape_cast %638 : vector<1x8x32xf32> to vector<8x32xf32>
    %640 = vector.shape_cast %632 : vector<8x32xf32> to vector<1x8x32xf32>
    tpu.vector_store %arg14[%c1_315, %c0_316, %c0_317], %640 {strides = array<i32>} : memref<2x8x32xf32, #tpu.memory_space<vmem>>, vector<1x8x32xf32>,
    %641 = arith.truncf %634 : vector<8x32xf32> to vector<8x32xbf16>
    %c0_318 = arith.constant 0 : index
    %c6_319 = arith.constant 6 : index
    %c0_320 = arith.constant 0 : index
    %642 = vector.load %arg10[%c0_318, %c6_319, %c0_320] : memref<8x8x32xbf16, #tpu.memory_space<vmem>>, vector<8x1x32xbf16>
    %643 = vector.shape_cast %642 : vector<8x1x32xbf16> to vector<8x32xbf16>
    %644 = vector.shape_cast %641 : vector<8x32xbf16> to vector<8x1x32xbf16>
    tpu.vector_store %arg10[%c0_318, %c6_319, %c0_320], %644 {strides = array<i32>} : memref<8x8x32xbf16, #tpu.memory_space<vmem>>, vector<8x1x32xbf16>,
    %c7 = arith.constant 7 : index
    %c0_321 = arith.constant 0 : index
    %c0_322 = arith.constant 0 : index
    %645 = vector.load %arg2[%c7, %c0_321, %c0_322] : memref<8x8x128xbf16, #tpu.memory_space<vmem>>, vector<1x8x128xbf16>
    %646 = vector.shape_cast %645 : vector<1x8x128xbf16> to vector<8x128xbf16>
    %647 = arith.extf %646 : vector<8x128xbf16> to vector<8x128xf32>
    %c0_323 = arith.constant 0 : index
    %c0_324 = arith.constant 0 : index
    %648 = vector.load %arg15[%c0_323, %c0_324] : memref<8x128xf32, #tpu.memory_space<vmem>>, vector<8x128xf32>
    %649 = arith.addf %647, %648 : vector<8x128xf32>
    %650 = vector.broadcast %4 : vector<1x128xf32> to vector<8x128xf32>
    %651 = arith.addf %649, %650 : vector<8x128xf32>
    %c0_325 = arith.constant 0 : index
    %c0_326 = arith.constant 0 : index
    %c0_327 = arith.constant 0 : index
    %652 = vector.load %arg14[%c0_325, %c0_326, %c0_327] : memref<2x8x32xf32, #tpu.memory_space<vmem>>, vector<1x8x32xf32>
    %653 = vector.shape_cast %652 : vector<1x8x32xf32> to vector<8x32xf32>
    %654 = vector.extract_strided_slice %651 {offsets = [0, 0], sizes = [8, 32], strides = [1, 1]} : vector<8x128xf32> to vector<8x32xf32>
    %655 = arith.negf %654 : vector<8x32xf32>
    %656 = math.exp %655 : vector<8x32xf32>
    %cst_328 = arith.constant 1.000000e+00 : f32
    %657 = vector.broadcast %cst_328 : f32 to vector<8x32xf32>
    %658 = arith.addf %657, %656 : vector<8x32xf32>
    %659 = arith.divf %657, %658 : vector<8x32xf32>
    %660 = vector.extract_strided_slice %651 {offsets = [0, 32], sizes = [8, 32], strides = [1, 1]} : vector<8x128xf32> to vector<8x32xf32>
    %661 = arith.negf %660 : vector<8x32xf32>
    %662 = math.exp %661 : vector<8x32xf32>
    %cst_329 = arith.constant 1.000000e+00 : f32
    %663 = vector.broadcast %cst_329 : f32 to vector<8x32xf32>
    %664 = arith.addf %663, %662 : vector<8x32xf32>
    %665 = arith.divf %663, %664 : vector<8x32xf32>
    %666 = vector.extract_strided_slice %651 {offsets = [0, 64], sizes = [8, 32], strides = [1, 1]} : vector<8x128xf32> to vector<8x32xf32>
    %667 = math.tanh %666 : vector<8x32xf32>
    %668 = vector.extract_strided_slice %651 {offsets = [0, 96], sizes = [8, 32], strides = [1, 1]} : vector<8x128xf32> to vector<8x32xf32>
    %669 = arith.negf %668 : vector<8x32xf32>
    %670 = math.exp %669 : vector<8x32xf32>
    %cst_330 = arith.constant 1.000000e+00 : f32
    %671 = vector.broadcast %cst_330 : f32 to vector<8x32xf32>
    %672 = arith.addf %671, %670 : vector<8x32xf32>
    %673 = arith.divf %671, %672 : vector<8x32xf32>
    %674 = arith.mulf %665, %653 : vector<8x32xf32>
    %675 = arith.mulf %659, %667 : vector<8x32xf32>
    %676 = arith.addf %674, %675 : vector<8x32xf32>
    %677 = math.tanh %676 : vector<8x32xf32>
    %678 = arith.mulf %673, %677 : vector<8x32xf32>
    %c0_331 = arith.constant 0 : index
    %c0_332 = arith.constant 0 : index
    %c0_333 = arith.constant 0 : index
    %679 = vector.load %arg13[%c0_331, %c0_332, %c0_333] : memref<2x8x32xf32, #tpu.memory_space<vmem>>, vector<1x8x32xf32>
    %680 = vector.shape_cast %679 : vector<1x8x32xf32> to vector<8x32xf32>
    %681 = vector.shape_cast %678 : vector<8x32xf32> to vector<1x8x32xf32>
    tpu.vector_store %arg13[%c0_331, %c0_332, %c0_333], %681 {strides = array<i32>} : memref<2x8x32xf32, #tpu.memory_space<vmem>>, vector<1x8x32xf32>,
    %c0_334 = arith.constant 0 : index
    %c0_335 = arith.constant 0 : index
    %c0_336 = arith.constant 0 : index
    %682 = vector.load %arg14[%c0_334, %c0_335, %c0_336] : memref<2x8x32xf32, #tpu.memory_space<vmem>>, vector<1x8x32xf32>
    %683 = vector.shape_cast %682 : vector<1x8x32xf32> to vector<8x32xf32>
    %684 = vector.shape_cast %676 : vector<8x32xf32> to vector<1x8x32xf32>
    tpu.vector_store %arg14[%c0_334, %c0_335, %c0_336], %684 {strides = array<i32>} : memref<2x8x32xf32, #tpu.memory_space<vmem>>, vector<1x8x32xf32>,
    %685 = arith.truncf %678 : vector<8x32xf32> to vector<8x32xbf16>
    %c0_337 = arith.constant 0 : index
    %c0_338 = arith.constant 0 : index
    %686 = vector.load %arg16[%c0_337, %c0_338] : memref<8x96xbf16, #tpu.memory_space<vmem>>, vector<8x32xbf16>
    tpu.vector_store %arg16[%c0_337, %c0_338], %685 {strides = array<i32>} : memref<8x96xbf16, #tpu.memory_space<vmem>>, vector<8x32xbf16>,
    %c1_339 = arith.constant 1 : index
    %c0_340 = arith.constant 0 : index
    %c0_341 = arith.constant 0 : index
    %687 = vector.load %arg13[%c1_339, %c0_340, %c0_341] : memref<2x8x32xf32, #tpu.memory_space<vmem>>, vector<1x8x32xf32>
    %688 = vector.shape_cast %687 : vector<1x8x32xf32> to vector<8x32xf32>
    %689 = arith.truncf %688 : vector<8x32xf32> to vector<8x32xbf16>
    %c0_342 = arith.constant 0 : index
    %c32_343 = arith.constant 32 : index
    %690 = vector.load %arg16[%c0_342, %c32_343] : memref<8x96xbf16, #tpu.memory_space<vmem>>, vector<8x32xbf16>
    tpu.vector_store %arg16[%c0_342, %c32_343], %689 {strides = array<i32>} : memref<8x96xbf16, #tpu.memory_space<vmem>>, vector<8x32xbf16>,
    %c0_344 = arith.constant 0 : index
    %c64_345 = arith.constant 64 : index
    %691 = vector.load %arg16[%c0_344, %c64_345] : memref<8x96xbf16, #tpu.memory_space<vmem>>, vector<8x32xbf16>
    tpu.vector_store %arg16[%c0_344, %c64_345], %685 {strides = array<i32>} : memref<8x96xbf16, #tpu.memory_space<vmem>>, vector<8x32xbf16>,
    %c0_346 = arith.constant 0 : index
    %c0_347 = arith.constant 0 : index
    %692 = vector.load %arg16[%c0_346, %c0_347] : memref<8x96xbf16, #tpu.memory_space<vmem>>, vector<8x96xbf16>
    %cst_348 = arith.constant dense<0.000000e+00> : vector<8x256xf32>
    %693 = tpu.matmul %692, %5, %cst_348 {dimension_numbers = #tpu.dot_dimension_numbers<[1], [0], [0], [1], [0, 0, 1, 1], [], []>} : vector<8x96xbf16>, vector<96x256xbf16>, vector<8x256xf32> -> vector<8x256xf32>
    %694 = vector.extract_strided_slice %693 {offsets = [0, 128], sizes = [8, 128], strides = [1, 1]} : vector<8x256xf32> to vector<8x128xf32>
    %c0_349 = arith.constant 0 : index
    %c0_350 = arith.constant 0 : index
    %695 = vector.load %arg15[%c0_349, %c0_350] : memref<8x128xf32, #tpu.memory_space<vmem>>, vector<8x128xf32>
    tpu.vector_store %arg15[%c0_349, %c0_350], %694 {strides = array<i32>} : memref<8x128xf32, #tpu.memory_space<vmem>>, vector<8x128xf32>,
    %696 = vector.extract_strided_slice %693 {offsets = [0, 0], sizes = [8, 128], strides = [1, 1]} : vector<8x256xf32> to vector<8x128xf32>
    %697 = vector.broadcast %7 : vector<1x128xf32> to vector<8x128xf32>
    %698 = arith.addf %696, %697 : vector<8x128xf32>
    %c1_351 = arith.constant 1 : index
    %c0_352 = arith.constant 0 : index
    %c0_353 = arith.constant 0 : index
    %699 = vector.load %arg14[%c1_351, %c0_352, %c0_353] : memref<2x8x32xf32, #tpu.memory_space<vmem>>, vector<1x8x32xf32>
    %700 = vector.shape_cast %699 : vector<1x8x32xf32> to vector<8x32xf32>
    %701 = vector.extract_strided_slice %698 {offsets = [0, 0], sizes = [8, 32], strides = [1, 1]} : vector<8x128xf32> to vector<8x32xf32>
    %702 = arith.negf %701 : vector<8x32xf32>
    %703 = math.exp %702 : vector<8x32xf32>
    %cst_354 = arith.constant 1.000000e+00 : f32
    %704 = vector.broadcast %cst_354 : f32 to vector<8x32xf32>
    %705 = arith.addf %704, %703 : vector<8x32xf32>
    %706 = arith.divf %704, %705 : vector<8x32xf32>
    %707 = vector.extract_strided_slice %698 {offsets = [0, 32], sizes = [8, 32], strides = [1, 1]} : vector<8x128xf32> to vector<8x32xf32>
    %708 = arith.negf %707 : vector<8x32xf32>
    %709 = math.exp %708 : vector<8x32xf32>
    %cst_355 = arith.constant 1.000000e+00 : f32
    %710 = vector.broadcast %cst_355 : f32 to vector<8x32xf32>
    %711 = arith.addf %710, %709 : vector<8x32xf32>
    %712 = arith.divf %710, %711 : vector<8x32xf32>
    %713 = vector.extract_strided_slice %698 {offsets = [0, 64], sizes = [8, 32], strides = [1, 1]} : vector<8x128xf32> to vector<8x32xf32>
    %714 = math.tanh %713 : vector<8x32xf32>
    %715 = vector.extract_strided_slice %698 {offsets = [0, 96], sizes = [8, 32], strides = [1, 1]} : vector<8x128xf32> to vector<8x32xf32>
    %716 = arith.negf %715 : vector<8x32xf32>
    %717 = math.exp %716 : vector<8x32xf32>
    %cst_356 = arith.constant 1.000000e+00 : f32
    %718 = vector.broadcast %cst_356 : f32 to vector<8x32xf32>
    %719 = arith.addf %718, %717 : vector<8x32xf32>
    %720 = arith.divf %718, %719 : vector<8x32xf32>
    %721 = arith.mulf %712, %700 : vector<8x32xf32>
    %722 = arith.mulf %706, %714 : vector<8x32xf32>
    %723 = arith.addf %721, %722 : vector<8x32xf32>
    %724 = math.tanh %723 : vector<8x32xf32>
    %725 = arith.mulf %720, %724 : vector<8x32xf32>
    %c1_357 = arith.constant 1 : index
    %c0_358 = arith.constant 0 : index
    %c0_359 = arith.constant 0 : index
    %726 = vector.load %arg13[%c1_357, %c0_358, %c0_359] : memref<2x8x32xf32, #tpu.memory_space<vmem>>, vector<1x8x32xf32>
    %727 = vector.shape_cast %726 : vector<1x8x32xf32> to vector<8x32xf32>
    %728 = vector.shape_cast %725 : vector<8x32xf32> to vector<1x8x32xf32>
    tpu.vector_store %arg13[%c1_357, %c0_358, %c0_359], %728 {strides = array<i32>} : memref<2x8x32xf32, #tpu.memory_space<vmem>>, vector<1x8x32xf32>,
    %c1_360 = arith.constant 1 : index
    %c0_361 = arith.constant 0 : index
    %c0_362 = arith.constant 0 : index
    %729 = vector.load %arg14[%c1_360, %c0_361, %c0_362] : memref<2x8x32xf32, #tpu.memory_space<vmem>>, vector<1x8x32xf32>
    %730 = vector.shape_cast %729 : vector<1x8x32xf32> to vector<8x32xf32>
    %731 = vector.shape_cast %723 : vector<8x32xf32> to vector<1x8x32xf32>
    tpu.vector_store %arg14[%c1_360, %c0_361, %c0_362], %731 {strides = array<i32>} : memref<2x8x32xf32, #tpu.memory_space<vmem>>, vector<1x8x32xf32>,
    %732 = arith.truncf %725 : vector<8x32xf32> to vector<8x32xbf16>
    %c0_363 = arith.constant 0 : index
    %c7_364 = arith.constant 7 : index
    %c0_365 = arith.constant 0 : index
    %733 = vector.load %arg10[%c0_363, %c7_364, %c0_365] : memref<8x8x32xbf16, #tpu.memory_space<vmem>>, vector<8x1x32xbf16>
    %734 = vector.shape_cast %733 : vector<8x1x32xbf16> to vector<8x32xbf16>
    %735 = vector.shape_cast %732 : vector<8x32xbf16> to vector<8x1x32xbf16>
    tpu.vector_store %arg10[%c0_363, %c7_364, %c0_365], %735 {strides = array<i32>} : memref<8x8x32xbf16, #tpu.memory_space<vmem>>, vector<8x1x32xbf16>,
    %c0_i32_366 = arith.constant 0 : i32
    %736 = arith.cmpi eq, %arg1, %c0_i32_366 : i32
    %737 = arith.extui %736 : i1 to i32
    %c0_i32_367 = arith.constant 0 : i32
    %738 = arith.cmpi ne, %737, %c0_i32_367 : i32
    scf.if %738 {
      %c0_368 = arith.constant 0 : index
      %c0_369 = arith.constant 0 : index
      %c0_370 = arith.constant 0 : index
      %739 = vector.load %arg13[%c0_368, %c0_369, %c0_370] : memref<2x8x32xf32, #tpu.memory_space<vmem>>, vector<2x8x32xf32>
      %c0_371 = arith.constant 0 : index
      %c0_372 = arith.constant 0 : index
      %c0_373 = arith.constant 0 : index
      %740 = vector.load %arg11[%c0_371, %c0_372, %c0_373] : memref<2x8x32xf32, #tpu.memory_space<vmem>>, vector<2x8x32xf32>
      tpu.vector_store %arg11[%c0_371, %c0_372, %c0_373], %739 {strides = array<i32>} : memref<2x8x32xf32, #tpu.memory_space<vmem>>, vector<2x8x32xf32>,
      %c0_374 = arith.constant 0 : index
      %c0_375 = arith.constant 0 : index
      %c0_376 = arith.constant 0 : index
      %741 = vector.load %arg14[%c0_374, %c0_375, %c0_376] : memref<2x8x32xf32, #tpu.memory_space<vmem>>, vector<2x8x32xf32>
      %c0_377 = arith.constant 0 : index
      %c0_378 = arith.constant 0 : index
      %c0_379 = arith.constant 0 : index
      %742 = vector.load %arg12[%c0_377, %c0_378, %c0_379] : memref<2x8x32xf32, #tpu.memory_space<vmem>>, vector<2x8x32xf32>
      tpu.vector_store %arg12[%c0_377, %c0_378, %c0_379], %741 {strides = array<i32>} : memref<2x8x32xf32, #tpu.memory_space<vmem>>, vector<2x8x32xf32>,
    } else {
    }
    return
  }
  func.func @transform_0(%arg0: i32, %arg1: i32) -> (i32, i32, i32) {
    %c0_i32 = arith.constant 0 : i32
    %c0_i32_0 = arith.constant 0 : i32
    return %arg1, %arg0, %c0_i32 : i32, i32, i32
  }
  func.func @transform_1(%arg0: i32, %arg1: i32) -> (i32, i32) {
    %c0_i32 = arith.constant 0 : i32
    %c0_i32_0 = arith.constant 0 : i32
    return %arg0, %c0_i32 : i32, i32
  }
  func.func @transform_2(%arg0: i32, %arg1: i32) -> (i32, i32) {
    %c0_i32 = arith.constant 0 : i32
    %c0_i32_0 = arith.constant 0 : i32
    %c0_i32_1 = arith.constant 0 : i32
    return %c0_i32, %c0_i32_0 : i32, i32
  }
  func.func @transform_3(%arg0: i32, %arg1: i32) -> (i32, i32) {
    %c0_i32 = arith.constant 0 : i32
    %c0_i32_0 = arith.constant 0 : i32
    %c0_i32_1 = arith.constant 0 : i32
    return %c0_i32, %c0_i32_0 : i32, i32
  }
  func.func @transform_4(%arg0: i32, %arg1: i32) -> (i32, i32, i32) {
    %c0_i32 = arith.constant 0 : i32
    %c0_i32_0 = arith.constant 0 : i32
    %c0_i32_1 = arith.constant 0 : i32
    %c0_i32_2 = arith.constant 0 : i32
    return %c0_i32, %c0_i32_0, %c0_i32_1 : i32, i32, i32
  }
  func.func @transform_5(%arg0: i32, %arg1: i32) -> (i32, i32, i32) {
    %c0_i32 = arith.constant 0 : i32
    %c0_i32_0 = arith.constant 0 : i32
    %c0_i32_1 = arith.constant 0 : i32
    %c0_i32_2 = arith.constant 0 : i32
    return %c0_i32, %c0_i32_0, %c0_i32_1 : i32, i32, i32
  }
  func.func @transform_6(%arg0: i32, %arg1: i32) -> (i32, i32, i32) {
    %c0_i32 = arith.constant 0 : i32
    %c0_i32_0 = arith.constant 0 : i32
    %c0_i32_1 = arith.constant 0 : i32
    return %c0_i32, %arg0, %c0_i32_0 : i32, i32, i32
  }
  func.func @transform_7(%arg0: i32, %arg1: i32) -> (i32, i32, i32) {
    %c0_i32 = arith.constant 0 : i32
    %c0_i32_0 = arith.constant 0 : i32
    %c0_i32_1 = arith.constant 0 : i32
    return %c0_i32, %arg0, %c0_i32_0 : i32, i32, i32
  }
  func.func @transform_8(%arg0: i32, %arg1: i32) -> (i32, i32, i32) {
    %c0_i32 = arith.constant 0 : i32
    %c0_i32_0 = arith.constant 0 : i32
    return %arg0, %arg1, %c0_i32 : i32, i32, i32
  }
  func.func @transform_9(%arg0: i32, %arg1: i32) -> (i32, i32, i32) {
    %c0_i32 = arith.constant 0 : i32
    %c0_i32_0 = arith.constant 0 : i32
    %c0_i32_1 = arith.constant 0 : i32
    return %c0_i32, %arg0, %c0_i32_0 : i32, i32, i32
  }
  func.func @transform_10(%arg0: i32, %arg1: i32) -> (i32, i32, i32) {
    %c0_i32 = arith.constant 0 : i32
    %c0_i32_0 = arith.constant 0 : i32
    %c0_i32_1 = arith.constant 0 : i32
    return %c0_i32, %arg0, %c0_i32_0 : i32, i32, i32
  }
}

</mosaic_0001>

<bundles_post_ra>
// kernel: tpu_custom_call.1
= control target key start
LH: loop header
LB: loop body
LE: loop exit
PB: predicated region body
PF: predicated region fallthrough
CT: control target
= control target key end

     0   :  { %16 = vsyncpa [#allocation7], 0  ;;  %s4342_s0 = inlined_call_operand.hbm [shape: bf16[8,8,128], index: 0, kind: input, shape index: {}]   ;;  %s4343_s1 = inlined_call_operand.hbm [shape: f32[8,128], index: 1, kind: input, shape index: {}]   ;;  %s4344_s2 = inlined_call_operand.hbm [shape: bf16[32,128], index: 2, kind: input, shape index: {}]   ;;  %s4345_s3 = inlined_call_operand.hbm [shape: bf16[96,256], index: 3, kind: input, shape index: {}]   ;;  %s4346_s4 = inlined_call_operand.hbm [shape: bf16[1,64,128], index: 4, kind: input, shape index: {}]   ;;  %s4347_s5 = inlined_call_operand.vmem [shape: f32[2,1,128], index: 5, kind: input, shape index: {}]   ;;  %s4348_s6 = inlined_call_operand.vmem [shape: f32[2,8,32], index: 6, kind: input, shape index: {}]   ;;  %s4349_s7 = inlined_call_operand.hbm [shape: f32[2,8,32], index: 7, kind: input, shape index: {}]   ;;  %s4350_s8 = inlined_call_operand.hbm [shape: bf16[8,8,32], index: 8, kind: output, shape index: {0}]   ;;  %s4351_s9 = inlined_call_operand.hbm [shape: f32[2,8,32], index: 9, kind: output, shape index: {1}]   ;;  %s4352_s10 = inlined_call_operand.hbm [shape: f32[2,8,32], index: 10, kind: output, shape index: {2}]  }
   0x1   :  { %17 = vsyncpa [#allocation10], 0 }
   0x2   :  { %18 = vsyncpa [#allocation13], 0 }
   0x3   :  { %19 = vsyncpa [#allocation16], 0 }
   0x4   :  { %20 = vsyncpa [#allocation8], 0 }
   0x5   :  { %21 = vsyncpa [#allocation19], 0  ;;  %s3172_s13 = smov [#allocation9]   ;;  %s3173_s15 = smov [#allocation12]  }
   0x6   :  { %s40_s14 = sshll.u32 %s3172_s13, 4  ;;  %s61_s16 = sshll.u32 %s3173_s15, 4  ;;  %s41_s14 = int_to_ptr.vmem [resolvable:$true] %s40_s14  ;;  %s3245_s16 = int_to_ptr.vmem [resolvable:$true] %s61_s16 }
   0x7   :  { %s2962_s19 = scalar_lea.hbm %s4343_s1, 128 }
   0x8   :  { %p2963_p0 = scmp.ne.s32.totalorder %s4343_s1, %s2962_s19  ;;  %p2966_p1 = scmp.lt.u32.totalorder %s2962_s19, %s4343_s1 }
   0xa   :  { %p2968_p2 = pnand %p2966_p1, %p2963_p0 }
   0xc   :  { %2971 = shalt.err (!%p2968_p2)
}
   0xd   :  { %s2972_s24 = scalar_lea.vmem %s41_s14, 128  ;;  %p2977_p4 = scmp.lt.s32.totalorder %s41_s14, %s41_s14 }
   0xe   :  { %p2973_p3 = scmp.ne.s32.totalorder %s41_s14, %s2972_s24  ;;  %p2978_p5 = scmp.lt.s32.totalorder %s2972_s24, %s2972_s24 }
  0x10   :  { %p2979_p6 = por %p2978_p5, %p2977_p4 }
  0x12   :  { %p2980_p7 = pnand %p2979_p6, %p2973_p3 }
  0x14   :  { %2983 = shalt.err (!%p2980_p7)
}
  0x15   :  { %43 = dma.hbm_to_vmem [thread:$0]  %s4343_s1, 128, %s41_s14, [#allocation10]  }
  0x16   :  { %s2984_s29 = scalar_lea.hbm %s4345_s3, 1536 }
  0x17   :  { %p2985_p8 = scmp.ne.s32.totalorder %s4345_s3, %s2984_s29  ;;  %p2988_p9 = scmp.lt.u32.totalorder %s2984_s29, %s4345_s3 }
  0x19   :  { %p2990_p10 = pnand %p2988_p9, %p2985_p8 }
  0x1b   :  { %2993 = shalt.err (!%p2990_p10)
}
  0x1c   :  { %s2994_s15 = scalar_lea.vmem %s3245_s16, 1536  ;;  %p2999_p12 = scmp.lt.s32.totalorder %s3245_s16, %s3245_s16 }
  0x1d   :  { %p2995_p11 = scmp.ne.s32.totalorder %s3245_s16, %s2994_s15  ;;  %p3000_p13 = scmp.lt.s32.totalorder %s2994_s15, %s2994_s15 }
  0x1f   :  { %p3001_p0 = por %p3000_p13, %p2999_p12 }
  0x21   :  { %p3002_p1 = pnand %p3001_p0, %p2995_p11 }
  0x23   :  { %3005 = shalt.err (!%p3002_p1)
}
  0x24   :  { %s3174_s1 = smov 128   ;;  %s3175_s14 = smov 8  }
  0x25   :  { %67 = dma.hbm_to_vmem [thread:$0]  %s4345_s3, 1536, %s3245_s16, [#allocation13], %s3174_s1, %s3174_s1, %s3175_s14  }
  0x26   :  { %s3176_s19 = smov [#allocation6]   ;;  %s3006_s23 = scalar_lea.hbm %s4342_s0, 512 }
  0x27   :  { %s27_s20 = sshll.u32 %s3176_s19, 4  ;;  %p3007_p2 = scmp.ne.s32.totalorder %s4342_s0, %s3006_s23  ;;  %s28_s20 = int_to_ptr.vmem [resolvable:$true] %s27_s20 }
  0x28   :  { %p3010_p3 = scmp.lt.u32.totalorder %s3006_s23, %s4342_s0 }
  0x2a   :  { %p3012_p4 = pnand %p3010_p3, %p3007_p2 }
  0x2c   :  { %3015 = shalt.err (!%p3012_p4)
}
  0x2d   :  { %s3016_s28 = scalar_lea.vmem %s28_s20, 512  ;;  %p3021_p6 = scmp.lt.s32.totalorder %s28_s20, %s28_s20 }
  0x2e   :  { %p3017_p5 = scmp.ne.s32.totalorder %s28_s20, %s3016_s28  ;;  %p3022_p7 = scmp.lt.s32.totalorder %s3016_s28, %s3016_s28 }
  0x30   :  { %p3023_p8 = por %p3022_p7, %p3021_p6 }
  0x32   :  { %p3024_p9 = pnand %p3023_p8, %p3017_p5 }
  0x34   :  { %3027 = shalt.err (!%p3024_p9)
}
  0x35   :  { %s3177_s3 = smov 64   ;;  %s3178_s16 = smov 4  }
  0x36   :  { %33 = dma.hbm_to_vmem [thread:$0]  %s4342_s0, 512, %s28_s20, [#allocation7], %s3177_s3, %s3177_s3, %s3178_s16  }
  0x37   :  { %s3179_s11 = smov [#allocation11]   ;;  %s3180_s13 = smov [#allocation14]  }
  0x38   :  { %s49_s12 = sshll.u32 %s3179_s11, 4  ;;  %s73_s15 = sshll.u32 %s3180_s13, 4  ;;  %s50_s12 = int_to_ptr.vmem [resolvable:$true] %s49_s12  ;;  %s74_s15 = int_to_ptr.vmem [resolvable:$true] %s73_s15 }
  0x39   :  { %s3028_s19 = scalar_lea.hbm %s4344_s2, 256 }
  0x3a   :  { %p3029_p10 = scmp.ne.s32.totalorder %s4344_s2, %s3028_s19  ;;  %p3032_p11 = scmp.lt.u32.totalorder %s3028_s19, %s4344_s2 }
  0x3c   :  { %p3034_p12 = pnand %p3032_p11, %p3029_p10 }
  0x3e   :  { %3037 = shalt.err (!%p3034_p12)
}
  0x3f   :  { %s3038_s0 = scalar_lea.vmem %s50_s12, 256  ;;  %p3043_p0 = scmp.lt.s32.totalorder %s50_s12, %s50_s12 }
  0x40   :  { %p3039_p13 = scmp.ne.s32.totalorder %s50_s12, %s3038_s0  ;;  %p3044_p1 = scmp.lt.s32.totalorder %s3038_s0, %s3038_s0 }
  0x42   :  { %p3045_p2 = por %p3044_p1, %p3043_p0 }
  0x44   :  { %p3046_p3 = pnand %p3045_p2, %p3039_p13 }
  0x46   :  { %3049 = shalt.err (!%p3046_p3)
}
  0x47   :  { %55 = dma.hbm_to_vmem [thread:$0]  %s4344_s2, 256, %s50_s12, [#allocation10], %s3177_s3, %s3177_s3, %s3178_s16  }
  0x48   :  { %s3050_s28 = scalar_lea.hbm %s4346_s4, 512 }
  0x49   :  { %p3051_p4 = scmp.ne.s32.totalorder %s4346_s4, %s3050_s28  ;;  %p3054_p5 = scmp.lt.u32.totalorder %s3050_s28, %s4346_s4 }
  0x4b   :  { %p3056_p6 = pnand %p3054_p5, %p3051_p4 }
  0x4d   :  { %3059 = shalt.err (!%p3056_p6)
}
  0x4e   :  { %s3060_s17 = scalar_lea.vmem %s74_s15, 512  ;;  %p3065_p8 = scmp.lt.s32.totalorder %s74_s15, %s74_s15 }
  0x4f   :  { %p3061_p7 = scmp.ne.s32.totalorder %s74_s15, %s3060_s17  ;;  %p3066_p9 = scmp.lt.s32.totalorder %s3060_s17, %s3060_s17 }
  0x51   :  { %p3067_p10 = por %p3066_p9, %p3065_p8 }
  0x53   :  { %p3068_p11 = pnand %p3067_p10, %p3061_p7 }
  0x55   :  { %3071 = shalt.err (!%p3068_p11)
}
  0x56   :  { %79 = dma.hbm_to_vmem [thread:$0]  %s4346_s4, 512, %s74_s15, [#allocation13], %s3177_s3, %s3177_s3, %s3178_s16  }
  0x57   :  { %s3181_s18 = smov [#allocation15]   ;;  %s3072_s23 = scalar_lea.hbm %s4349_s7, 256 }
  0x58   :  { %s89_s19 = sshll.u32 %s3181_s18, 4  ;;  %p3073_p12 = scmp.ne.s32.totalorder %s4349_s7, %s3072_s23  ;;  %s90_s19 = int_to_ptr.vmem [resolvable:$true] %s89_s19 }
  0x59   :  { %p3076_p13 = scmp.lt.u32.totalorder %s3072_s23, %s4349_s7 }
  0x5b   :  { %p3078_p0 = pnand %p3076_p13, %p3073_p12 }
  0x5d   :  { %3081 = shalt.err (!%p3078_p0)
}
  0x5e   :  { %s3082_s26 = scalar_lea.vmem %s90_s19, 256  ;;  %p3087_p2 = scmp.lt.s32.totalorder %s90_s19, %s90_s19 }
  0x5f   :  { %p3083_p1 = scmp.ne.s32.totalorder %s90_s19, %s3082_s26  ;;  %p3088_p3 = scmp.lt.s32.totalorder %s3082_s26, %s3082_s26 }
  0x61   :  { %p3089_p4 = por %p3088_p3, %p3087_p2 }
  0x63   :  { %p3090_p5 = pnand %p3089_p4, %p3083_p1 }
  0x65   :  { %3093 = shalt.err (!%p3090_p5)
}
  0x66   :  { %95 = dma.hbm_to_vmem [thread:$0]  %s4349_s7, 256, %s90_s19, [#allocation16], %s3174_s1, %s3174_s1, %s3175_s14  }
  0x67   :  { %3160 = dma.done.wait [#allocation7], 512  }
  0x68   :  { %3161 = vsyncadd [#allocation7], 4294966784 }
  0x69   :  { %3162 = dma.done.wait [#allocation10], 384  }
  0x6a   :  { %3163 = vsyncadd [#allocation10], 4294966912 }
  0x6b   :  { %3164 = dma.done.wait [#allocation13], 2048  }
  0x6c   :  { %3165 = vsyncadd [#allocation13], 4294965248 }
  0x6d   :  { %3166 = dma.done.wait [#allocation16], 256  }
  0x6e   :  { %3167 = vsyncadd [#allocation16], 4294967040  ;;  %vm121_vm0 = vcmask 261120   ;;  %v128_v0 = vld [vmem:[#allocation9] sm:$0xff]  ;;  %v3342_v1 = vld [vmem:[%s4347_s5] ss:$0 sm:$0xff] }
  0x6f   :  { %v3344_v2 = vld [vmem:[#allocation6] sm:$0xff]   ;;  %v124_v4 = vld [vmem:[#allocation15] sm:$0xff]  ;;  %s3182_s7 = smov 32   ;;  %v3360_v24 = vld [vmem:[#allocation12 + $0x14] ss:$8 sps:$4 sm:$0xff]   ;;  %v3183_v38 = vmov 0  }
  0x70   :  { %v146_v3 = vunpack.c.l.bf16 %v3344_v2  ;;  %126 = vst.msk [vmem:[#allocation3] sm:$0xff] %vm121_vm0, %v124_v4  ;;  %v120_v17 = vld [vmem:[%s4348_s6 + $0x8] sm:$0xff]  ;;  %v3358_v23 = vld [vmem:[#allocation12] ss:$8 sps:$4 sm:$0xff]   ;;  %v3382_v29 = vld [vmem:[#allocation12 + $0x34] ss:$8 sps:$4 sm:$0xff]   ;;  %318 = vmatprep.mubr.bf16.mxu0 %v3183_v38  ;;  %626 = vmatprep.mubr.bf16.mxu1 %v3183_v38  ;;  %v526_v46 = vunpack.c.h.bf16 %v3344_v2 }
  0x71   :  { %123 = vst.msk [vmem:[#allocation2 + $0x8] sm:$0xff] %vm121_vm0, %v120_v17  ;;  %v3356_v22 = vld [vmem:[#allocation12 + $0x4] ss:$8 sps:$4 sm:$0xff]   ;;  %v3366_v26 = vld [vmem:[#allocation12 + $0x10] ss:$8 sps:$4 sm:$0xff]   ;;  %s3184_s11 = smov 96  }
  0x72   :  { %v148_v5 = vadd.f32 %v146_v3, %v128_v0  ;;  %286 = vmatprep.subr.bf16.mxu0 %v3356_v22  ;;  %594 = vmatprep.subr.bf16.mxu1 %v3356_v22  ;;  %v3370_v27 = vld [vmem:[#allocation12 + $0x24] ss:$8 sps:$4 sm:$0xff]   ;;  %v3375_v28 = vld [vmem:[#allocation12 + $0x20] ss:$8 sps:$4 sm:$0xff]   ;;  %v3384_v30 = vld [vmem:[#allocation12 + $0x30] ss:$8 sps:$4 sm:$0xff]  }
  0x73   :  { %287 = vmatpush1.bf16.msra.mxu0 %v3358_v23  ;;  %595 = vmatpush1.bf16.msra.mxu1 %v3358_v23  ;;  %v3390_v31 = vld [vmem:[#allocation12 + $0x44] ss:$8 sps:$4 sm:$0xff]   ;;  %v3392_v32 = vld [vmem:[#allocation12 + $0x40] ss:$8 sps:$4 sm:$0xff]   ;;  %v3398_v33 = vld [vmem:[#allocation12 + $0x54] ss:$8 sps:$4 sm:$0xff]  }
  0x74   :  { %v155_v6 = vadd.f32 %v3342_v1, %v148_v5  ;;  %288 = vmatprep.subr.bf16.mxu0 %v3360_v24  ;;  %596 = vmatprep.subr.bf16.mxu1 %v3360_v24  ;;  %v3400_v34 = vld [vmem:[#allocation12 + $0x50] ss:$8 sps:$4 sm:$0xff]   ;;  %vm203_vm1 = vcmask 257024   ;;  %vm214_vm2 = vcmask 519424   ;;  %vm219_vm3 = vcmask 781824   ;;  %v125_v44 = vld [vmem:[#allocation15 + $0x8] sm:$0xff] }
  0x75   :  { %vm282_vm4 = vcmask 785408   ;;  %127 = vst.msk [vmem:[#allocation3 + $0x8] sm:$0xff] %vm121_vm0, %v125_v44  ;;  %v3439_v45 = vld [vmem:[%s4347_s5 + $0x1] ss:$0 sm:$0xff]  ;;  %vm497_vm5 = vcmask 253952   ;;  %vm1098_vm10 = vcmask 254977  }
  0x76   :  { %2828 = vtanh.f32 %v155_v6  ;;  %v2691_v9 = vmul.f32 -1.442695, %v155_v6  ;;  %vm498_vm6 = vsmask.f32 256  ;;  %vm798_vm8 = vsmask.f32 7938 }
  0x77   :  { %v156_v8 = vld [vmem:[#allocation3] sm:$0xff]  ;;  %289 = vmatpush1.bf16.msra.mxu0 %v3366_v26  ;;  %597 = vmatpush1.bf16.msra.mxu1 %v3366_v26  ;;  %vm3866_vm7 = vmand %vm497_vm5, %vm498_vm6  ;;  %vm1099_vm11 = vsmask.f32 1280  ;;  %vm1399_vm13 = vsmask.f32 7942  ;;  %vm1699_vm15 = vcmask 256002  }
  0x78   :  { %2830 = vpow2.f32 %v2691_v9  ;;  %v206_v20 = vld [vmem:[#allocation2 + $0x8] sm:$0xff]  ;;  %290 = vmatprep.subr.bf16.mxu0 %v3370_v27  ;;  %598 = vmatprep.subr.bf16.mxu1 %v3370_v27  ;;  %vm3878_vm9 = vmand %vm497_vm5, %vm798_vm8  ;;  %vm2000_vm6 = vsmask.f32 7946  ;;  %vm2601_vm8 = vsmask.f32 7950  ;;  %s3188_s23 = smov [#allocation20]  }
  0x79   :  { %v2777_v25 = vpack.c.bf16 %v206_v20, %v206_v20  ;;  %vm3891_vm12 = vmand %vm1098_vm10, %vm1099_vm11  ;;  %s2667_s24 = sshll.u32 %s3188_s23, 4  ;;  %s4273_s24 = int_to_ptr.vmem [resolvable:$true] %s2667_s24 }
  0x7a   :  { %vm4128_vm14 = vmand %vm1098_vm10, %vm1399_vm13 }
  0x7b   :  { %291 = vmatpush1.bf16.msra.mxu0 %v3375_v28  ;;  %599 = vmatpush1.bf16.msra.mxu1 %v3375_v28 }
  0x7c   :  { %292 = vmatprep.subr.bf16.mxu0 %v3382_v29  ;;  %600 = vmatprep.subr.bf16.mxu1 %v3382_v29  ;;  %v336_v55 = vld [vmem:[#allocation3 + $0x8] sm:$0xff] }
  0x7f   :  { %293 = vmatpush1.bf16.msra.mxu0 %v3384_v30  ;;  %601 = vmatpush1.bf16.msra.mxu1 %v3384_v30 }
  0x80   :  { %v2829_v7 = vpop.eup %2828  ;;  %294 = vmatprep.subr.bf16.mxu0 %v3390_v31  ;;  %602 = vmatprep.subr.bf16.mxu1 %v3390_v31 }
  0x81   :  { %170 = vrot.lane.b32.xlu0 %v2829_v7, %s3177_s3 }
  0x82   :  { %v2831_v10 = vpop.eup %2830 }
  0x83   :  { %v160_v11 = vadd.f32 1.0, %v2831_v10  ;;  %295 = vmatpush1.bf16.msra.mxu0 %v3392_v32  ;;  %603 = vmatpush1.bf16.msra.mxu1 %v3392_v32 }
  0x84   :  { %296 = vmatprep.subr.bf16.mxu0 %v3398_v33  ;;  %604 = vmatprep.subr.bf16.mxu1 %v3398_v33 }
  0x85   :  { %165 = vrot.lane.b32.xlu0 %v156_v8, %s3182_s7  ;;  %2832 = vrcp.f32 %v160_v11 }
  0x87   :  { %297 = vmatpush1.bf16.msra.mxu0 %v3400_v34  ;;  %605 = vmatpush1.bf16.msra.mxu1 %v3400_v34 }
  0x88   :  { %894 = vmatprep.subr.bf16.mxu0 %v3356_v22  ;;  %1195 = vmatprep.subr.bf16.mxu1 %v3356_v22 }
  0x8f   :  { %v2833_v12 = vpop.eup %2832 }
  0xf3   :  { %v171_v13 = vpop.permute.xlu0 %170 }
  0xf4   :  { %v173_v14 = vmul.f32 %v2833_v12, %v171_v13 }
  0xf6   :  { %175 = vrot.lane.b32.xlu1 %v173_v14, %s3182_s7 }
  0xf7   :  { %v166_v15 = vpop.permute.xlu0 %165 }
  0xf8   :  { %v168_v16 = vmul.f32 %v2833_v12, %v166_v15 }
 0x168   :  { %v176_v18 = vpop.permute.xlu1 %175 }
 0x169   :  { %v178_v19 = vadd.f32 %v176_v18, %v168_v16 }
 0x16b   :  { %2834 = vtanh.f32 %v178_v19 }
 0x175   :  { %v2835_v21 = vpop.eup %2834 }
 0x176   :  { %181 = vrot.lane.b32.xlu1 %v2835_v21, %s3177_s3 }
 0x17a   :  { %211 = vrot.lane.b32.xlu1 %v2777_v25, %s3182_s7 }
 0x1e8   :  { %v182_v35 = vpop.permute.xlu1 %181 }
 0x1e9   :  { %v3404_v36 = vmul.f32 %v2833_v12, %v182_v35 }
 0x1eb   :  { %v2776_v37 = vpack.c.bf16 %v3404_v36, %v3404_v36 }
 0x1ec   :  { %v212_v39 = vpop.permute.xlu1 %211 }
 0x1ed   :  { %200 = vrot.lane.b32.xlu0 %v2776_v37, %s3182_s7 }
 0x1f1   :  { %216 = vrot.lane.b32.xlu0 %v2776_v37, %s3184_s11 }
 0x1f5   :  { %192 = vrot.lane.b32.xlu0 %v178_v19, %s3184_s11 }
 0x25f   :  { %v201_v40 = vpop.permute.xlu0 %200 }
 0x260   :  { %204 = vst.msk [vmem:[#allocation5] sm:$0xf] %vm203_vm1, %v201_v40 }
 0x261   :  { %215 = vst.msk [vmem:[#allocation5] sm:$0xf] %vm214_vm2, %v212_v39 }
 0x263   :  { %v217_v41 = vpop.permute.xlu0 %216 }
 0x264   :  { %220 = vst.msk [vmem:[#allocation5] sm:$0xf] %vm219_vm3, %v217_v41 }
 0x267   :  { %v193_v42 = vpop.permute.xlu0 %192 }
 0x268   :  { %195 = vst.msk [vmem:[#allocation3] sm:$0xff] %vm121_vm0, %v193_v42 }
 0x26b   :  { %v221_v43 = vld [vmem:[#allocation5] sm:$0xf] }
 0x26c   :  { %2706 = vmatmul.mubr.msk.bf16.vlgmr.msra.gmra.mrb[0].mxu0 %vm282_vm4, %v221_v43 }
 0x26d   :  { %895 = vmatpush1.bf16.msra.mxu0 %v3358_v23  ;;  %926 = vmatprep.mubr.bf16.mxu0 %v3183_v38 }
 0x26e   :  { %896 = vmatprep.subr.bf16.mxu0 %v3360_v24 }
 0x26f   :  { %v530_v4 = vld [vmem:[#allocation3] sm:$0xff] }
 0x271   :  { %897 = vmatpush1.bf16.msra.mxu0 %v3366_v26 }
 0x272   :  { %898 = vmatprep.subr.bf16.mxu0 %v3370_v27 }
 0x275   :  { %899 = vmatpush1.bf16.msra.mxu0 %v3375_v28 }
 0x276   :  { %900 = vmatprep.subr.bf16.mxu0 %v3382_v29 }
 0x279   :  { %901 = vmatpush1.bf16.msra.mxu0 %v3384_v30 }
 0x27a   :  { %902 = vmatprep.subr.bf16.mxu0 %v3390_v31 }
 0x27d   :  { %903 = vmatpush1.bf16.msra.mxu0 %v3392_v32 }
 0x27e   :  { %904 = vmatprep.subr.bf16.mxu0 %v3398_v33 }
 0x281   :  { %905 = vmatpush1.bf16.msra.mxu0 %v3400_v34 }
 0x282   :  { %1495 = vmatprep.subr.bf16.mxu0 %v3356_v22 }
 0x33f   :  { %v320_v47 = vpop.f32.mrb[0].mxu0 }
 0x340   :  { %v334_v48 = vadd.f32 %v3439_v45, %v320_v47  ;;  %v322_v49 = vpop.f32.mrb[1].mxu0 }
 0x341   :  { %v324_v50 = vpop.f32.mrb[2].mxu0  ;;  %v528_v51 = vadd.f32 %v526_v46, %v322_v49  ;;  %v3485_v46 = vld [vmem:[#allocation6 + $0x8] sm:$0xff]  }
 0x342   :  { %2836 = vtanh.f32 %v334_v48  ;;  %v325_v52 = vpop.f32.mrb[3].mxu0  ;;  %v2708_v57 = vmul.f32 -1.442695, %v334_v48  ;;  %v826_v47 = vunpack.c.l.bf16 %v3485_v46 }
 0x343   :  { %v529_v53 = vadd.f32 %v3342_v1, %v528_v51 }
 0x345   :  { %2838 = vtanh.f32 %v529_v53  ;;  %v2713_v58 = vmul.f32 -1.442695, %v529_v53 }
 0x346   :  { %2840 = vpow2.f32 %v2708_v57 }
 0x347   :  { %2842 = vpow2.f32 %v2713_v58 }
 0x34c   :  { %v2837_v54 = vpop.eup %2836 }
 0x34d   :  { %350 = vrot.lane.b32.xlu1 %v2837_v54, %s3177_s3 }
 0x34f   :  { %v2839_v56 = vpop.eup %2838 }
 0x350   :  { %v2841_v59 = vpop.eup %2840 }
 0x351   :  { %345 = vrot.lane.b32.xlu1 %v336_v55, %s3182_s7  ;;  %v340_v60 = vadd.f32 1.0, %v2841_v59  ;;  %v2843_v61 = vpop.eup %2842 }
 0x352   :  { %v534_v62 = vadd.f32 1.0, %v2843_v61 }
 0x353   :  { %2844 = vrcp.f32 %v340_v60 }
 0x354   :  { %2846 = vrcp.f32 %v534_v62 }
 0x355   :  { %544 = vrot.lane.b32.xlu1 %v2839_v56, %s3177_s3 }
 0x35d   :  { %v2845_v63 = vpop.eup %2844 }
 0x35e   :  { %v2847_v5 = vpop.eup %2846 }
 0x3bf   :  { %v351_v0 = vpop.permute.xlu1 %350 }
 0x3c0   :  { %v353_v2 = vmul.f32 %v2845_v63, %v351_v0 }
 0x3c2   :  { %355 = vrot.lane.b32.xlu0 %v353_v2, %s3182_s7 }
 0x3c3   :  { %v346_v3 = vpop.permute.xlu1 %345 }
 0x3c4   :  { %v348_v8 = vmul.f32 %v2845_v63, %v346_v3 }
 0x3c6   :  { %539 = vrot.lane.b32.xlu0 %v530_v4, %s3182_s7 }
 0x3c7   :  { %v545_v6 = vpop.permute.xlu1 %544 }
 0x3c8   :  { %v547_v7 = vmul.f32 %v2847_v5, %v545_v6 }
 0x3ca   :  { %549 = vrot.lane.b32.xlu1 %v547_v7, %s3182_s7 }
 0x434   :  { %v356_v9 = vpop.permute.xlu0 %355 }
 0x435   :  { %v358_v10 = vadd.f32 %v356_v9, %v348_v8 }
 0x437   :  { %2848 = vtanh.f32 %v358_v10 }
 0x438   :  { %v540_v11 = vpop.permute.xlu0 %539 }
 0x439   :  { %v542_v12 = vmul.f32 %v2847_v5, %v540_v11 }
 0x43c   :  { %v550_v13 = vpop.permute.xlu1 %549 }
 0x43d   :  { %v552_v14 = vadd.f32 %v550_v13, %v542_v12 }
 0x43f   :  { %2850 = vtanh.f32 %v552_v14 }
 0x441   :  { %v2849_v15 = vpop.eup %2848 }
 0x442   :  { %361 = vrot.lane.b32.xlu0 %v2849_v15, %s3177_s3 }
 0x449   :  { %v2851_v16 = vpop.eup %2850 }
 0x44a   :  { %555 = vrot.lane.b32.xlu0 %v2851_v16, %s3177_s3 }
 0x4b4   :  { %v362_v17 = vpop.permute.xlu0 %361 }
 0x4b5   :  { %v3452_v18 = vmul.f32 %v2845_v63, %v362_v17 }
 0x4b7   :  { %366 = vrot.lane.b32.xlu1 %v3452_v18, %s3182_s7 }
 0x4bc   :  { %v556_v19 = vpop.permute.xlu0 %555 }
 0x4bd   :  { %v3456_v20 = vmul.f32 %v2847_v5, %v556_v19 }
 0x4bf   :  { %v2778_v21 = vpack.c.bf16 %v3456_v20, %v3456_v20 }
 0x4c1   :  { %573 = vrot.lane.b32.xlu1 %v2778_v21, %s3182_s7 }
 0x4c5   :  { %586 = vrot.lane.b32.xlu1 %v2778_v21, %s3184_s11 }
 0x529   :  { %v367_v25 = vpop.permute.xlu1 %366 }
 0x52a   :  { %369 = vst.msk [vmem:[#allocation2 + $0x8] sm:$0xff] %vm121_vm0, %v367_v25 }
 0x531   :  { %v577_v35 = vld [vmem:[#allocation2 + $0x8] sm:$0xff] }
 0x532   :  { %v2779_v37 = vpack.c.bf16 %v577_v35, %v577_v35 }
 0x533   :  { %v574_v39 = vpop.permute.xlu1 %573 }
 0x534   :  { %576 = vst.msk [vmem:[#allocation5] sm:$0xf] %vm203_vm1, %v574_v39  ;;  %582 = vrot.lane.b32.xlu0 %v2779_v37, %s3182_s7 }
 0x537   :  { %v587_v41 = vpop.permute.xlu1 %586 }
 0x538   :  { %371 = vrot.lane.b32.xlu0 %v358_v10, %s3184_s11 }
 0x53c   :  { %565 = vrot.lane.b32.xlu0 %v552_v14, %s3184_s11 }
 0x5a6   :  { %v583_v40 = vpop.permute.xlu0 %582 }
 0x5a7   :  { %585 = vst.msk [vmem:[#allocation5] sm:$0xf] %vm214_vm2, %v583_v40 }
 0x5a8   :  { %589 = vst.msk [vmem:[#allocation5] sm:$0xf] %vm219_vm3, %v587_v41 }
 0x5aa   :  { %v372_v42 = vpop.permute.xlu0 %371 }
 0x5ab   :  { %374 = vst.msk [vmem:[#allocation3 + $0x8] sm:$0xff] %vm121_vm0, %v372_v42 }
 0x5ae   :  { %v566_v43 = vpop.permute.xlu0 %565 }
 0x5af   :  { %v590_v44 = vld [vmem:[#allocation5] sm:$0xf]  ;;  %568 = vst.msk [vmem:[#allocation3] sm:$0xff] %vm121_vm0, %v566_v43 }
 0x5b0   :  { %2716 = vmatmul.mubr.msk.bf16.vlgmr.msra.gmra.mrb[0].mxu1 %vm282_vm4, %v590_v44 }
 0x5b1   :  { %1196 = vmatpush1.bf16.msra.mxu1 %v3358_v23  ;;  %1227 = vmatprep.mubr.bf16.mxu1 %v3183_v38 }
 0x5b2   :  { %1197 = vmatprep.subr.bf16.mxu1 %v3360_v24  ;;  %v637_v56 = vld [vmem:[#allocation3 + $0x8] sm:$0xff] }
 0x5b5   :  { %1198 = vmatpush1.bf16.msra.mxu1 %v3366_v26 }
 0x5b6   :  { %1199 = vmatprep.subr.bf16.mxu1 %v3370_v27  ;;  %v830_v5 = vld [vmem:[#allocation3] sm:$0xff] }
 0x5b9   :  { %1200 = vmatpush1.bf16.msra.mxu1 %v3375_v28 }
 0x5ba   :  { %1201 = vmatprep.subr.bf16.mxu1 %v3382_v29 }
 0x5bd   :  { %1202 = vmatpush1.bf16.msra.mxu1 %v3384_v30 }
 0x5be   :  { %1203 = vmatprep.subr.bf16.mxu1 %v3390_v31 }
 0x5c1   :  { %1204 = vmatpush1.bf16.msra.mxu1 %v3392_v32 }
 0x5c2   :  { %1205 = vmatprep.subr.bf16.mxu1 %v3398_v33 }
 0x5c5   :  { %1206 = vmatpush1.bf16.msra.mxu1 %v3400_v34 }
 0x5c6   :  { %1796 = vmatprep.subr.bf16.mxu1 %v3356_v22 }
 0x683   :  { %v628_v48 = vpop.f32.mrb[0].mxu1 }
 0x684   :  { %v636_v49 = vadd.f32 %v3439_v45, %v628_v48  ;;  %v630_v50 = vpop.f32.mrb[1].mxu1 }
 0x685   :  { %v632_v51 = vpop.f32.mrb[2].mxu1  ;;  %v828_v52 = vadd.f32 %v826_v47, %v630_v50  ;;  %v1127_v50 = vunpack.c.h.bf16 %v3485_v46 }
 0x686   :  { %2852 = vtanh.f32 %v636_v49  ;;  %v633_v53 = vpop.f32.mrb[3].mxu1  ;;  %v2717_v58 = vmul.f32 -1.442695, %v636_v49 }
 0x687   :  { %v829_v54 = vadd.f32 %v3342_v1, %v828_v52 }
 0x689   :  { %2854 = vtanh.f32 %v829_v54  ;;  %v2722_v59 = vmul.f32 -1.442695, %v829_v54 }
 0x68a   :  { %2856 = vpow2.f32 %v2717_v58 }
 0x68b   :  { %2858 = vpow2.f32 %v2722_v59 }
 0x690   :  { %v2853_v55 = vpop.eup %2852 }
 0x691   :  { %651 = vrot.lane.b32.xlu1 %v2853_v55, %s3177_s3 }
 0x693   :  { %v2855_v57 = vpop.eup %2854 }
 0x694   :  { %v2857_v60 = vpop.eup %2856 }
 0x695   :  { %646 = vrot.lane.b32.xlu1 %v637_v56, %s3182_s7  ;;  %v641_v61 = vadd.f32 1.0, %v2857_v60  ;;  %v2859_v62 = vpop.eup %2858 }
 0x696   :  { %v834_v63 = vadd.f32 1.0, %v2859_v62 }
 0x697   :  { %2860 = vrcp.f32 %v641_v61 }
 0x698   :  { %2862 = vrcp.f32 %v834_v63 }
 0x699   :  { %844 = vrot.lane.b32.xlu1 %v2855_v57, %s3177_s3 }
 0x6a1   :  { %v2861_v0 = vpop.eup %2860 }
 0x6a2   :  { %v2863_v6 = vpop.eup %2862 }
 0x703   :  { %v652_v2 = vpop.permute.xlu1 %651 }
 0x704   :  { %v654_v3 = vmul.f32 %v2861_v0, %v652_v2 }
 0x706   :  { %656 = vrot.lane.b32.xlu0 %v654_v3, %s3182_s7 }
 0x707   :  { %v647_v4 = vpop.permute.xlu1 %646 }
 0x708   :  { %v649_v9 = vmul.f32 %v2861_v0, %v647_v4 }
 0x70a   :  { %839 = vrot.lane.b32.xlu0 %v830_v5, %s3182_s7 }
 0x70b   :  { %v845_v7 = vpop.permute.xlu1 %844 }
 0x70c   :  { %v847_v8 = vmul.f32 %v2863_v6, %v845_v7 }
 0x70e   :  { %849 = vrot.lane.b32.xlu1 %v847_v8, %s3182_s7 }
 0x778   :  { %v657_v10 = vpop.permute.xlu0 %656 }
 0x779   :  { %v659_v11 = vadd.f32 %v657_v10, %v649_v9 }
 0x77b   :  { %2864 = vtanh.f32 %v659_v11 }
 0x77c   :  { %v840_v12 = vpop.permute.xlu0 %839 }
 0x77d   :  { %v842_v13 = vmul.f32 %v2863_v6, %v840_v12 }
 0x780   :  { %v850_v14 = vpop.permute.xlu1 %849 }
 0x781   :  { %v852_v15 = vadd.f32 %v850_v14, %v842_v13 }
 0x783   :  { %2866 = vtanh.f32 %v852_v15 }
 0x785   :  { %v2865_v16 = vpop.eup %2864 }
 0x786   :  { %662 = vrot.lane.b32.xlu0 %v2865_v16, %s3177_s3 }
 0x78d   :  { %v2867_v17 = vpop.eup %2866 }
 0x78e   :  { %855 = vrot.lane.b32.xlu0 %v2867_v17, %s3177_s3 }
 0x7f8   :  { %v663_v19 = vpop.permute.xlu0 %662 }
 0x7f9   :  { %v3498_v21 = vmul.f32 %v2861_v0, %v663_v19 }
 0x7fb   :  { %667 = vrot.lane.b32.xlu1 %v3498_v21, %s3182_s7 }
 0x800   :  { %v856_v25 = vpop.permute.xlu0 %855 }
 0x801   :  { %v3502_v35 = vmul.f32 %v2863_v6, %v856_v25 }
 0x803   :  { %v2780_v37 = vpack.c.bf16 %v3502_v35, %v3502_v35 }
 0x805   :  { %873 = vrot.lane.b32.xlu1 %v2780_v37, %s3182_s7 }
 0x809   :  { %886 = vrot.lane.b32.xlu1 %v2780_v37, %s3184_s11 }
 0x86d   :  { %v668_v39 = vpop.permute.xlu1 %667 }
 0x86e   :  { %670 = vst.msk [vmem:[#allocation2 + $0x8] sm:$0xff] %vm121_vm0, %v668_v39 }
 0x875   :  { %v877_v40 = vld [vmem:[#allocation2 + $0x8] sm:$0xff] }
 0x876   :  { %v2781_v41 = vpack.c.bf16 %v877_v40, %v877_v40 }
 0x877   :  { %v874_v42 = vpop.permute.xlu1 %873 }
 0x878   :  { %876 = vst.msk [vmem:[#allocation5] sm:$0xf] %vm203_vm1, %v874_v42  ;;  %882 = vrot.lane.b32.xlu0 %v2781_v41, %s3182_s7 }
 0x87b   :  { %v887_v44 = vpop.permute.xlu1 %886 }
 0x87c   :  { %672 = vrot.lane.b32.xlu0 %v659_v11, %s3184_s11 }
 0x880   :  { %865 = vrot.lane.b32.xlu0 %v852_v15, %s3184_s11 }
 0x8ea   :  { %v883_v43 = vpop.permute.xlu0 %882 }
 0x8eb   :  { %885 = vst.msk [vmem:[#allocation5] sm:$0xf] %vm214_vm2, %v883_v43 }
 0x8ec   :  { %889 = vst.msk [vmem:[#allocation5] sm:$0xf] %vm219_vm3, %v887_v44 }
 0x8ee   :  { %v673_v47 = vpop.permute.xlu0 %672 }
 0x8ef   :  { %675 = vst.msk [vmem:[#allocation3 + $0x8] sm:$0xff] %vm121_vm0, %v673_v47 }
 0x8f2   :  { %v866_v48 = vpop.permute.xlu0 %865 }
 0x8f3   :  { %v890_v49 = vld [vmem:[#allocation5] sm:$0xf]  ;;  %868 = vst.msk [vmem:[#allocation3] sm:$0xff] %vm121_vm0, %v866_v48 }
 0x8f4   :  { %2725 = vmatmul.mubr.msk.bf16.vlgmr.msra.gmra.mrb[4].mxu0 %vm282_vm4, %v890_v49 }
 0x8f5   :  { %1496 = vmatpush1.bf16.msra.mxu0 %v3358_v23  ;;  %1527 = vmatprep.mubr.bf16.mxu0 %v3183_v38 }
 0x8f6   :  { %1497 = vmatprep.subr.bf16.mxu0 %v3360_v24  ;;  %v937_v59 = vld [vmem:[#allocation3 + $0x8] sm:$0xff] }
 0x8f9   :  { %1498 = vmatpush1.bf16.msra.mxu0 %v3366_v26 }
 0x8fa   :  { %1499 = vmatprep.subr.bf16.mxu0 %v3370_v27  ;;  %v1131_v7 = vld [vmem:[#allocation3] sm:$0xff] }
 0x8fd   :  { %1500 = vmatpush1.bf16.msra.mxu0 %v3375_v28 }
 0x8fe   :  { %1501 = vmatprep.subr.bf16.mxu0 %v3382_v29 }
 0x901   :  { %1502 = vmatpush1.bf16.msra.mxu0 %v3384_v30 }
 0x902   :  { %1503 = vmatprep.subr.bf16.mxu0 %v3390_v31 }
 0x905   :  { %1504 = vmatpush1.bf16.msra.mxu0 %v3392_v32 }
 0x906   :  { %1505 = vmatprep.subr.bf16.mxu0 %v3398_v33 }
 0x909   :  { %1506 = vmatpush1.bf16.msra.mxu0 %v3400_v34 }
 0x90a   :  { %2096 = vmatprep.subr.bf16.mxu0 %v3356_v22 }
 0x9c7   :  { %v928_v51 = vpop.f32.mrb[4].mxu0 }
 0x9c8   :  { %v936_v52 = vadd.f32 %v3439_v45, %v928_v51  ;;  %v930_v53 = vpop.f32.mrb[5].mxu0 }
 0x9c9   :  { %v932_v54 = vpop.f32.mrb[6].mxu0  ;;  %v1129_v55 = vadd.f32 %v1127_v50, %v930_v53 }
 0x9ca   :  { %2868 = vtanh.f32 %v936_v52  ;;  %v933_v56 = vpop.f32.mrb[7].mxu0  ;;  %v2726_v46 = vmul.f32 -1.442695, %v936_v52  ;;  %v3575_v54 = vld [vmem:[#allocation6 + $0x10] sm:$0xff]  }
 0x9cb   :  { %v1130_v57 = vadd.f32 %v3342_v1, %v1129_v55  ;;  %v1427_v55 = vunpack.c.l.bf16 %v3575_v54 }
 0x9cd   :  { %2870 = vtanh.f32 %v1130_v57  ;;  %v2731_v61 = vmul.f32 -1.442695, %v1130_v57 }
 0x9ce   :  { %2872 = vpow2.f32 %v2726_v46 }
 0x9cf   :  { %2874 = vpow2.f32 %v2731_v61 }
 0x9d4   :  { %v2869_v58 = vpop.eup %2868 }
 0x9d5   :  { %951 = vrot.lane.b32.xlu1 %v2869_v58, %s3177_s3 }
 0x9d7   :  { %v2871_v60 = vpop.eup %2870 }
 0x9d8   :  { %v2873_v62 = vpop.eup %2872 }
 0x9d9   :  { %946 = vrot.lane.b32.xlu1 %v937_v59, %s3182_s7  ;;  %v941_v63 = vadd.f32 1.0, %v2873_v62  ;;  %v2875_v0 = vpop.eup %2874 }
 0x9da   :  { %v1135_v2 = vadd.f32 1.0, %v2875_v0 }
 0x9db   :  { %2876 = vrcp.f32 %v941_v63 }
 0x9dc   :  { %2878 = vrcp.f32 %v1135_v2 }
 0x9dd   :  { %1145 = vrot.lane.b32.xlu1 %v2871_v60, %s3177_s3 }
 0x9e5   :  { %v2877_v3 = vpop.eup %2876 }
 0x9e6   :  { %v2879_v8 = vpop.eup %2878 }
 0xa47   :  { %v952_v4 = vpop.permute.xlu1 %951 }
 0xa48   :  { %v954_v5 = vmul.f32 %v2877_v3, %v952_v4 }
 0xa4a   :  { %956 = vrot.lane.b32.xlu0 %v954_v5, %s3182_s7 }
 0xa4b   :  { %v947_v6 = vpop.permute.xlu1 %946 }
 0xa4c   :  { %v949_v11 = vmul.f32 %v2877_v3, %v947_v6 }
 0xa4e   :  { %1140 = vrot.lane.b32.xlu0 %v1131_v7, %s3182_s7 }
 0xa4f   :  { %v1146_v9 = vpop.permute.xlu1 %1145 }
 0xa50   :  { %v1148_v10 = vmul.f32 %v2879_v8, %v1146_v9 }
 0xa52   :  { %1150 = vrot.lane.b32.xlu1 %v1148_v10, %s3182_s7 }
 0xabc   :  { %v957_v12 = vpop.permute.xlu0 %956 }
 0xabd   :  { %v959_v13 = vadd.f32 %v957_v12, %v949_v11 }
 0xabf   :  { %2880 = vtanh.f32 %v959_v13 }
 0xac0   :  { %v1141_v14 = vpop.permute.xlu0 %1140 }
 0xac1   :  { %v1143_v15 = vmul.f32 %v2879_v8, %v1141_v14 }
 0xac4   :  { %v1151_v16 = vpop.permute.xlu1 %1150 }
 0xac5   :  { %v1153_v17 = vadd.f32 %v1151_v16, %v1143_v15 }
 0xac7   :  { %2882 = vtanh.f32 %v1153_v17 }
 0xac9   :  { %v2881_v19 = vpop.eup %2880 }
 0xaca   :  { %962 = vrot.lane.b32.xlu0 %v2881_v19, %s3177_s3 }
 0xad1   :  { %v2883_v25 = vpop.eup %2882 }
 0xad2   :  { %1156 = vrot.lane.b32.xlu0 %v2883_v25, %s3177_s3 }
 0xb3c   :  { %v963_v37 = vpop.permute.xlu0 %962 }
 0xb3d   :  { %v3542_v39 = vmul.f32 %v2877_v3, %v963_v37 }
 0xb3f   :  { %967 = vrot.lane.b32.xlu1 %v3542_v39, %s3182_s7 }
 0xb44   :  { %v1157_v40 = vpop.permute.xlu0 %1156 }
 0xb45   :  { %v3546_v41 = vmul.f32 %v2879_v8, %v1157_v40 }
 0xb47   :  { %v2782_v42 = vpack.c.bf16 %v3546_v41, %v3546_v41 }
 0xb49   :  { %1174 = vrot.lane.b32.xlu1 %v2782_v42, %s3182_s7 }
 0xb4d   :  { %1187 = vrot.lane.b32.xlu1 %v2782_v42, %s3184_s11 }
 0xbb1   :  { %v968_v43 = vpop.permute.xlu1 %967 }
 0xbb2   :  { %970 = vst.msk [vmem:[#allocation2 + $0x8] sm:$0xff] %vm121_vm0, %v968_v43 }
 0xbb9   :  { %v1178_v44 = vld [vmem:[#allocation2 + $0x8] sm:$0xff] }
 0xbba   :  { %v2783_v47 = vpack.c.bf16 %v1178_v44, %v1178_v44 }
 0xbbb   :  { %v1175_v48 = vpop.permute.xlu1 %1174 }
 0xbbc   :  { %1177 = vst.msk [vmem:[#allocation5] sm:$0xf] %vm203_vm1, %v1175_v48  ;;  %1183 = vrot.lane.b32.xlu0 %v2783_v47, %s3182_s7 }
 0xbbf   :  { %v1188_v50 = vpop.permute.xlu1 %1187 }
 0xbc0   :  { %972 = vrot.lane.b32.xlu0 %v959_v13, %s3184_s11 }
 0xbc4   :  { %1166 = vrot.lane.b32.xlu0 %v1153_v17, %s3184_s11 }
 0xc2e   :  { %v1184_v49 = vpop.permute.xlu0 %1183 }
 0xc2f   :  { %1186 = vst.msk [vmem:[#allocation5] sm:$0xf] %vm214_vm2, %v1184_v49 }
 0xc30   :  { %1190 = vst.msk [vmem:[#allocation5] sm:$0xf] %vm219_vm3, %v1188_v50 }
 0xc32   :  { %v973_v51 = vpop.permute.xlu0 %972 }
 0xc33   :  { %975 = vst.msk [vmem:[#allocation3 + $0x8] sm:$0xff] %vm121_vm0, %v973_v51 }
 0xc36   :  { %v1167_v52 = vpop.permute.xlu0 %1166 }
 0xc37   :  { %1169 = vst.msk [vmem:[#allocation3] sm:$0xff] %vm121_vm0, %v1167_v52  ;;  %v1191_v53 = vld [vmem:[#allocation5] sm:$0xf] }
 0xc38   :  { %2734 = vmatmul.mubr.msk.bf16.vlgmr.msra.gmra.mrb[4].mxu1 %vm282_vm4, %v1191_v53 }
 0xc39   :  { %1797 = vmatpush1.bf16.msra.mxu1 %v3358_v23  ;;  %1828 = vmatprep.mubr.bf16.mxu1 %v3183_v38 }
 0xc3a   :  { %1798 = vmatprep.subr.bf16.mxu1 %v3360_v24  ;;  %v1238_v63 = vld [vmem:[#allocation3 + $0x8] sm:$0xff] }
 0xc3d   :  { %1799 = vmatpush1.bf16.msra.mxu1 %v3366_v26 }
 0xc3e   :  { %1800 = vmatprep.subr.bf16.mxu1 %v3370_v27  ;;  %v1431_v11 = vld [vmem:[#allocation3] sm:$0xff] }
 0xc41   :  { %1801 = vmatpush1.bf16.msra.mxu1 %v3375_v28 }
 0xc42   :  { %1802 = vmatprep.subr.bf16.mxu1 %v3382_v29 }
 0xc45   :  { %1803 = vmatpush1.bf16.msra.mxu1 %v3384_v30 }
 0xc46   :  { %1804 = vmatprep.subr.bf16.mxu1 %v3390_v31 }
 0xc49   :  { %1805 = vmatpush1.bf16.msra.mxu1 %v3392_v32 }
 0xc4a   :  { %1806 = vmatprep.subr.bf16.mxu1 %v3398_v33 }
 0xc4d   :  { %1807 = vmatpush1.bf16.msra.mxu1 %v3400_v34 }
 0xc4e   :  { %2397 = vmatprep.subr.bf16.mxu1 %v3356_v22 }
 0xd0b   :  { %v1229_v56 = vpop.f32.mrb[4].mxu1 }
 0xd0c   :  { %v1237_v57 = vadd.f32 %v3439_v45, %v1229_v56  ;;  %v1231_v58 = vpop.f32.mrb[5].mxu1 }
 0xd0d   :  { %v1233_v59 = vpop.f32.mrb[6].mxu1  ;;  %v1429_v60 = vadd.f32 %v1427_v55, %v1231_v58 }
 0xd0e   :  { %2884 = vtanh.f32 %v1237_v57  ;;  %v1234_v46 = vpop.f32.mrb[7].mxu1  ;;  %v2735_v0 = vmul.f32 -1.442695, %v1237_v57 }
 0xd0f   :  { %v1430_v61 = vadd.f32 %v3342_v1, %v1429_v60 }
 0xd11   :  { %2886 = vtanh.f32 %v1430_v61  ;;  %v2740_v2 = vmul.f32 -1.442695, %v1430_v61 }
 0xd12   :  { %2888 = vpow2.f32 %v2735_v0 }
 0xd13   :  { %2890 = vpow2.f32 %v2740_v2 }
 0xd18   :  { %v2885_v62 = vpop.eup %2884 }
 0xd19   :  { %1252 = vrot.lane.b32.xlu1 %v2885_v62, %s3177_s3 }
 0xd1b   :  { %v2887_v22 = vpop.eup %2886 }
 0xd1c   :  { %v2889_v3 = vpop.eup %2888 }
 0xd1d   :  { %1247 = vrot.lane.b32.xlu1 %v1238_v63, %s3182_s7  ;;  %v1242_v4 = vadd.f32 1.0, %v2889_v3  ;;  %v2891_v5 = vpop.eup %2890 }
 0xd1e   :  { %v1435_v6 = vadd.f32 1.0, %v2891_v5 }
 0xd1f   :  { %2892 = vrcp.f32 %v1242_v4 }
 0xd20   :  { %2894 = vrcp.f32 %v1435_v6 }
 0xd21   :  { %1445 = vrot.lane.b32.xlu1 %v2887_v22, %s3177_s3 }
 0xd29   :  { %v2893_v7 = vpop.eup %2892 }
 0xd2a   :  { %v2895_v12 = vpop.eup %2894 }
 0xd8b   :  { %v1253_v8 = vpop.permute.xlu1 %1252 }
 0xd8c   :  { %v1255_v9 = vmul.f32 %v2893_v7, %v1253_v8 }
 0xd8e   :  { %1257 = vrot.lane.b32.xlu0 %v1255_v9, %s3182_s7 }
 0xd8f   :  { %v1248_v10 = vpop.permute.xlu1 %1247 }
 0xd90   :  { %v1250_v15 = vmul.f32 %v2893_v7, %v1248_v10 }
 0xd92   :  { %1440 = vrot.lane.b32.xlu0 %v1431_v11, %s3182_s7 }
 0xd93   :  { %v1446_v13 = vpop.permute.xlu1 %1445 }
 0xd94   :  { %v1448_v14 = vmul.f32 %v2895_v12, %v1446_v13 }
 0xd96   :  { %1450 = vrot.lane.b32.xlu1 %v1448_v14, %s3182_s7 }
 0xe00   :  { %v1258_v16 = vpop.permute.xlu0 %1257 }
 0xe01   :  { %v1260_v17 = vadd.f32 %v1258_v16, %v1250_v15 }
 0xe03   :  { %2896 = vtanh.f32 %v1260_v17 }
 0xe04   :  { %v1441_v19 = vpop.permute.xlu0 %1440 }
 0xe05   :  { %v1443_v25 = vmul.f32 %v2895_v12, %v1441_v19 }
 0xe08   :  { %v1451_v37 = vpop.permute.xlu1 %1450 }
 0xe09   :  { %v1453_v40 = vadd.f32 %v1451_v37, %v1443_v25 }
 0xe0b   :  { %2898 = vtanh.f32 %v1453_v40 }
 0xe0d   :  { %v2897_v42 = vpop.eup %2896 }
 0xe0e   :  { %1263 = vrot.lane.b32.xlu0 %v2897_v42, %s3177_s3 }
 0xe15   :  { %v2899_v43 = vpop.eup %2898 }
 0xe16   :  { %1456 = vrot.lane.b32.xlu0 %v2899_v43, %s3177_s3 }
 0xe80   :  { %v1264_v44 = vpop.permute.xlu0 %1263 }
 0xe81   :  { %v3588_v47 = vmul.f32 %v2893_v7, %v1264_v44 }
 0xe83   :  { %1268 = vrot.lane.b32.xlu1 %v3588_v47, %s3182_s7 }
 0xe88   :  { %v1457_v48 = vpop.permute.xlu0 %1456 }
 0xe89   :  { %v3592_v49 = vmul.f32 %v2895_v12, %v1457_v48 }
 0xe8b   :  { %v2784_v50 = vpack.c.bf16 %v3592_v49, %v3592_v49 }
 0xe8d   :  { %1474 = vrot.lane.b32.xlu1 %v2784_v50, %s3182_s7 }
 0xe91   :  { %1487 = vrot.lane.b32.xlu1 %v2784_v50, %s3184_s11 }
 0xef5   :  { %v1269_v51 = vpop.permute.xlu1 %1268 }
 0xef6   :  { %1271 = vst.msk [vmem:[#allocation2 + $0x8] sm:$0xff] %vm121_vm0, %v1269_v51 }
 0xefd   :  { %v1478_v52 = vld [vmem:[#allocation2 + $0x8] sm:$0xff] }
 0xefe   :  { %v2785_v53 = vpack.c.bf16 %v1478_v52, %v1478_v52 }
 0xeff   :  { %v1475_v55 = vpop.permute.xlu1 %1474 }
 0xf00   :  { %1477 = vst.msk [vmem:[#allocation5] sm:$0xf] %vm203_vm1, %v1475_v55  ;;  %1483 = vrot.lane.b32.xlu0 %v2785_v53, %s3182_s7 }
 0xf03   :  { %v1488_v57 = vpop.permute.xlu1 %1487 }
 0xf04   :  { %1273 = vrot.lane.b32.xlu0 %v1260_v17, %s3184_s11 }
 0xf08   :  { %1466 = vrot.lane.b32.xlu0 %v1453_v40, %s3184_s11 }
 0xf72   :  { %v1484_v56 = vpop.permute.xlu0 %1483 }
 0xf73   :  { %1486 = vst.msk [vmem:[#allocation5] sm:$0xf] %vm214_vm2, %v1484_v56 }
 0xf74   :  { %1490 = vst.msk [vmem:[#allocation5] sm:$0xf] %vm219_vm3, %v1488_v57 }
 0xf76   :  { %v1274_v58 = vpop.permute.xlu0 %1273 }
 0xf77   :  { %1276 = vst.msk [vmem:[#allocation3 + $0x8] sm:$0xff] %vm121_vm0, %v1274_v58 }
 0xf7a   :  { %v1467_v59 = vpop.permute.xlu0 %1466 }
 0xf7b   :  { %1469 = vst.msk [vmem:[#allocation3] sm:$0xff] %vm121_vm0, %v1467_v59  ;;  %v1491_v60 = vld [vmem:[#allocation5] sm:$0xf] }
 0xf7c   :  { %2743 = vmatmul.mubr.msk.bf16.vlgmr.msra.gmra.mrb[8].mxu0 %vm282_vm4, %v1491_v60 }
 0xf7d   :  { %2097 = vmatpush1.bf16.msra.mxu0 %v3358_v23  ;;  %2128 = vmatprep.mubr.bf16.mxu0 %v3183_v38  ;;  %v1728_v23 = vunpack.c.h.bf16 %v3575_v54 }
 0xf7e   :  { %2098 = vmatprep.subr.bf16.mxu0 %v3360_v24  ;;  %v1538_v0 = vld [vmem:[#allocation3 + $0x8] sm:$0xff] }
 0xf81   :  { %2099 = vmatpush1.bf16.msra.mxu0 %v3366_v26 }
 0xf82   :  { %2100 = vmatprep.subr.bf16.mxu0 %v3370_v27  ;;  %v1732_v11 = vld [vmem:[#allocation3] sm:$0xff] }
 0xf85   :  { %2101 = vmatpush1.bf16.msra.mxu0 %v3375_v28 }
 0xf86   :  { %2102 = vmatprep.subr.bf16.mxu0 %v3382_v29 }
 0xf89   :  { %2103 = vmatpush1.bf16.msra.mxu0 %v3384_v30 }
 0xf8a   :  { %2104 = vmatprep.subr.bf16.mxu0 %v3390_v31 }
 0xf8d   :  { %2105 = vmatpush1.bf16.msra.mxu0 %v3392_v32 }
 0xf8e   :  { %2106 = vmatprep.subr.bf16.mxu0 %v3398_v33 }
 0xf91   :  { %2107 = vmatpush1.bf16.msra.mxu0 %v3400_v34 }
0x104f   :  { %v1529_v24 = vpop.f32.mrb[8].mxu0 }
0x1050   :  { %v1537_v26 = vadd.f32 %v3439_v45, %v1529_v24  ;;  %v1531_v27 = vpop.f32.mrb[9].mxu0 }
0x1051   :  { %v1533_v46 = vpop.f32.mrb[10].mxu0  ;;  %v1730_v61 = vadd.f32 %v1728_v23, %v1531_v27  ;;  %v2957_v27 = vld [vmem:[#allocation12 + $0x14] ss:$8 sps:$4 sm:$0xff]  }
0x1052   :  { %2900 = vtanh.f32 %v1537_v26  ;;  %v1534_v62 = vpop.f32.mrb[11].mxu0  ;;  %v2744_v54 = vmul.f32 -1.442695, %v1537_v26  ;;  %v2956_v26 = vld [vmem:[#allocation12] ss:$8 sps:$4 sm:$0xff]  }
0x1053   :  { %v1731_v63 = vadd.f32 %v3342_v1, %v1730_v61  ;;  %v2958_v46 = vld [vmem:[#allocation12 + $0x10] ss:$8 sps:$4 sm:$0xff]   ;;  %v2959_v61 = vld [vmem:[#allocation12 + $0x24] ss:$8 sps:$4 sm:$0xff]  }
0x1055   :  { %2902 = vtanh.f32 %v1731_v63  ;;  %v2749_v3 = vmul.f32 -1.442695, %v1731_v63 }
0x1056   :  { %2904 = vpow2.f32 %v2744_v54 }
0x1057   :  { %2906 = vpow2.f32 %v2749_v3 }
0x105c   :  { %v2901_v22 = vpop.eup %2900 }
0x105d   :  { %1552 = vrot.lane.b32.xlu1 %v2901_v22, %s3177_s3 }
0x105f   :  { %v2903_v2 = vpop.eup %2902 }
0x1060   :  { %v2905_v4 = vpop.eup %2904 }
0x1061   :  { %1547 = vrot.lane.b32.xlu1 %v1538_v0, %s3182_s7  ;;  %v1542_v5 = vadd.f32 1.0, %v2905_v4  ;;  %v2907_v6 = vpop.eup %2906 }
0x1062   :  { %v1736_v7 = vadd.f32 1.0, %v2907_v6 }
0x1063   :  { %2908 = vrcp.f32 %v1542_v5 }
0x1064   :  { %2910 = vrcp.f32 %v1736_v7 }
0x1065   :  { %1746 = vrot.lane.b32.xlu1 %v2903_v2, %s3177_s3 }
0x106d   :  { %v2909_v1 = vpop.eup %2908 }
0x106e   :  { %v2911_v12 = vpop.eup %2910 }
0x10cf   :  { %v1553_v8 = vpop.permute.xlu1 %1552 }
0x10d0   :  { %v1555_v9 = vmul.f32 %v2909_v1, %v1553_v8 }
0x10d2   :  { %1557 = vrot.lane.b32.xlu0 %v1555_v9, %s3182_s7 }
0x10d3   :  { %v1548_v10 = vpop.permute.xlu1 %1547 }
0x10d4   :  { %v1550_v15 = vmul.f32 %v2909_v1, %v1548_v10 }
0x10d6   :  { %1741 = vrot.lane.b32.xlu0 %v1732_v11, %s3182_s7 }
0x10d7   :  { %v1747_v13 = vpop.permute.xlu1 %1746 }
0x10d8   :  { %v1749_v14 = vmul.f32 %v2911_v12, %v1747_v13 }
0x10da   :  { %1751 = vrot.lane.b32.xlu1 %v1749_v14, %s3182_s7 }
0x1144   :  { %v1558_v16 = vpop.permute.xlu0 %1557 }
0x1145   :  { %v1560_v17 = vadd.f32 %v1558_v16, %v1550_v15 }
0x1147   :  { %2912 = vtanh.f32 %v1560_v17 }
0x1148   :  { %v1742_v19 = vpop.permute.xlu0 %1741 }
0x1149   :  { %v1744_v25 = vmul.f32 %v2911_v12, %v1742_v19 }
0x114c   :  { %v1752_v37 = vpop.permute.xlu1 %1751 }
0x114d   :  { %v1754_v40 = vadd.f32 %v1752_v37, %v1744_v25 }
0x114f   :  { %2914 = vtanh.f32 %v1754_v40 }
0x1151   :  { %v2913_v42 = vpop.eup %2912 }
0x1152   :  { %1563 = vrot.lane.b32.xlu0 %v2913_v42, %s3177_s3 }
0x1159   :  { %v2915_v43 = vpop.eup %2914 }
0x115a   :  { %1757 = vrot.lane.b32.xlu0 %v2915_v43, %s3177_s3 }
0x11c4   :  { %v1564_v44 = vpop.permute.xlu0 %1563 }
0x11c5   :  { %v3631_v48 = vmul.f32 %v2909_v1, %v1564_v44 }
0x11c7   :  { %1568 = vrot.lane.b32.xlu1 %v3631_v48, %s3182_s7 }
0x11cc   :  { %v1758_v50 = vpop.permute.xlu0 %1757 }
0x11cd   :  { %v3635_v51 = vmul.f32 %v2911_v12, %v1758_v50 }
0x11cf   :  { %v2786_v52 = vpack.c.bf16 %v3635_v51, %v3635_v51 }
0x11d1   :  { %1775 = vrot.lane.b32.xlu1 %v2786_v52, %s3182_s7 }
0x11d5   :  { %1788 = vrot.lane.b32.xlu1 %v2786_v52, %s3184_s11 }
0x1239   :  { %v1569_v53 = vpop.permute.xlu1 %1568 }
0x123a   :  { %1571 = vst.msk [vmem:[#allocation2 + $0x8] sm:$0xff] %vm121_vm0, %v1569_v53 }
0x1241   :  { %v1779_v55 = vld [vmem:[#allocation2 + $0x8] sm:$0xff] }
0x1242   :  { %v2787_v56 = vpack.c.bf16 %v1779_v55, %v1779_v55 }
0x1243   :  { %v1776_v57 = vpop.permute.xlu1 %1775 }
0x1244   :  { %1778 = vst.msk [vmem:[#allocation5] sm:$0xf] %vm203_vm1, %v1776_v57  ;;  %1784 = vrot.lane.b32.xlu0 %v2787_v56, %s3182_s7 }
0x1247   :  { %v1789_v59 = vpop.permute.xlu1 %1788 }
0x1248   :  { %1573 = vrot.lane.b32.xlu0 %v1560_v17, %s3184_s11 }
0x124c   :  { %1767 = vrot.lane.b32.xlu0 %v1754_v40, %s3184_s11 }
0x12b6   :  { %v1785_v58 = vpop.permute.xlu0 %1784 }
0x12b7   :  { %1787 = vst.msk [vmem:[#allocation5] sm:$0xf] %vm214_vm2, %v1785_v58 }
0x12b8   :  { %1791 = vst.msk [vmem:[#allocation5] sm:$0xf] %vm219_vm3, %v1789_v59 }
0x12ba   :  { %v1574_v60 = vpop.permute.xlu0 %1573 }
0x12bb   :  { %1576 = vst.msk [vmem:[#allocation3 + $0x8] sm:$0xff] %vm121_vm0, %v1574_v60 }
0x12be   :  { %v1768_v23 = vpop.permute.xlu0 %1767 }
0x12bf   :  { %1770 = vst.msk [vmem:[#allocation3] sm:$0xff] %vm121_vm0, %v1768_v23  ;;  %v1792_v24 = vld [vmem:[#allocation5] sm:$0xf] }
0x12c0   :  { %2752 = vmatmul.mubr.msk.bf16.vlgmr.msra.gmra.mrb[8].mxu1 %vm282_vm4, %v1792_v24 }
0x12c1   :  { %2398 = vmatpush1.bf16.msra.mxu1 %v2956_v26  ;;  %2429 = vmatprep.mubr.bf16.mxu1 %v3183_v38  ;;  %v3659_v38 = vld [vmem:[#allocation6 + $0x18] sm:$0xff]  }
0x12c2   :  { %2399 = vmatprep.subr.bf16.mxu1 %v2957_v27  ;;  %v2028_v62 = vunpack.c.l.bf16 %v3659_v38  ;;  %v2329_v27 = vunpack.c.h.bf16 %v3659_v38 }
0x12c5   :  { %2400 = vmatpush1.bf16.msra.mxu1 %v2958_v46 }
0x12c6   :  { %2401 = vmatprep.subr.bf16.mxu1 %v2959_v61  ;;  %v2032_v10 = vld [vmem:[#allocation3] sm:$0xff]  ;;  %v3701_v61 = vld [vmem:[%s4347_s5 + $0x1] ss:$0 sm:$0xff] }
0x12c9   :  { %2402 = vmatpush1.bf16.msra.mxu1 %v3375_v28 }
0x12ca   :  { %2403 = vmatprep.subr.bf16.mxu1 %v3382_v29 }
0x12cd   :  { %2404 = vmatpush1.bf16.msra.mxu1 %v3384_v30 }
0x12ce   :  { %2405 = vmatprep.subr.bf16.mxu1 %v3390_v31  ;;  %v3666_v31 = vld [vmem:[%s4347_s5] ss:$0 sm:$0xff] }
0x12d1   :  { %2406 = vmatpush1.bf16.msra.mxu1 %v3392_v32 }
0x12d2   :  { %2407 = vmatprep.subr.bf16.mxu1 %v3398_v33 }
0x12d5   :  { %2408 = vmatpush1.bf16.msra.mxu1 %v3400_v34  ;;  %v1839_v34 = vld [vmem:[#allocation3 + $0x8] sm:$0xff] }
0x1393   :  { %v1830_v63 = vpop.f32.mrb[8].mxu1 }
0x1394   :  { %v1838_v22 = vadd.f32 %v3439_v45, %v1830_v63  ;;  %v1832_v28 = vpop.f32.mrb[9].mxu1 }
0x1395   :  { %v1834_v0 = vpop.f32.mrb[10].mxu1  ;;  %v2030_v29 = vadd.f32 %v2028_v62, %v1832_v28 }
0x1396   :  { %2916 = vtanh.f32 %v1838_v22  ;;  %v1835_v30 = vpop.f32.mrb[11].mxu1  ;;  %v2753_v2 = vmul.f32 -1.442695, %v1838_v22 }
0x1397   :  { %v2031_v32 = vadd.f32 %v3666_v31, %v2030_v29 }
0x1399   :  { %2918 = vtanh.f32 %v2031_v32  ;;  %v2758_v54 = vmul.f32 -1.442695, %v2031_v32 }
0x139a   :  { %2920 = vpow2.f32 %v2753_v2 }
0x139b   :  { %2922 = vpow2.f32 %v2758_v54 }
0x13a0   :  { %v2917_v33 = vpop.eup %2916 }
0x13a1   :  { %1853 = vrot.lane.b32.xlu1 %v2917_v33, %s3177_s3 }
0x13a3   :  { %v2919_v45 = vpop.eup %2918 }
0x13a4   :  { %v2921_v3 = vpop.eup %2920 }
0x13a5   :  { %1848 = vrot.lane.b32.xlu1 %v1839_v34, %s3182_s7  ;;  %v1843_v4 = vadd.f32 1.0, %v2921_v3  ;;  %v2923_v5 = vpop.eup %2922 }
0x13a6   :  { %v2036_v6 = vadd.f32 1.0, %v2923_v5 }
0x13a7   :  { %2924 = vrcp.f32 %v1843_v4 }
0x13a8   :  { %2926 = vrcp.f32 %v2036_v6 }
0x13a9   :  { %2046 = vrot.lane.b32.xlu1 %v2919_v45, %s3177_s3 }
0x13b1   :  { %v2925_v7 = vpop.eup %2924 }
0x13b2   :  { %v2927_v11 = vpop.eup %2926 }
0x1413   :  { %v1854_v1 = vpop.permute.xlu1 %1853 }
0x1414   :  { %v1856_v8 = vmul.f32 %v2925_v7, %v1854_v1 }
0x1416   :  { %1858 = vrot.lane.b32.xlu0 %v1856_v8, %s3182_s7 }
0x1417   :  { %v1849_v9 = vpop.permute.xlu1 %1848 }
0x1418   :  { %v1851_v14 = vmul.f32 %v2925_v7, %v1849_v9 }
0x141a   :  { %2041 = vrot.lane.b32.xlu0 %v2032_v10, %s3182_s7 }
0x141b   :  { %v2047_v12 = vpop.permute.xlu1 %2046 }
0x141c   :  { %v2049_v13 = vmul.f32 %v2927_v11, %v2047_v12 }
0x141e   :  { %2051 = vrot.lane.b32.xlu1 %v2049_v13, %s3182_s7 }
0x1488   :  { %v1859_v15 = vpop.permute.xlu0 %1858 }
0x1489   :  { %v1861_v16 = vadd.f32 %v1859_v15, %v1851_v14 }
0x148b   :  { %2928 = vtanh.f32 %v1861_v16 }
0x148c   :  { %v2042_v17 = vpop.permute.xlu0 %2041 }
0x148d   :  { %v2044_v19 = vmul.f32 %v2927_v11, %v2042_v17 }
0x1490   :  { %v2052_v25 = vpop.permute.xlu1 %2051 }
0x1491   :  { %v2054_v37 = vadd.f32 %v2052_v25, %v2044_v19 }
0x1493   :  { %2930 = vtanh.f32 %v2054_v37 }
0x1495   :  { %v2929_v40 = vpop.eup %2928 }
0x1496   :  { %1864 = vrot.lane.b32.xlu0 %v2929_v40, %s3177_s3 }
0x149d   :  { %v2931_v42 = vpop.eup %2930 }
0x149e   :  { %2057 = vrot.lane.b32.xlu0 %v2931_v42, %s3177_s3 }
0x1508   :  { %v1865_v43 = vpop.permute.xlu0 %1864 }
0x1509   :  { %v3677_v44 = vmul.f32 %v2925_v7, %v1865_v43 }
0x150b   :  { %1869 = vrot.lane.b32.xlu1 %v3677_v44, %s3182_s7 }
0x1510   :  { %v2058_v50 = vpop.permute.xlu0 %2057 }
0x1511   :  { %v3681_v52 = vmul.f32 %v2927_v11, %v2058_v50 }
0x1513   :  { %v2788_v53 = vpack.c.bf16 %v3681_v52, %v3681_v52 }
0x1515   :  { %2075 = vrot.lane.b32.xlu1 %v2788_v53, %s3182_s7 }
0x1519   :  { %2088 = vrot.lane.b32.xlu1 %v2788_v53, %s3184_s11 }
0x157d   :  { %v1870_v55 = vpop.permute.xlu1 %1869 }
0x157e   :  { %1872 = vst.msk [vmem:[#allocation2 + $0x8] sm:$0xff] %vm121_vm0, %v1870_v55 }
0x1585   :  { %v2079_v56 = vld [vmem:[#allocation2 + $0x8] sm:$0xff] }
0x1586   :  { %v2789_v57 = vpack.c.bf16 %v2079_v56, %v2079_v56 }
0x1587   :  { %v2076_v58 = vpop.permute.xlu1 %2075 }
0x1588   :  { %2078 = vst.msk [vmem:[#allocation5] sm:$0xf] %vm203_vm1, %v2076_v58  ;;  %2084 = vrot.lane.b32.xlu0 %v2789_v57, %s3182_s7  ;;  %v3185_v57 = vmov 1966171168  }
0x1589   :  { %v378_v58 = vunpack.c.l.s4 %v3185_v57 }
0x158b   :  { %v2089_v60 = vpop.permute.xlu1 %2088 }
0x158c   :  { %1874 = vrot.lane.b32.xlu0 %v1861_v16, %s3184_s11 }
0x1590   :  { %2067 = vrot.lane.b32.xlu0 %v2054_v37, %s3184_s11 }
0x15fa   :  { %v2085_v59 = vpop.permute.xlu0 %2084 }
0x15fb   :  { %2087 = vst.msk [vmem:[#allocation5] sm:$0xf] %vm214_vm2, %v2085_v59  ;;  %v380_v59 = vlaneseq }
0x15fc   :  { %2091 = vst.msk [vmem:[#allocation5] sm:$0xf] %vm219_vm3, %v2089_v60  ;;  %v379_v60 = vunpack.c.0.s8 %v378_v58 }
0x15fe   :  { %v1875_v23 = vpop.permute.xlu0 %1874 }
0x15ff   :  { %1877 = vst.msk [vmem:[#allocation3 + $0x8] sm:$0xff] %vm121_vm0, %v1875_v23  ;;  %v381_v23 = vshrl.u32 %v380_v59, 7 }
0x1602   :  { %v2068_v24 = vpop.permute.xlu0 %2067 }
0x1603   :  { %2070 = vst.msk [vmem:[#allocation3] sm:$0xff] %vm121_vm0, %v2068_v24  ;;  %v2092_v26 = vld [vmem:[#allocation5] sm:$0xf]  ;;  %v3730_v24 = vsub.s32 %v379_v60, %v381_v23 }
0x1604   :  { %2761 = vmatmul.mubr.msk.bf16.vlgmr.msra.gmra.mrb[12].mxu0 %vm282_vm4, %v2092_v26  ;;  %v375_v26 = vpack.c.bf16 %v3452_v18, %v3452_v18 }
0x1606   :  { %v2139_v38 = vld [vmem:[#allocation3 + $0x8] sm:$0xff] }
0x160a   :  { %v2333_v7 = vld [vmem:[#allocation3] sm:$0xff] }
0x16d7   :  { %v2130_v46 = vpop.f32.mrb[12].mxu0 }
0x16d8   :  { %v2138_v62 = vadd.f32 %v3701_v61, %v2130_v46  ;;  %v2132_v63 = vpop.f32.mrb[13].mxu0 }
0x16d9   :  { %v2134_v22 = vpop.f32.mrb[14].mxu0  ;;  %v2331_v28 = vadd.f32 %v2329_v27, %v2132_v63  ;;  %v119_v63 = vld [vmem:[%s4348_s6] sm:$0xff]  ;;  %s3187_s6 = smov [#allocation18]  }
0x16da   :  { %2932 = vtanh.f32 %v2138_v62  ;;  %v2135_v0 = vpop.f32.mrb[15].mxu0  ;;  %v2762_v33 = vmul.f32 -1.442695, %v2138_v62  ;;  %v383_v62 = vrot.slane %v375_v26, %v3730_v24  ;;  %122 = vst.msk [vmem:[#allocation2] sm:$0xff] %vm121_vm0, %v119_v63  ;;  %s2655_s22 = sshll.u32 %s3187_s6, 4  ;;  %s2656_s22 = int_to_ptr.vmem [resolvable:$true] %s2655_s22 }
0x16db   :  { %v2332_v29 = vadd.f32 %v3666_v31, %v2331_v28  ;;  %v3186_v0 = vmov 286326784   ;;  %s3094_s0 = scalar_lea.vmem %s2656_s22, 256  ;;  %p3099_p7 = scmp.lt.s32.totalorder %s2656_s22, %s2656_s22 }
0x16dc   :  { %v384_v28 = vcombine.high %v383_v62, %v383_v62  ;;  %v3743_v18 = vrot.slane %v383_v62, %v3730_v24  ;;  %p3095_p6 = scmp.ne.s32.totalorder %s2656_s22, %s3094_s0  ;;  %p3100_p8 = scmp.lt.s32.totalorder %s3094_s0, %s3094_s0 }
0x16dd   :  { %2934 = vtanh.f32 %v2332_v29  ;;  %v2767_v34 = vmul.f32 -1.442695, %v2332_v29  ;;  %v418_v29 = vunpack.c.l.s4 %v3186_v0 }
0x16de   :  { %2936 = vpow2.f32 %v2762_v33  ;;  %p3101_p9 = por %p3100_p8, %p3099_p7 }
0x16df   :  { %2938 = vpow2.f32 %v2767_v34  ;;  %v419_v34 = vunpack.c.0.s8 %v418_v29 }
0x16e0   :  { %p3102_p10 = pnand %p3101_p9, %p3095_p6 }
0x16e4   :  { %v2933_v30 = vpop.eup %2932 }
0x16e5   :  { %2153 = vrot.lane.b32.xlu1 %v2933_v30, %s3177_s3 }
0x16e7   :  { %v2935_v32 = vpop.eup %2934 }
0x16e8   :  { %v2937_v45 = vpop.eup %2936 }
0x16e9   :  { %2148 = vrot.lane.b32.xlu1 %v2139_v38, %s3182_s7  ;;  %v2143_v2 = vadd.f32 1.0, %v2937_v45  ;;  %v2939_v54 = vpop.eup %2938  ;;  %v3747_v38 = vrot.slane %v384_v28, %v3730_v24  ;;  %v676_v45 = vpack.c.bf16 %v3498_v21, %v3498_v21 }
0x16ea   :  { %v2337_v3 = vadd.f32 1.0, %v2939_v54 }
0x16eb   :  { %2940 = vrcp.f32 %v2143_v2  ;;  %v404_v54 = vunpack.i.h.s16 %v3747_v38 }
0x16ec   :  { %2942 = vrcp.f32 %v2337_v3  ;;  %v3756_v3 = vcombine.high %v3743_v18, %v3743_v18 }
0x16ed   :  { %2347 = vrot.lane.b32.xlu1 %v2935_v32, %s3177_s3  ;;  %v402_v32 = vunpack.i.h.s16 %v3743_v18 }
0x16ef   :  { %v410_v2 = vpack.i.b16 %v402_v32, %v402_v32 }
0x16f5   :  { %v2941_v31 = vpop.eup %2940 }
0x16f6   :  { %v2943_v1 = vpop.eup %2942 }
0x1757   :  { %v2154_v4 = vpop.permute.xlu1 %2153 }
0x1758   :  { %v2156_v5 = vmul.f32 %v2941_v31, %v2154_v4  ;;  %v684_v4 = vrot.slane %v676_v45, %v3730_v24 }
0x175a   :  { %2158 = vrot.lane.b32.xlu0 %v2156_v5, %s3182_s7  ;;  %v685_v21 = vcombine.high %v684_v4, %v684_v4 }
0x175b   :  { %v2149_v6 = vpop.permute.xlu1 %2148 }
0x175c   :  { %v2151_v10 = vmul.f32 %v2941_v31, %v2149_v6  ;;  %v412_v6 = vpack.i.b16 %v404_v54, %v404_v54 }
0x175e   :  { %2342 = vrot.lane.b32.xlu0 %v2333_v7, %s3182_s7  ;;  %v406_v7 = vunpack.i.h.s16 %v3756_v3 }
0x175f   :  { %v2348_v8 = vpop.permute.xlu1 %2347 }
0x1760   :  { %v2350_v9 = vmul.f32 %v2943_v1, %v2348_v8 }
0x1762   :  { %2352 = vrot.lane.b32.xlu1 %v2350_v9, %s3182_s7  ;;  %v414_v9 = vpack.i.b16 %v406_v7, %v406_v7 }
0x17cc   :  { %v2159_v11 = vpop.permute.xlu0 %2158 }
0x17cd   :  { %v2161_v12 = vadd.f32 %v2159_v11, %v2151_v10 }
0x17cf   :  { %2944 = vtanh.f32 %v2161_v12 }
0x17d0   :  { %v2343_v13 = vpop.permute.xlu0 %2342 }
0x17d1   :  { %v2345_v14 = vmul.f32 %v2943_v1, %v2343_v13 }
0x17d4   :  { %v2353_v15 = vpop.permute.xlu1 %2352 }
0x17d5   :  { %v3711_v16 = vadd.f32 %v2353_v15, %v2345_v14 }
0x17d7   :  { %2946 = vtanh.f32 %v3711_v16 }
0x17d9   :  { %v2945_v17 = vpop.eup %2944 }
0x17da   :  { %2164 = vrot.lane.b32.xlu0 %v2945_v17, %s3177_s3  ;;  %v976_v17 = vpack.c.bf16 %v3542_v39, %v3542_v39 }
0x17e1   :  { %v2947_v19 = vpop.eup %2946 }
0x17e2   :  { %2358 = vrot.lane.b32.xlu0 %v2947_v19, %s3177_s3 }
0x184c   :  { %v2165_v25 = vpop.permute.xlu0 %2164 }
0x184d   :  { %v3716_v37 = vmul.f32 %v2941_v31, %v2165_v25  ;;  %v3758_v31 = vsub.s32 %v419_v34, %v381_v23  ;;  %v1277_v23 = vpack.c.bf16 %v3588_v47, %v3588_v47 }
0x184f   :  { %2169 = vrot.lane.b32.xlu1 %v3716_v37, %s3182_s7  ;;  %v430_v5 = vrot.slane %v410_v2, %v3758_v31  ;;  %v444_v8 = vrot.slane %v412_v6, %v3758_v31  ;;  %v458_v10 = vrot.slane %v414_v9, %v3758_v31  ;;  %v1285_v62 = vrot.slane %v1277_v23, %v3730_v24 }
0x1851   :  { %v1286_v28 = vcombine.high %v1285_v62, %v1285_v62  ;;  %v3829_v0 = vrot.slane %v1285_v62, %v3730_v24 }
0x1853   :  { %v3836_v32 = vrot.slane %v1286_v28, %v3730_v24  ;;  %v1304_v34 = vunpack.i.h.s16 %v3829_v0  ;;  %v3844_v54 = vcombine.high %v3829_v0, %v3829_v0 }
0x1854   :  { %v2359_v40 = vpop.permute.xlu0 %2358 }
0x1855   :  { %v3720_v42 = vmul.f32 %v2943_v1, %v2359_v40  ;;  %v3767_v1 = vrot.slane %v684_v4, %v3730_v24  ;;  %v1312_v45 = vpack.i.b16 %v1304_v34, %v1304_v34  ;;  %v1306_v2 = vunpack.i.h.s16 %v3836_v32  ;;  %v1101_v34 = vld [vmem:[#allocation17] sm:$0x2] }
0x1856   :  { %v1308_v6 = vunpack.i.h.s16 %v3844_v54  ;;  %v3852_v7 = vcombine.high %v3836_v32, %v3836_v32 }
0x1857   :  { %v2790_v43 = vpack.c.bf16 %v3720_v42, %v3720_v42  ;;  %v703_v11 = vunpack.i.h.s16 %v3767_v1  ;;  %v1332_v4 = vrot.slane %v1312_v45, %v3758_v31 }
0x1858   :  { %v1310_v9 = vunpack.i.h.s16 %v3852_v7 }
0x1859   :  { %2376 = vrot.lane.b32.xlu1 %v2790_v43, %s3182_s7  ;;  %v711_v13 = vpack.i.b16 %v703_v11, %v703_v11 }
0x185b   :  { %v731_v19 = vrot.slane %v711_v13, %v3758_v31 }
0x185d   :  { %2389 = vrot.lane.b32.xlu1 %v2790_v43, %s3184_s11  ;;  %v984_v43 = vrot.slane %v976_v17, %v3730_v24  ;;  %v503_v17 = vld [vmem:[#allocation17 + $0x4] sm:$0x1] }
0x185f   :  { %v3798_v39 = vrot.slane %v984_v43, %v3730_v24 }
0x1861   :  { %v2727_v60 = vpack.i.b16 %v3798_v39, %v3798_v39 }
0x1863   :  { %v1024_v26 = vrot.slane %v2727_v60, %v3758_v31 }
0x18c1   :  { %v2170_v50 = vpop.permute.xlu1 %2169 }
0x18c2   :  { %2172 = vst.msk [vmem:[#allocation2 + $0x8] sm:$0xff] %vm121_vm0, %v2170_v50 }
0x18c9   :  { %v2380_v53 = vld [vmem:[#allocation2 + $0x8] sm:$0xff] }
0x18ca   :  { %v2791_v55 = vpack.c.bf16 %v2380_v53, %v2380_v53 }
0x18cb   :  { %v2377_v56 = vpop.permute.xlu1 %2376 }
0x18cc   :  { %2379 = vst.msk [vmem:[#allocation5] sm:$0xf] %vm203_vm1, %v2377_v56  ;;  %2385 = vrot.lane.b32.xlu0 %v2791_v55, %s3182_s7  ;;  %v985_v55 = vcombine.high %v984_v43, %v984_v43  ;;  %v509_v43 = vld [vmem:[#allocation17 + $0xc] sm:$0x1]  ;;  %vm1700_vm1 = vsmask.f32 2304 }
0x18ce   :  { %v3803_v58 = vrot.slane %v985_v55, %v3730_v24 }
0x18cf   :  { %v2390_v46 = vpop.permute.xlu1 %2389 }
0x18d0   :  { %2174 = vrot.lane.b32.xlu0 %v2161_v12, %s3184_s11  ;;  %v3779_v12 = vcombine.high %v3767_v1, %v3767_v1  ;;  %v3825_v47 = vcombine.high %v3803_v58, %v3803_v58 }
0x18d2   :  { %v707_v15 = vunpack.i.h.s16 %v3779_v12 }
0x18d4   :  { %v715_v53 = vpack.i.b16 %v707_v15, %v707_v15 }
0x18d6   :  { %v759_v56 = vrot.slane %v715_v53, %v3758_v31 }
0x193e   :  { %v2386_v27 = vpop.permute.xlu0 %2385 }
0x193f   :  { %2388 = vst.msk [vmem:[#allocation5] sm:$0xf] %vm214_vm2, %v2386_v27  ;;  %v2728_v27 = vpack.i.b16 %v3803_v58, %v3803_v58  ;;  %vm4176_vm2 = vmand %vm1699_vm15, %vm1700_vm1 }
0x1940   :  { %2392 = vst.msk [vmem:[#allocation5] sm:$0xf] %vm219_vm3, %v2390_v46  ;;  %v3816_v46 = vcombine.high %v3798_v39, %v3798_v39  ;;  %vm2300_vm3 = vcmask 257027  }
0x1941   :  { %v1038_v63 = vrot.slane %v2728_v27, %v3758_v31 }
0x1942   :  { %v2175_v22 = vpop.permute.xlu0 %2174 }
0x1943   :  { %2177 = vst.msk [vmem:[#allocation3 + $0x8] sm:$0xff] %vm121_vm0, %v2175_v22  ;;  %v2729_v22 = vpack.i.b16 %v3816_v46, %v3816_v46 }
0x1945   :  { %v1052_v29 = vrot.slane %v2729_v22, %v3758_v31 }
0x1947   :  { %v2393_v30 = vld [vmem:[#allocation5] sm:$0xf] }
0x1948   :  { %2770 = vmatmul.mubr.msk.bf16.vlgmr.msra.gmra.mrb[12].mxu1 %vm282_vm4, %v2393_v30  ;;  %v2730_v30 = vpack.i.b16 %v3825_v47, %v3825_v47  ;;  %vm2301_vm4 = vsmask.f32 3328 }
0x1949   :  { %vm4189_vm5 = vmand %vm2300_vm3, %vm2301_vm4 }
0x194a   :  { %v2440_v33 = vld [vmem:[#allocation3 + $0x8] sm:$0xff] }
0x194b   :  { %2449 = vrot.lane.b32.xlu0 %v2440_v33, %s3182_s7  ;;  %v1066_v33 = vrot.slane %v2730_v30, %v3758_v31 }
0x194f   :  { %186 = vrot.lane.b32.xlu0 %v3404_v36, %s3182_s7  ;;  %v3772_v36 = vrot.slane %v685_v21, %v3730_v24 }
0x1951   :  { %v705_v14 = vunpack.i.h.s16 %v3772_v36  ;;  %v3790_v40 = vcombine.high %v3772_v36, %v3772_v36 }
0x1953   :  { %475 = vrot.lane.b32.xlu0 %v430_v5, %s3182_s7  ;;  %v713_v25 = vpack.i.b16 %v705_v14, %v705_v14  ;;  %v1314_v5 = vpack.i.b16 %v1306_v2, %v1306_v2 }
0x1955   :  { %v745_v50 = vrot.slane %v713_v25, %v3758_v31  ;;  %v1346_v21 = vrot.slane %v1314_v5, %v3758_v31 }
0x1957   :  { %479 = vrot.lane.b32.xlu0 %v444_v8, %s3182_s7  ;;  %v1316_v8 = vpack.i.b16 %v1308_v6, %v1308_v6 }
0x195b   :  { %483 = vrot.lane.b32.xlu0 %v458_v10, %s3182_s7  ;;  %v1318_v10 = vpack.i.b16 %v1310_v9, %v1310_v9 }
0x195d   :  { %v1374_v11 = vrot.slane %v1318_v10, %v3758_v31 }
0x195f   :  { %560 = vrot.lane.b32.xlu0 %v3456_v20, %s3182_s7  ;;  %v709_v20 = vunpack.i.h.s16 %v3790_v40 }
0x1961   :  { %v717_v57 = vpack.i.b16 %v709_v20, %v709_v20  ;;  %v515_v20 = vld [vmem:[#allocation17 + $0x14] sm:$0x1] }
0x1963   :  { %776 = vrot.lane.b32.xlu0 %v731_v19, %s3182_s7  ;;  %v773_v59 = vrot.slane %v717_v57, %v3758_v31 }
0x1967   :  { %780 = vrot.lane.b32.xlu0 %v745_v50, %s3182_s7 }
0x196b   :  { %784 = vrot.lane.b32.xlu0 %v759_v56, %s3182_s7 }
0x196f   :  { %788 = vrot.lane.b32.xlu0 %v773_v59, %s3182_s7 }
0x1973   :  { %1074 = vrot.lane.b32.xlu0 %v1024_v26, %s3182_s7 }
0x1977   :  { %1078 = vrot.lane.b32.xlu0 %v1038_v63, %s3182_s7 }
0x197b   :  { %1082 = vrot.lane.b32.xlu0 %v1052_v29, %s3182_s7 }
0x197f   :  { %1086 = vrot.lane.b32.xlu0 %v1066_v33, %s3182_s7 }
0x1983   :  { %1161 = vrot.lane.b32.xlu0 %v3546_v41, %s3182_s7  ;;  %v1360_v41 = vrot.slane %v1316_v8, %v3758_v31 }
0x1987   :  { %1377 = vrot.lane.b32.xlu0 %v1332_v4, %s3182_s7  ;;  %v1107_v4 = vld [vmem:[#allocation17 + $0x8] sm:$0x2] }
0x198b   :  { %1381 = vrot.lane.b32.xlu0 %v1346_v21, %s3182_s7  ;;  %v1113_v21 = vld [vmem:[#allocation17 + $0x10] sm:$0x2] }
0x198f   :  { %1385 = vrot.lane.b32.xlu0 %v1360_v41, %s3182_s7  ;;  %v1119_v41 = vld [vmem:[#allocation17 + $0x18] sm:$0x2] }
0x1993   :  { %1389 = vrot.lane.b32.xlu0 %v1374_v11, %s3182_s7 }
0x19bd   :  { %v3862_v13 = vpop.permute.xlu0 %2449 }
0x19c1   :  { %v187_v14 = vpop.permute.xlu0 %186 }
0x19c2   :  { %190 = vst.msk [vmem:[#allocation2] sm:$0xff] %vm121_vm0, %v187_v14 }
0x19c5   :  { %v476_v19 = vpop.permute.xlu0 %475 }
0x19c6   :  { %v504_v25 = vsel %vm3866_vm7, %v476_v19, %v503_v17 }
0x19c7   :  { %505 = vst [vmem:[#allocation17 + $0x4] sm:$0x1] %v504_v25 }
0x19c9   :  { %v480_v50 = vpop.permute.xlu0 %479 }
0x19ca   :  { %v510_v53 = vsel %vm3866_vm7, %v480_v50, %v509_v43  ;;  %v2709_v50 = vpack.i.b16 %v3743_v18, %v3743_v18  ;;  %v2710_v18 = vpack.i.b16 %v3747_v38, %v3747_v38 }
0x19cb   :  { %511 = vst [vmem:[#allocation17 + $0xc] sm:$0x1] %v510_v53 }
0x19cd   :  { %v484_v55 = vpop.permute.xlu0 %483 }
0x19ce   :  { %v516_v56 = vsel %vm3866_vm7, %v484_v55, %v515_v20  ;;  %v803_v60 = vld [vmem:[#allocation17 + $0x4] sm:$0x1]  ;;  %v423_v20 = vrot.slane %v2709_v50, %v3758_v31 }
0x19cf   :  { %517 = vst [vmem:[#allocation17 + $0x14] sm:$0x1] %v516_v56 }
0x19d1   :  { %v561_v57 = vpop.permute.xlu0 %560 }
0x19d2   :  { %563 = vst.msk [vmem:[#allocation2] sm:$0xff] %vm121_vm0, %v561_v57  ;;  %v809_v27 = vld [vmem:[#allocation17 + $0xc] sm:$0x1] }
0x19d5   :  { %v777_v23 = vpop.permute.xlu0 %776 }
0x19d6   :  { %v804_v26 = vsel %vm3878_vm9, %v777_v23, %v803_v60  ;;  %v815_v22 = vld [vmem:[#allocation17 + $0x14] sm:$0x1] }
0x19d7   :  { %805 = vst [vmem:[#allocation17 + $0x4] sm:$0x1] %v804_v26  ;;  %v500_v26 = vld [vmem:[#allocation17] sm:$0x1] }
0x19d9   :  { %v781_v62 = vpop.permute.xlu0 %780 }
0x19da   :  { %v810_v63 = vsel %vm3878_vm9, %v781_v62, %v809_v27 }
0x19db   :  { %811 = vst [vmem:[#allocation17 + $0xc] sm:$0x1] %v810_v63  ;;  %v437_v63 = vrot.slane %v2710_v18, %v3758_v31  ;;  %v2178_v18 = vpack.c.bf16 %v3716_v37, %v3716_v37 }
0x19dd   :  { %v785_v28 = vpop.permute.xlu0 %784 }
0x19de   :  { %v816_v29 = vsel %vm3878_vm9, %v785_v28, %v815_v22  ;;  %v2711_v22 = vpack.i.b16 %v3756_v3, %v3756_v3  ;;  %v400_v28 = vcombine.high %v3747_v38, %v3747_v38  ;;  %v2718_v3 = vpack.i.b16 %v3767_v1, %v3767_v1 }
0x19df   :  { %817 = vst [vmem:[#allocation17 + $0x14] sm:$0x1] %v816_v29  ;;  %v2721_v1 = vpack.i.b16 %v3790_v40, %v3790_v40 }
0x19e0   :  { %v451_v29 = vrot.slane %v2711_v22, %v3758_v31  ;;  %v724_v38 = vrot.slane %v2718_v3, %v3758_v31 }
0x19e1   :  { %v3888_v30 = vpop.permute.xlu0 %788 }
0x19e5   :  { %v1075_v45 = vpop.permute.xlu0 %1074 }
0x19e6   :  { %v1102_v2 = vsel %vm3891_vm12, %v1075_v45, %v1101_v34  ;;  %v2712_v34 = vpack.i.b16 %v400_v28, %v400_v28  ;;  %v408_v45 = vunpack.i.h.s16 %v400_v28 }
0x19e7   :  { %1103 = vst [vmem:[#allocation17] sm:$0x2] %v1102_v2 }
0x19e8   :  { %v465_v2 = vrot.slane %v2712_v34, %v3758_v31 }
0x19e9   :  { %v1079_v5 = vpop.permute.xlu0 %1078 }
0x19ea   :  { %v1108_v6 = vsel %vm3891_vm12, %v1079_v5, %v1107_v4  ;;  %v416_v4 = vpack.i.b16 %v408_v45, %v408_v45 }
0x19eb   :  { %1109 = vst [vmem:[#allocation17 + $0x8] sm:$0x2] %v1108_v6  ;;  %v2719_v6 = vpack.i.b16 %v3772_v36, %v3772_v36  ;;  %v1003_v36 = vunpack.i.h.s16 %v3798_v39  ;;  %v1009_v39 = vunpack.i.h.s16 %v3825_v47  ;;  %v2737_v47 = vpack.i.b16 %v3836_v32, %v3836_v32 }
0x19ec   :  { %v472_v5 = vrot.slane %v416_v4, %v3758_v31 }
0x19ed   :  { %v1083_v8 = vpop.permute.xlu0 %1082 }
0x19ee   :  { %v1114_v9 = vsel %vm3891_vm12, %v1083_v8, %v1113_v21  ;;  %v738_v21 = vrot.slane %v2719_v6, %v3758_v31  ;;  %v2720_v8 = vpack.i.b16 %v3779_v12, %v3779_v12 }
0x19ef   :  { %1115 = vst [vmem:[#allocation17 + $0x10] sm:$0x2] %v1114_v9 }
0x19f0   :  { %v752_v9 = vrot.slane %v2720_v8, %v3758_v31 }
0x19f1   :  { %v1087_v10 = vpop.permute.xlu0 %1086 }
0x19f2   :  { %v1120_v11 = vsel %vm3891_vm12, %v1087_v10, %v1119_v41  ;;  %v766_v41 = vrot.slane %v2721_v1, %v3758_v31  ;;  %v1011_v10 = vpack.i.b16 %v1003_v36, %v1003_v36  ;;  %v1878_v1 = vpack.c.bf16 %v3677_v44, %v3677_v44 }
0x19f3   :  { %1121 = vst [vmem:[#allocation17 + $0x18] sm:$0x2] %v1120_v11  ;;  %v1005_v11 = vunpack.i.h.s16 %v3803_v58  ;;  %v1017_v58 = vpack.i.b16 %v1009_v39, %v1009_v39 }
0x19f4   :  { %v1031_v12 = vrot.slane %v1011_v10, %v3758_v31  ;;  %v1886_v36 = vrot.slane %v1878_v1, %v3730_v24 }
0x1a1b   :  { %v2431_v14 = vpop.f32.mrb[12].mxu1 }
0x1a1c   :  { %v2439_v17 = vadd.f32 %v3701_v61, %v2431_v14  ;;  %v2433_v19 = vpop.f32.mrb[13].mxu1  ;;  %v1013_v14 = vpack.i.b16 %v1005_v11, %v1005_v11  ;;  %v1887_v11 = vcombine.high %v1886_v36, %v1886_v36 }
0x1a1d   :  { %v2435_v25 = vpop.f32.mrb[14].mxu1 }
0x1a1e   :  { %2948 = vtanh.f32 %v2439_v17  ;;  %v2436_v43 = vpop.f32.mrb[15].mxu1  ;;  %v2771_v55 = vmul.f32 -1.442695, %v2439_v17  ;;  %v1007_v17 = vunpack.i.h.s16 %v3816_v46  ;;  %v1045_v40 = vrot.slane %v1013_v14, %v3758_v31 }
0x1a1f   :  { %v2736_v43 = vpack.i.b16 %v3829_v0, %v3829_v0  ;;  %v1577_v46 = vpack.c.bf16 %v3631_v48, %v3631_v48  ;;  %v4045_v14 = vrot.slane %v1887_v11, %v3730_v24 }
0x1a20   :  { %2950 = vpow2.f32 %v2771_v55  ;;  %v1015_v19 = vpack.i.b16 %v1007_v17, %v1007_v17  ;;  %v2738_v55 = vpack.i.b16 %v3844_v54, %v3844_v54 }
0x1a21   :  { %v1325_v50 = vrot.slane %v2736_v43, %v3758_v31 }
0x1a22   :  { %v1059_v25 = vrot.slane %v1015_v19, %v3758_v31  ;;  %v1353_v48 = vrot.slane %v2738_v55, %v3758_v31 }
0x1a28   :  { %v2949_v53 = vpop.eup %2948 }
0x1a29   :  { %2454 = vrot.lane.b32.xlu1 %v2949_v53, %s3177_s3  ;;  %v1585_v53 = vrot.slane %v1577_v46, %v3730_v24 }
0x1a2a   :  { %v2951_v56 = vpop.eup %2950 }
0x1a2b   :  { %v2444_v57 = vadd.f32 1.0, %v2951_v56  ;;  %v3973_v0 = vrot.slane %v1585_v53, %v3730_v24  ;;  %v2739_v56 = vpack.i.b16 %v3852_v7, %v3852_v7 }
0x1a2d   :  { %473 = vrot.lane.b32.xlu1 %v423_v20, %s3182_s7  ;;  %2952 = vrcp.f32 %v2444_v57  ;;  %v1339_v20 = vrot.slane %v2737_v47, %v3758_v31  ;;  %v1367_v32 = vrot.slane %v2739_v56, %v3758_v31  ;;  %v1604_v57 = vunpack.i.h.s16 %v3973_v0 }
0x1a2f   :  { %v1612_v54 = vpack.i.b16 %v1604_v57, %v1604_v57 }
0x1a31   :  { %v1632_v7 = vrot.slane %v1612_v54, %v3758_v31 }
0x1a37   :  { %v3909_v61 = vpop.eup %2952 }
0x1a38   :  { %v2452_v17 = vmul.f32 %v3909_v61, %v3862_v13 }
0x1a9b   :  { %v2455_v60 = vpop.permute.xlu1 %2454 }
0x1a9c   :  { %v2457_v23 = vmul.f32 %v3909_v61, %v2455_v60  ;;  %v1586_v60 = vcombine.high %v1585_v53, %v1585_v53  ;;  %v4062_v53 = vcombine.high %v4045_v14, %v4045_v14 }
0x1a9e   :  { %2459 = vrot.lane.b32.xlu1 %v2457_v23, %s3182_s7  ;;  %v3985_v23 = vrot.slane %v1586_v60, %v3730_v24  ;;  %v1911_v57 = vunpack.i.h.s16 %v4062_v53  ;;  %v518_v60 = vld [vmem:[#allocation17 + $0x18] sm:$0x1] }
0x1a9f   :  { %v474_v27 = vpop.permute.xlu1 %473 }
0x1aa0   :  { %v501_v62 = vsel %vm3866_vm7, %v474_v27, %v500_v26  ;;  %v3992_v26 = vcombine.high %v3973_v0, %v3973_v0  ;;  %v2186_v27 = vrot.slane %v2178_v18, %v3730_v24  ;;  %v2745_v18 = vpack.i.b16 %v3973_v0, %v3973_v0 }
0x1aa1   :  { %502 = vst [vmem:[#allocation17] sm:$0x1] %v501_v62  ;;  %v1606_v0 = vunpack.i.h.s16 %v3985_v23 }
0x1aa2   :  { %477 = vrot.lane.b32.xlu1 %v437_v63, %s3182_s7  ;;  %v2747_v62 = vpack.i.b16 %v3992_v26, %v3992_v26  ;;  %v2187_v37 = vcombine.high %v2186_v27, %v2186_v27  ;;  %v4005_v63 = vrot.slane %v2186_v27, %v3730_v24 }
0x1aa4   :  { %v1653_v22 = vrot.slane %v2747_v62, %v3758_v31  ;;  %v2205_v45 = vunpack.i.h.s16 %v4005_v63 }
0x1aa6   :  { %481 = vrot.lane.b32.xlu1 %v451_v29, %s3182_s7  ;;  %v4012_v29 = vrot.slane %v2187_v37, %v3730_v24  ;;  %v1919_v37 = vpack.i.b16 %v1911_v57, %v1911_v57 }
0x1aa8   :  { %v2207_v4 = vunpack.i.h.s16 %v4012_v29  ;;  %v4028_v6 = vcombine.high %v4012_v29, %v4012_v29 }
0x1aaa   :  { %485 = vrot.lane.b32.xlu1 %v465_v2, %s3182_s7  ;;  %v2213_v2 = vpack.i.b16 %v2205_v45, %v2205_v45  ;;  %v2215_v3 = vpack.i.b16 %v2207_v4, %v2207_v4  ;;  %v2746_v45 = vpack.i.b16 %v3985_v23, %v3985_v23  ;;  %v1975_v4 = vrot.slane %v1919_v37, %v3758_v31 }
0x1aab   :  { %v2766_v57 = vpack.i.b16 %v4028_v6, %v4028_v6 }
0x1aae   :  { %487 = vrot.lane.b32.xlu1 %v472_v5, %s3182_s7  ;;  %v2233_v5 = vrot.slane %v2213_v2, %v3758_v31 }
0x1ab2   :  { %774 = vrot.lane.b32.xlu1 %v724_v38, %s3182_s7 }
0x1ab6   :  { %778 = vrot.lane.b32.xlu1 %v738_v21, %s3182_s7  ;;  %v2247_v21 = vrot.slane %v2215_v3, %v3758_v31 }
0x1aba   :  { %782 = vrot.lane.b32.xlu1 %v752_v9, %s3182_s7  ;;  %v2211_v9 = vunpack.i.h.s16 %v4028_v6 }
0x1abe   :  { %786 = vrot.lane.b32.xlu1 %v766_v41, %s3182_s7  ;;  %v2219_v41 = vpack.i.b16 %v2211_v9, %v2211_v9 }
0x1ac0   :  { %v2275_v10 = vrot.slane %v2219_v41, %v3758_v31 }
0x1ac2   :  { %860 = vrot.lane.b32.xlu1 %v3502_v35, %s3182_s7  ;;  %v1073_v35 = vrot.slane %v1017_v58, %v3758_v31  ;;  %v1907_v58 = vunpack.i.h.s16 %v4045_v14 }
0x1ac4   :  { %v1915_v47 = vpack.i.b16 %v1907_v58, %v1907_v58 }
0x1ac6   :  { %1076 = vrot.lane.b32.xlu1 %v1031_v12, %s3182_s7  ;;  %v4041_v12 = vrot.slane %v1886_v36, %v3730_v24  ;;  %v1947_v56 = vrot.slane %v1915_v47, %v3758_v31 }
0x1ac8   :  { %v1905_v44 = vunpack.i.h.s16 %v4041_v12  ;;  %v4052_v19 = vcombine.high %v4041_v12, %v4041_v12 }
0x1aca   :  { %1080 = vrot.lane.b32.xlu1 %v1045_v40, %s3182_s7  ;;  %v1909_v46 = vunpack.i.h.s16 %v4052_v19 }
0x1ace   :  { %1084 = vrot.lane.b32.xlu1 %v1059_v25, %s3182_s7  ;;  %v1913_v25 = vpack.i.b16 %v1905_v44, %v1905_v44 }
0x1ad0   :  { %v1933_v13 = vrot.slane %v1913_v25, %v3758_v31 }
0x1ad2   :  { %1088 = vrot.lane.b32.xlu1 %v1073_v35, %s3182_s7  ;;  %v506_v35 = vld [vmem:[#allocation17 + $0x8] sm:$0x1] }
0x1ad6   :  { %1375 = vrot.lane.b32.xlu1 %v1325_v50, %s3182_s7 }
0x1ada   :  { %1379 = vrot.lane.b32.xlu1 %v1339_v20, %s3182_s7  ;;  %v512_v20 = vld [vmem:[#allocation17 + $0x10] sm:$0x1] }
0x1ade   :  { %1383 = vrot.lane.b32.xlu1 %v1353_v48, %s3182_s7 }
0x1ae2   :  { %1387 = vrot.lane.b32.xlu1 %v1367_v32, %s3182_s7  ;;  %v1917_v32 = vpack.i.b16 %v1909_v46, %v1909_v46 }
0x1ae4   :  { %v1961_v62 = vrot.slane %v1917_v32, %v3758_v31 }
0x1ae6   :  { %1461 = vrot.lane.b32.xlu1 %v3592_v49, %s3182_s7  ;;  %v4000_v49 = vcombine.high %v3985_v23, %v3985_v23 }
0x1ae8   :  { %v2748_v28 = vpack.i.b16 %v4000_v49, %v4000_v49  ;;  %v1610_v41 = vunpack.i.h.s16 %v4000_v49 }
0x1aea   :  { %1677 = vrot.lane.b32.xlu1 %v1632_v7, %s3182_s7  ;;  %v1667_v34 = vrot.slane %v2748_v28, %v3758_v31 }
0x1aee   :  { %1762 = vrot.lane.b32.xlu1 %v3635_v51, %s3182_s7  ;;  %v4019_v51 = vcombine.high %v4005_v63, %v4005_v63 }
0x1af0   :  { %v2209_v38 = vunpack.i.h.s16 %v4019_v51 }
0x1af2   :  { %1683 = vrot.lane.b32.xlu1 %v1653_v22, %s3182_s7  ;;  %v2217_v8 = vpack.i.b16 %v2209_v38, %v2209_v38  ;;  %v521_v22 = vld [vmem:[#allocation17 + $0x1c] sm:$0x1]  ;;  %v1639_v38 = vrot.slane %v2746_v45, %v3758_v31 }
0x1af6   :  { %1687 = vrot.lane.b32.xlu1 %v1667_v34, %s3182_s7  ;;  %v1625_v34 = vrot.slane %v2745_v18, %v3758_v31 }
0x1afa   :  { %2062 = vrot.lane.b32.xlu1 %v3681_v52, %s3182_s7  ;;  %v2261_v52 = vrot.slane %v2217_v8, %v3758_v31  ;;  %v1608_v8 = vunpack.i.h.s16 %v3992_v26 }
0x1afe   :  { %2278 = vrot.lane.b32.xlu1 %v2233_v5, %s3182_s7  ;;  %v800_v5 = vld [vmem:[#allocation17] sm:$0x1] }
0x1b02   :  { %2282 = vrot.lane.b32.xlu1 %v2247_v21, %s3182_s7  ;;  %v1614_v21 = vpack.i.b16 %v1606_v0, %v1606_v0 }
0x1b04   :  { %v1646_v1 = vrot.slane %v1614_v21, %v3758_v31 }
0x1b06   :  { %2286 = vrot.lane.b32.xlu1 %v2261_v52, %s3182_s7  ;;  %v1616_v52 = vpack.i.b16 %v1608_v8, %v1608_v8  ;;  %v1407_v8 = vld [vmem:[#allocation17 + $0x8] sm:$0x2] }
0x1b0a   :  { %2290 = vrot.lane.b32.xlu1 %v2275_v10, %s3182_s7 }
0x1b10   :  { %v2460_v40 = vpop.permute.xlu1 %2459 }
0x1b11   :  { %v2462_v39 = vadd.f32 %v2460_v40, %v2452_v17  ;;  %v1660_v17 = vrot.slane %v1616_v52, %v3758_v31  ;;  %v1618_v40 = vpack.i.b16 %v1610_v41, %v1610_v41  ;;  %v1413_v41 = vld [vmem:[#allocation17 + $0x10] sm:$0x2] }
0x1b13   :  { %2954 = vtanh.f32 %v2462_v39  ;;  %2475 = vrot.lane.b32.xlu1 %v2462_v39, %s3184_s11  ;;  %v1674_v58 = vrot.slane %v1618_v40, %v3758_v31 }
0x1b14   :  { %v478_v43 = vpop.permute.xlu1 %477 }
0x1b15   :  { %v507_v50 = vsel %vm3866_vm7, %v478_v43, %v506_v35 }
0x1b16   :  { %508 = vst [vmem:[#allocation17 + $0x8] sm:$0x1] %v507_v50  ;;  %v2764_v50 = vpack.i.b16 %v4012_v29, %v4012_v29  ;;  %v1110_v29 = vld [vmem:[#allocation17 + $0xc] sm:$0x2] }
0x1b17   :  { %1978 = vrot.lane.b32.xlu1 %v1933_v13, %s3182_s7  ;;  %v1162_v13 = vpop.permute.xlu0 %1161 }
0x1b18   :  { %v482_v55 = vpop.permute.xlu1 %481  ;;  %v2240_v59 = vrot.slane %v2764_v50, %v3758_v31  ;;  %v1720_v50 = vld [vmem:[#allocation17 + $0x18] sm:$0x4] }
0x1b19   :  { %v513_v48 = vsel %vm3866_vm7, %v482_v55, %v512_v20  ;;  %v2765_v20 = vpack.i.b16 %v4019_v51, %v4019_v51  ;;  %v1116_v51 = vld [vmem:[#allocation17 + $0x14] sm:$0x2] }
0x1b1a   :  { %514 = vst [vmem:[#allocation17 + $0x10] sm:$0x1] %v513_v48 }
0x1b1b   :  { %1982 = vrot.lane.b32.xlu1 %v1947_v56, %s3182_s7  ;;  %v1378_v48 = vpop.permute.xlu0 %1377  ;;  %v2254_v32 = vrot.slane %v2765_v20, %v3758_v31  ;;  %v2306_v20 = vld [vmem:[#allocation17 + $0x4] sm:$0x8] }
0x1b1c   :  { %v486_v54 = vpop.permute.xlu1 %485 }
0x1b1d   :  { %v2955_v7 = vpop.eup %2954  ;;  %v519_v27 = vsel %vm3866_vm7, %v486_v54, %v518_v60  ;;  %v806_v15 = vld [vmem:[#allocation17 + $0x8] sm:$0x1]  ;;  %v2324_v54 = vld [vmem:[#allocation17 + $0x1c] sm:$0x8] }
0x1b1e   :  { %520 = vst [vmem:[#allocation17 + $0x18] sm:$0x1] %v519_v27  ;;  %2465 = vrot.lane.b32.xlu0 %v2955_v7, %s3177_s3  ;;  %v2268_v7 = vrot.slane %v2766_v57, %v3758_v31  ;;  %v2318_v57 = vld [vmem:[#allocation17 + $0x14] sm:$0x8] }
0x1b1f   :  { %1986 = vrot.lane.b32.xlu1 %v1961_v62, %s3182_s7  ;;  %v1382_v27 = vpop.permute.xlu0 %1381 }
0x1b20   :  { %v488_v28 = vpop.permute.xlu1 %487 }
0x1b21   :  { %v522_v2 = vsel %vm3866_vm7, %v488_v28, %v521_v22  ;;  %v812_v11 = vld [vmem:[#allocation17 + $0x10] sm:$0x1]  ;;  %v1122_v22 = vld [vmem:[#allocation17 + $0x1c] sm:$0x2]  ;;  %vm4203_vm7 = vmand %vm1699_vm15, %vm2000_vm6 }
0x1b22   :  { %523 = vst [vmem:[#allocation17 + $0x1c] sm:$0x1] %v522_v2  ;;  %1675 = vrot.lane.b32.xlu0 %v1625_v34, %s3182_s7 }
0x1b23   :  { %1990 = vrot.lane.b32.xlu1 %v1975_v4, %s3182_s7  ;;  %v1386_v2 = vpop.permute.xlu0 %1385 }
0x1b24   :  { %v775_v3 = vpop.permute.xlu1 %774 }
0x1b25   :  { %v801_v23 = vsel %vm3878_vm9, %v775_v3, %v800_v5  ;;  %v818_v39 = vld [vmem:[#allocation17 + $0x18] sm:$0x1]  ;;  %v1401_v5 = vld [vmem:[#allocation17] sm:$0x2]  ;;  %v2754_v3 = vpack.i.b16 %v4041_v12, %v4041_v12 }
0x1b26   :  { %802 = vst [vmem:[#allocation17] sm:$0x1] %v801_v23  ;;  %1679 = vrot.lane.b32.xlu0 %v1639_v38, %s3182_s7 }
0x1b27   :  { %v1926_v23 = vrot.slane %v2754_v3, %v3758_v31  ;;  %v1390_v12 = vpop.permute.xlu0 %1389 }
0x1b28   :  { %v779_v9 = vpop.permute.xlu1 %778 }
0x1b29   :  { %v821_v36 = vld [vmem:[#allocation17 + $0x1c] sm:$0x1]  ;;  %v807_v10 = vsel %vm3878_vm9, %v779_v9, %v806_v15  ;;  %v2755_v15 = vpack.i.b16 %v4045_v14, %v4045_v14 }
0x1b2a   :  { %v822_v26 = vsel %vm3878_vm9, %v3888_v30, %v821_v36  ;;  %808 = vst [vmem:[#allocation17 + $0x8] sm:$0x1] %v807_v10  ;;  %1681 = vrot.lane.b32.xlu0 %v1646_v1, %s3182_s7  ;;  %v2763_v30 = vpack.i.b16 %v4005_v63, %v4005_v63  ;;  %v1104_v63 = vld [vmem:[#allocation17 + $0x4] sm:$0x2]  ;;  %v2756_v10 = vpack.i.b16 %v4052_v19, %v4052_v19 }
0x1b2b   :  { %823 = vst [vmem:[#allocation17 + $0x1c] sm:$0x1] %v822_v26  ;;  %v1940_v36 = vrot.slane %v2755_v15, %v3758_v31 }
0x1b2c   :  { %v783_v44 = vpop.permute.xlu1 %782  ;;  %v2226_v46 = vrot.slane %v2763_v30, %v3758_v31 }
0x1b2d   :  { %v813_v49 = vsel %vm3878_vm9, %v783_v44, %v812_v11  ;;  %v1419_v11 = vld [vmem:[#allocation17 + $0x18] sm:$0x2]  ;;  %v1954_v44 = vrot.slane %v2756_v10, %v3758_v31 }
0x1b2e   :  { %814 = vst [vmem:[#allocation17 + $0x10] sm:$0x1] %v813_v49  ;;  %1685 = vrot.lane.b32.xlu0 %v1660_v17, %s3182_s7  ;;  %v2757_v17 = vpack.i.b16 %v4062_v53, %v4062_v53  ;;  %v1705_v53 = vld [vmem:[#allocation17 + $0x4] sm:$0x4] }
0x1b30   :  { %v787_v25 = vpop.permute.xlu1 %786  ;;  %v1968_v49 = vrot.slane %v2757_v17, %v3758_v31 }
0x1b31   :  { %v819_v35 = vsel %vm3878_vm9, %v787_v25, %v818_v39  ;;  %vm4269_vm9 = vmand %vm2300_vm3, %vm2601_vm8 }
0x1b32   :  { %820 = vst [vmem:[#allocation17 + $0x18] sm:$0x1] %v819_v35  ;;  %1689 = vrot.lane.b32.xlu0 %v1674_v58, %s3182_s7  ;;  %v1714_v35 = vld [vmem:[#allocation17 + $0x10] sm:$0x4] }
0x1b34   :  { %v861_v43 = vpop.permute.xlu1 %860 }
0x1b35   :  { %863 = vst.msk [vmem:[#allocation2] sm:$0xff] %vm121_vm0, %v861_v43 }
0x1b36   :  { %1164 = vst.msk [vmem:[#allocation2] sm:$0xff] %vm121_vm0, %v1162_v13  ;;  %2276 = vrot.lane.b32.xlu0 %v2226_v46, %s3182_s7 }
0x1b38   :  { %v1077_v47 = vpop.permute.xlu1 %1076 }
0x1b39   :  { %v1105_v55 = vsel %vm3891_vm12, %v1077_v47, %v1104_v63 }
0x1b3a   :  { %1106 = vst [vmem:[#allocation17 + $0x4] sm:$0x2] %v1105_v55  ;;  %2280 = vrot.lane.b32.xlu0 %v2240_v59, %s3182_s7 }
0x1b3c   :  { %v1081_v56 = vpop.permute.xlu1 %1080 }
0x1b3d   :  { %v1111_v60 = vsel %vm3891_vm12, %v1081_v56, %v1110_v29 }
0x1b3e   :  { %1112 = vst [vmem:[#allocation17 + $0xc] sm:$0x2] %v1111_v60  ;;  %2284 = vrot.lane.b32.xlu0 %v2254_v32, %s3182_s7 }
0x1b40   :  { %v1085_v18 = vpop.permute.xlu1 %1084 }
0x1b41   :  { %v1404_v62 = vld [vmem:[#allocation17 + $0x4] sm:$0x2]  ;;  %v1117_v6 = vsel %vm3891_vm12, %v1085_v18, %v1116_v51 }
0x1b42   :  { %v1405_v37 = vsel %vm4128_vm14, %v1378_v48, %v1404_v62  ;;  %1118 = vst [vmem:[#allocation17 + $0x14] sm:$0x2] %v1117_v6  ;;  %2288 = vrot.lane.b32.xlu0 %v2268_v7, %s3182_s7  ;;  %v2312_v48 = vld [vmem:[#allocation17 + $0xc] sm:$0x8] }
0x1b43   :  { %1406 = vst [vmem:[#allocation17 + $0x4] sm:$0x2] %v1405_v37 }
0x1b44   :  { %v1089_v28 = vpop.permute.xlu1 %1088 }
0x1b45   :  { %v1410_v34 = vld [vmem:[#allocation17 + $0xc] sm:$0x2]  ;;  %v1123_v45 = vsel %vm3891_vm12, %v1089_v28, %v1122_v22 }
0x1b46   :  { %v1411_v0 = vsel %vm4128_vm14, %v1382_v27, %v1410_v34  ;;  %1124 = vst [vmem:[#allocation17 + $0x1c] sm:$0x2] %v1123_v45  ;;  %2363 = vrot.lane.b32.xlu0 %v3720_v42, %s3182_s7 }
0x1b47   :  { %1412 = vst [vmem:[#allocation17 + $0xc] sm:$0x2] %v1411_v0  ;;  %v1702_v0 = vld [vmem:[#allocation17] sm:$0x4] }
0x1b48   :  { %v1376_v4 = vpop.permute.xlu1 %1375 }
0x1b49   :  { %v1416_v38 = vld [vmem:[#allocation17 + $0x14] sm:$0x2]  ;;  %v1402_v21 = vsel %vm4128_vm14, %v1376_v4, %v1401_v5 }
0x1b4a   :  { %v1417_v33 = vsel %vm4128_vm14, %v1386_v2, %v1416_v38  ;;  %1403 = vst [vmem:[#allocation17] sm:$0x2] %v1402_v21  ;;  %2368 = vrot.lane.b32.xlu0 %v3711_v16, %s3184_s11  ;;  %v1708_v38 = vld [vmem:[#allocation17 + $0x8] sm:$0x4] }
0x1b4b   :  { %1418 = vst [vmem:[#allocation17 + $0x14] sm:$0x2] %v1417_v33 }
0x1b4c   :  { %v1380_v42 = vpop.permute.xlu1 %1379 }
0x1b4d   :  { %v1422_v9 = vld [vmem:[#allocation17 + $0x1c] sm:$0x2]  ;;  %v1408_v1 = vsel %vm4128_vm14, %v1380_v42, %v1407_v8 }
0x1b4e   :  { %v1423_v52 = vsel %vm4128_vm14, %v1390_v12, %v1422_v9  ;;  %1409 = vst [vmem:[#allocation17 + $0x8] sm:$0x2] %v1408_v1  ;;  %1976 = vrot.lane.b32.xlu0 %v1926_v23, %s3182_s7  ;;  %v1711_v12 = vld [vmem:[#allocation17 + $0xc] sm:$0x4] }
0x1b4f   :  { %1424 = vst [vmem:[#allocation17 + $0x1c] sm:$0x2] %v1423_v52 }
0x1b50   :  { %v1384_v16 = vpop.permute.xlu1 %1383 }
0x1b51   :  { %v1414_v14 = vsel %vm4128_vm14, %v1384_v16, %v1413_v41 }
0x1b52   :  { %1415 = vst [vmem:[#allocation17 + $0x10] sm:$0x2] %v1414_v14  ;;  %1980 = vrot.lane.b32.xlu0 %v1940_v36, %s3182_s7  ;;  %v1717_v14 = vld [vmem:[#allocation17 + $0x14] sm:$0x4] }
0x1b54   :  { %v1388_v26 = vpop.permute.xlu1 %1387 }
0x1b55   :  { %v1420_v40 = vsel %vm4128_vm14, %v1388_v26, %v1419_v11 }
0x1b56   :  { %1421 = vst [vmem:[#allocation17 + $0x18] sm:$0x2] %v1420_v40  ;;  %1984 = vrot.lane.b32.xlu0 %v1954_v44, %s3182_s7 }
0x1b58   :  { %v1462_v19 = vpop.permute.xlu1 %1461 }
0x1b59   :  { %1464 = vst.msk [vmem:[#allocation2] sm:$0xff] %vm121_vm0, %v1462_v19 }
0x1b5a   :  { %1988 = vrot.lane.b32.xlu0 %v1968_v49, %s3182_s7 }
0x1b5c   :  { %v1678_v25 = vpop.permute.xlu1 %1677 }
0x1b5d   :  { %v1706_v58 = vsel %vm4176_vm2, %v1678_v25, %v1705_v53 }
0x1b5e   :  { %1707 = vst [vmem:[#allocation17 + $0x4] sm:$0x4] %v1706_v58  ;;  %v1723_v58 = vld [vmem:[#allocation17 + $0x1c] sm:$0x4] }
0x1b60   :  { %v1763_v30 = vpop.permute.xlu1 %1762 }
0x1b61   :  { %1765 = vst.msk [vmem:[#allocation2] sm:$0xff] %vm121_vm0, %v1763_v30 }
0x1b64   :  { %v1684_v43 = vpop.permute.xlu1 %1683 }
0x1b65   :  { %v1715_v46 = vsel %vm4176_vm2, %v1684_v43, %v1714_v35  ;;  %v2005_v6 = vld [vmem:[#allocation17 + $0x4] sm:$0x4] }
0x1b66   :  { %1716 = vst [vmem:[#allocation17 + $0x10] sm:$0x4] %v1715_v46 }
0x1b68   :  { %v1688_v13 = vpop.permute.xlu1 %1687 }
0x1b69   :  { %v1721_v63 = vsel %vm4176_vm2, %v1688_v13, %v1720_v50 }
0x1b6a   :  { %1722 = vst [vmem:[#allocation17 + $0x18] sm:$0x4] %v1721_v63 }
0x1b6c   :  { %v2063_v47 = vpop.permute.xlu1 %2062 }
0x1b6d   :  { %2065 = vst.msk [vmem:[#allocation2] sm:$0xff] %vm121_vm0, %v2063_v47 }
0x1b70   :  { %v2279_v55 = vpop.permute.xlu1 %2278 }
0x1b71   :  { %v2307_v29 = vsel %vm4189_vm5, %v2279_v55, %v2306_v20  ;;  %v2303_v55 = vld [vmem:[#allocation17] sm:$0x8] }
0x1b72   :  { %2308 = vst [vmem:[#allocation17 + $0x4] sm:$0x8] %v2307_v29 }
0x1b74   :  { %v2283_v56 = vpop.permute.xlu1 %2282 }
0x1b75   :  { %v2313_v32 = vsel %vm4189_vm5, %v2283_v56, %v2312_v48 }
0x1b76   :  { %2314 = vst [vmem:[#allocation17 + $0xc] sm:$0x8] %v2313_v32 }
0x1b78   :  { %v2287_v60 = vpop.permute.xlu1 %2286 }
0x1b79   :  { %v2319_v51 = vsel %vm4189_vm5, %v2287_v60, %v2318_v57 }
0x1b7a   :  { %2320 = vst [vmem:[#allocation17 + $0x14] sm:$0x8] %v2319_v51 }
0x1b7c   :  { %v2291_v18 = vpop.permute.xlu1 %2290 }
0x1b7d   :  { %v2325_v7 = vsel %vm4189_vm5, %v2291_v18, %v2324_v54  ;;  %v2309_v54 = vld [vmem:[#allocation17 + $0x8] sm:$0x8] }
0x1b7e   :  { %2326 = vst [vmem:[#allocation17 + $0x1c] sm:$0x8] %v2325_v7 }
0x1b85   :  { %v2476_v27 = vpop.permute.xlu1 %2475 }
0x1b86   :  { %2478 = vst.msk [vmem:[#allocation3 + $0x8] sm:$0xff] %vm121_vm0, %v2476_v27 }
0x1b89   :  { %v1979_v37 = vpop.permute.xlu1 %1978 }
0x1b8a   :  { %v2006_v22 = vsel %vm4203_vm7, %v1979_v37, %v2005_v6 }
0x1b8b   :  { %2007 = vst [vmem:[#allocation17 + $0x4] sm:$0x4] %v2006_v22  ;;  %v2315_v22 = vld [vmem:[#allocation17 + $0x10] sm:$0x8] }
0x1b8d   :  { %v2635_v28 = vld [vmem:[#allocation3 + $0x8] sm:$0xff]  ;;  %v1983_v49 = vpop.permute.xlu1 %1982 }
0x1b8e   :  { %2637 = vst.msk [vmem:[#allocation20 + $0x8] sm:$0xff] %vm121_vm0, %v2635_v28 }
0x1b90   :  { %v2466_v34 = vpop.permute.xlu0 %2465 }
0x1b91   :  { %v2468_v45 = vmul.f32 %v3909_v61, %v2466_v34  ;;  %v1987_v48 = vpop.permute.xlu1 %1986  ;;  %v2321_v34 = vld [vmem:[#allocation17 + $0x18] sm:$0x8] }
0x1b93   :  { %v2479_v2 = vpack.c.bf16 %v2468_v45, %v2468_v45  ;;  %2470 = vrot.lane.b32.xlu1 %v2468_v45, %s3182_s7 }
0x1b94   :  { %v1676_v4 = vpop.permute.xlu0 %1675 }
0x1b95   :  { %v2487_v5 = vrot.slane %v2479_v2, %v3730_v24  ;;  %v1703_v3 = vsel %vm4176_vm2, %v1676_v4, %v1702_v0  ;;  %v1991_v7 = vpop.permute.xlu1 %1990 }
0x1b96   :  { %1704 = vst [vmem:[#allocation17] sm:$0x4] %v1703_v3 }
0x1b97   :  { %v2488_v21 = vcombine.high %v2487_v5, %v2487_v5  ;;  %v2495_v33 = vrot.slane %v2487_v5, %v3730_v24 }
0x1b98   :  { %v1680_v42 = vpop.permute.xlu0 %1679 }
0x1b99   :  { %v2502_v8 = vrot.slane %v2488_v21, %v3730_v24  ;;  %v1709_v61 = vsel %vm4176_vm2, %v1680_v42, %v1708_v38  ;;  %v2772_v23 = vpack.i.b16 %v2495_v33, %v2495_v33  ;;  %v2503_v15 = vcombine.high %v2495_v33, %v2495_v33 }
0x1b9a   :  { %1710 = vst [vmem:[#allocation17 + $0x8] sm:$0x4] %v1709_v61  ;;  %v2506_v9 = vunpack.i.h.s16 %v2495_v33  ;;  %v2014_v61 = vld [vmem:[#allocation17 + $0x10] sm:$0x4] }
0x1b9b   :  { %v2527_v1 = vrot.slane %v2772_v23, %v3758_v31  ;;  %v2773_v52 = vpack.i.b16 %v2502_v8, %v2502_v8  ;;  %v2508_v16 = vunpack.i.h.s16 %v2502_v8  ;;  %v2510_v11 = vunpack.i.h.s16 %v2503_v15 }
0x1b9c   :  { %v1682_v41 = vpop.permute.xlu0 %1681  ;;  %v2514_v36 = vpack.i.b16 %v2506_v9, %v2506_v9  ;;  %v2504_v44 = vcombine.high %v2502_v8, %v2502_v8  ;;  %v2774_v40 = vpack.i.b16 %v2503_v15, %v2503_v15 }
0x1b9d   :  { %v1712_v10 = vsel %vm4176_vm2, %v1682_v41, %v1711_v12  ;;  %2577 = vrot.lane.b32.xlu0 %v2527_v1, %s3182_s7  ;;  %v2516_v26 = vpack.i.b16 %v2508_v16, %v2508_v16  ;;  %v2541_v17 = vrot.slane %v2773_v52, %v3758_v31  ;;  %v2518_v30 = vpack.i.b16 %v2510_v11, %v2510_v11  ;;  %v2002_v5 = vld [vmem:[#allocation17] sm:$0x4]  ;;  %v2020_v12 = vld [vmem:[#allocation17 + $0x18] sm:$0x4] }
0x1b9e   :  { %1713 = vst [vmem:[#allocation17 + $0xc] sm:$0x4] %v1712_v10  ;;  %v2534_v24 = vrot.slane %v2514_v36, %v3758_v31  ;;  %v2512_v35 = vunpack.i.h.s16 %v2504_v44  ;;  %v2555_v43 = vrot.slane %v2774_v40, %v3758_v31  ;;  %v2775_v46 = vpack.i.b16 %v2504_v44, %v2504_v44 }
0x1b9f   :  { %v2548_v25 = vrot.slane %v2516_v26, %v3758_v31  ;;  %v2562_v20 = vrot.slane %v2518_v30, %v3758_v31 }
0x1ba0   :  { %2579 = vrot.lane.b32.xlu1 %v2534_v24, %s3182_s7  ;;  %v1686_v19 = vpop.permute.xlu0 %1685  ;;  %v2520_v29 = vpack.i.b16 %v2512_v35, %v2512_v35  ;;  %v2569_v56 = vrot.slane %v2775_v46, %v3758_v31 }
0x1ba1   :  { %v1718_v53 = vsel %vm4176_vm2, %v1686_v19, %v1717_v14  ;;  %2581 = vrot.lane.b32.xlu0 %v2541_v17, %s3182_s7  ;;  %v2008_v33 = vld [vmem:[#allocation17 + $0x8] sm:$0x4] }
0x1ba2   :  { %1719 = vst [vmem:[#allocation17 + $0x14] sm:$0x4] %v1718_v53  ;;  %v2576_v51 = vrot.slane %v2520_v29, %v3758_v31 }
0x1ba4   :  { %2583 = vrot.lane.b32.xlu1 %v2548_v25, %s3182_s7  ;;  %v1690_v50 = vpop.permute.xlu0 %1689 }
0x1ba5   :  { %v2011_v13 = vld [vmem:[#allocation17 + $0xc] sm:$0x4]  ;;  %v1724_v63 = vsel %vm4176_vm2, %v1690_v50, %v1723_v58  ;;  %2585 = vrot.lane.b32.xlu0 %v2555_v43, %s3182_s7 }
0x1ba6   :  { %v2012_v47 = vsel %vm4203_vm7, %v1983_v49, %v2011_v13  ;;  %1725 = vst [vmem:[#allocation17 + $0x1c] sm:$0x4] %v1724_v63 }
0x1ba7   :  { %2013 = vst [vmem:[#allocation17 + $0xc] sm:$0x4] %v2012_v47 }
0x1ba8   :  { %2587 = vrot.lane.b32.xlu1 %v2562_v20, %s3182_s7  ;;  %v2277_v32 = vpop.permute.xlu0 %2276 }
0x1ba9   :  { %v2017_v57 = vld [vmem:[#allocation17 + $0x14] sm:$0x4]  ;;  %v2304_v39 = vsel %vm4189_vm5, %v2277_v32, %v2303_v55  ;;  %2589 = vrot.lane.b32.xlu0 %v2569_v56, %s3182_s7 }
0x1baa   :  { %v2018_v60 = vsel %vm4203_vm7, %v1987_v48, %v2017_v57  ;;  %2305 = vst [vmem:[#allocation17] sm:$0x8] %v2304_v39 }
0x1bab   :  { %2019 = vst [vmem:[#allocation17 + $0x14] sm:$0x4] %v2018_v60 }
0x1bac   :  { %2591 = vrot.lane.b32.xlu1 %v2576_v51, %s3182_s7  ;;  %v2281_v18 = vpop.permute.xlu0 %2280 }
0x1bad   :  { %v2023_v27 = vld [vmem:[#allocation17 + $0x1c] sm:$0x4]  ;;  %v2310_v6 = vsel %vm4189_vm5, %v2281_v18, %v2309_v54 }
0x1bae   :  { %v2024_v37 = vsel %vm4203_vm7, %v1991_v7, %v2023_v27  ;;  %2311 = vst [vmem:[#allocation17 + $0x8] sm:$0x8] %v2310_v6 }
0x1baf   :  { %2025 = vst [vmem:[#allocation17 + $0x1c] sm:$0x4] %v2024_v37 }
0x1bb0   :  { %v2285_v28 = vpop.permute.xlu0 %2284 }
0x1bb1   :  { %v2316_v31 = vsel %vm4189_vm5, %v2285_v28, %v2315_v22  ;;  %v2603_v62 = vld [vmem:[#allocation17] sm:$0x8] }
0x1bb2   :  { %2317 = vst [vmem:[#allocation17 + $0x10] sm:$0x8] %v2316_v31 }
0x1bb4   :  { %v2289_v45 = vpop.permute.xlu0 %2288 }
0x1bb5   :  { %v2322_v0 = vsel %vm4189_vm5, %v2289_v45, %v2321_v34 }
0x1bb6   :  { %2323 = vst [vmem:[#allocation17 + $0x18] sm:$0x8] %v2322_v0 }
0x1bb8   :  { %v2364_v2 = vpop.permute.xlu0 %2363 }
0x1bb9   :  { %2366 = vst.msk [vmem:[#allocation2] sm:$0xff] %vm121_vm0, %v2364_v2 }
0x1bbc   :  { %v2369_v4 = vpop.permute.xlu0 %2368 }
0x1bbd   :  { %2371 = vst.msk [vmem:[#allocation3] sm:$0xff] %vm121_vm0, %v2369_v4 }
0x1bc0   :  { %v1977_v3 = vpop.permute.xlu0 %1976  ;;  %v2630_v38 = vld [vmem:[#allocation2] sm:$0xff] }
0x1bc1   :  { %v2003_v21 = vsel %vm4203_vm7, %v1977_v3, %v2002_v5  ;;  %2632 = vst.msk [vmem:[#allocation18] sm:$0xff] %vm121_vm0, %v2630_v38 }
0x1bc2   :  { %2004 = vst [vmem:[#allocation17] sm:$0x4] %v2003_v21 }
0x1bc4   :  { %v1981_v42 = vpop.permute.xlu0 %1980  ;;  %v2634_v59 = vld [vmem:[#allocation3] sm:$0xff] }
0x1bc5   :  { %v2009_v8 = vsel %vm4203_vm7, %v1981_v42, %v2008_v33  ;;  %2636 = vst.msk [vmem:[#allocation20] sm:$0xff] %vm121_vm0, %v2634_v59 }
0x1bc6   :  { %2010 = vst [vmem:[#allocation17 + $0x8] sm:$0x4] %v2009_v8 }
0x1bc8   :  { %v1985_v23 = vpop.permute.xlu0 %1984 }
0x1bc9   :  { %v2015_v15 = vsel %vm4203_vm7, %v1985_v23, %v2014_v61 }
0x1bca   :  { %2016 = vst [vmem:[#allocation17 + $0x10] sm:$0x4] %v2015_v15 }
0x1bcc   :  { %v1989_v9 = vpop.permute.xlu0 %1988 }
0x1bcd   :  { %v2021_v1 = vsel %vm4203_vm7, %v1989_v9, %v2020_v12 }
0x1bce   :  { %2022 = vst [vmem:[#allocation17 + $0x18] sm:$0x4] %v2021_v1 }
0x1c05   :  { %v2471_v52 = vpop.permute.xlu1 %2470 }
0x1c06   :  { %2473 = vst.msk [vmem:[#allocation2 + $0x8] sm:$0xff] %vm121_vm0, %v2471_v52 }
0x1c0d   :  { %v2631_v41 = vld [vmem:[#allocation2 + $0x8] sm:$0xff] }
0x1c0e   :  { %2633 = vst.msk [vmem:[#allocation18 + $0x8] sm:$0xff] %vm121_vm0, %v2631_v41 }
0x1c0f   :  { %v2578_v36 = vpop.permute.xlu0 %2577 }
0x1c10   :  { %3105 = shalt.err (!%p3102_p10)
}
0x1c11   :  { %s3106_s26 = scalar_lea.hbm %s4351_s9, 256 }
0x1c12   :  { %p3107_p11 = scmp.ne.s32.totalorder %s4351_s9, %s3106_s26  ;;  %p3110_p12 = scmp.lt.u32.totalorder %s3106_s26, %s4351_s9 }
0x1c14   :  { %p3112_p13 = pnand %p3110_p12, %p3107_p11 }
0x1c16   :  { %3115 = shalt.err (!%p3112_p13)
}
0x1c17   :  { %2661 = dma.vmem_to_hbm [thread:$0]  %s2656_s22, 256, %s4351_s9, [#allocation19], %s3174_s1, %s3174_s1, %s3175_s14   ;;  %v2604_v10 = vsel %vm4269_vm9, %v2578_v36, %v2603_v62 }
0x1c18   :  { %s3116_s30 = scalar_lea.vmem %s4273_s24, 256  ;;  %p3121_p1 = scmp.lt.s32.totalorder %s4273_s24, %s4273_s24 }
0x1c19   :  { %p3117_p0 = scmp.ne.s32.totalorder %s4273_s24, %s3116_s30  ;;  %p3122_p2 = scmp.lt.s32.totalorder %s3116_s30, %s3116_s30 }
0x1c1b   :  { %p3123_p3 = por %p3122_p2, %p3121_p1 }
0x1c1d   :  { %p3124_p4 = pnand %p3123_p3, %p3117_p0 }
0x1c1f   :  { %3127 = shalt.err (!%p3124_p4)
}
0x1c20   :  { %s3128_s17 = scalar_lea.hbm %s4352_s10, 256 }
0x1c21   :  { %p3129_p5 = scmp.ne.s32.totalorder %s4352_s10, %s3128_s17  ;;  %p3132_p6 = scmp.lt.u32.totalorder %s3128_s17, %s4352_s10 }
0x1c23   :  { %p3134_p7 = pnand %p3132_p6, %p3129_p5 }
0x1c25   :  { %3137 = shalt.err (!%p3134_p7)
}
0x1c26   :  { %2673 = dma.vmem_to_hbm [thread:$0]  %s4273_s24, 256, %s4352_s10, [#allocation19], %s3174_s1, %s3174_s1, %s3175_s14   ;;  %2605 = vst [vmem:[#allocation17] sm:$0x8] %v2604_v10  ;;  %v2606_v24 = vld [vmem:[#allocation17 + $0x4] sm:$0x8]  ;;  %v2580_v14 = vpop.permute.xlu1 %2579  ;;  %v2582_v44 = vpop.permute.xlu0 %2581 }
0x1c27   :  { %v2607_v26 = vsel %vm4269_vm9, %v2580_v14, %v2606_v24  ;;  %v2609_v11 = vld [vmem:[#allocation17 + $0x8] sm:$0x8]  ;;  %v2612_v40 = vld [vmem:[#allocation17 + $0xc] sm:$0x8]  ;;  %v2615_v53 = vld [vmem:[#allocation17 + $0x10] sm:$0x8] }
0x1c28   :  { %2608 = vst [vmem:[#allocation17 + $0x4] sm:$0x8] %v2607_v26  ;;  %v2610_v17 = vsel %vm4269_vm9, %v2582_v44, %v2609_v11  ;;  %v2618_v30 = vld [vmem:[#allocation17 + $0x14] sm:$0x8]  ;;  %v2621_v46 = vld [vmem:[#allocation17 + $0x18] sm:$0x8] }
0x1c29   :  { %2611 = vst [vmem:[#allocation17 + $0x8] sm:$0x8] %v2610_v17  ;;  %s3189_s10 = smov [#allocation17]   ;;  %v2624_v63 = vld [vmem:[#allocation17 + $0x1c] sm:$0x8] }
0x1c2a   :  { %v2584_v19 = vpop.permute.xlu1 %2583  ;;  %v2586_v25 = vpop.permute.xlu0 %2585  ;;  %s2643_s1 = sshll.u32 %s3189_s10, 4  ;;  %s2644_s1 = int_to_ptr.vmem [resolvable:$true] %s2643_s1 }
0x1c2b   :  { %v2613_v49 = vsel %vm4269_vm9, %v2584_v19, %v2612_v40  ;;  %v2616_v58 = vsel %vm4269_vm9, %v2586_v25, %v2615_v53  ;;  %s3138_s14 = scalar_lea.vmem %s2644_s1, 512  ;;  %p3143_p9 = scmp.lt.s32.totalorder %s2644_s1, %s2644_s1 }
0x1c2c   :  { %2614 = vst [vmem:[#allocation17 + $0xc] sm:$0x8] %v2613_v49  ;;  %2617 = vst [vmem:[#allocation17 + $0x10] sm:$0x8] %v2616_v58  ;;  %p3139_p8 = scmp.ne.s32.totalorder %s2644_s1, %s3138_s14  ;;  %p3144_p10 = scmp.lt.s32.totalorder %s3138_s14, %s3138_s14 }
0x1c2e   :  { %v2588_v35 = vpop.permute.xlu1 %2587  ;;  %v2590_v50 = vpop.permute.xlu0 %2589  ;;  %p3145_p11 = por %p3144_p10, %p3143_p9 }
0x1c2f   :  { %v2619_v43 = vsel %vm4269_vm9, %v2588_v35, %v2618_v30  ;;  %v2622_v13 = vsel %vm4269_vm9, %v2590_v50, %v2621_v46 }
0x1c30   :  { %2620 = vst [vmem:[#allocation17 + $0x14] sm:$0x8] %v2619_v43  ;;  %2623 = vst [vmem:[#allocation17 + $0x18] sm:$0x8] %v2622_v13  ;;  %p3146_p12 = pnand %p3145_p11, %p3139_p8 }
0x1c32   :  { %v2592_v47 = vpop.permute.xlu1 %2591 }
0x1c33   :  { %v2625_v20 = vsel %vm4269_vm9, %v2592_v47, %v2624_v63 }
0x1c34   :  { %2626 = vst [vmem:[#allocation17 + $0x1c] sm:$0x8] %v2625_v20 }
0x1c35   :  { %3149 = shalt.err (!%p3146_p12)
}
0x1c36   :  { %s3150_s22 = scalar_lea.hbm %s4350_s8, 512 }
0x1c37   :  { %p3151_p13 = scmp.ne.s32.totalorder %s4350_s8, %s3150_s22  ;;  %p3154_p0 = scmp.lt.u32.totalorder %s3150_s22, %s4350_s8 }
0x1c39   :  { %p3156_p1 = pnand %p3154_p0, %p3151_p13 }
0x1c3b   :  { %3159 = shalt.err (!%p3156_p1)
}
0x1c3c   :  { %2649 = dma.vmem_to_hbm [thread:$0]  %s2644_s1, 512, %s4350_s8, [#allocation8], %s3177_s3, %s3177_s3, %s3178_s16  }
0x1c3d   :  { %3168 = dma.done.wait [#allocation8], 512  }
0x1c3e   :  { %3169 = vsyncadd [#allocation8], 4294966784 }
0x1c3f   :  { %3170 = dma.done.wait [#allocation19], 512  }
0x1c40   :  { %3171 = vsyncadd [#allocation19], 4294966784 }
0x1c41   :  { %2683 = vsyncpa [#allocation7], 1 }
0x1c42   :  { %2684 = vsyncpa [#allocation10], 1 }
0x1c43   :  { %2685 = vsyncpa [#allocation13], 1 }
0x1c44   :  { %2686 = vsyncpa [#allocation16], 1 }
0x1c45   :  { %2687 = vsyncpa [#allocation8], 1 }
0x1c46   :  { %2688 = vsyncpa [#allocation19], 1 }

</bundles_post_ra>
